<compile_context>
chip_gen: v5e
topology: v5e:2x2
jax: 0.10.0
libtpu: 0.0.40
codegen_flags: <defaults>
</compile_context>

<pallas_src>
import functools
import math

import jax
import jax.numpy as jnp
from jax import lax
from jax.experimental import pallas as pl
from jax.experimental.pallas import tpu as pltpu


# ----------------------------------------------------------------------------------
# In-kernel helpers (rolls keep every tensor full-width / (8,128)-tiled)
# ----------------------------------------------------------------------------------

def _shift_w(t, k):
    # t[..., j] <- t[..., j+k] (wrap); the wrapped trailing columns must be masked.
    return pltpu.roll(t, t.shape[-1] - k, t.ndim - 1)


def _shift_h(t, k):
    # t[..., r, :] <- t[..., r+k, :] (wrap); the wrapped trailing rows must be masked.
    return pltpu.roll(t, t.shape[-2] - k, t.ndim - 2)


def _huber(d):
    ad = jnp.abs(d)
    return jnp.where(ad < 1.0, 0.5 * d * d, ad - 0.5)


def _pool3(t):
    # 3x3 "valid" average pool via separable XLU rolls; the wrapped last-2 rows/cols
    # are garbage and are zeroed by the caller's validity mask.
    hs = t + _shift_w(t, 1) + _shift_w(t, 2)
    vs = hs + _shift_h(hs, 1) + _shift_h(hs, 2)
    return vs * (1.0 / 9.0)


def _masked_ssim_sums(x, view_pairs, row_band):
    """Masked-SSIM partial sums for one reference image and several warped views.

    x: (C,H,W) reference; view_pairs: list of (warped (C,H,W), mask (H,W)).
    Processed in static row bands so the SSIM temporaries stay band-sized; the
    reference statistics (mu_x, pool(x^2)) are computed once per band and shared
    by every view in view_pairs.  Returns one raw (un-normalized) scalar per view.
    """
    C, H, W = x.shape
    c1 = 0.01 ** 2
    c2 = 0.03 ** 2
    totals = [jnp.zeros((), jnp.float32) for _ in view_pairs]
    n_pooled = H - 2
    for r0 in range(0, n_pooled, row_band):
        nb = min(row_band, n_pooled - r0)
        hb = nb + 2
        xs = x[:, r0:r0 + hb, :]
        mu_x = _pool3(xs)
        sig_x = _pool3(xs * xs) - mu_x * mu_x
        lrow = lax.broadcasted_iota(jnp.int32, (hb, W), 0)
        lcol = lax.broadcasted_iota(jnp.int32, (hb, W), 1)
        valid = ((lrow < nb) & (lcol < (W - 2))).astype(jnp.float32)
        for i, (y, m) in enumerate(view_pairs):
            ys = y[:, r0:r0 + hb, :]
            ms = m[r0:r0 + hb, :]
            mu_y = _pool3(ys)
            sig_y = _pool3(ys * ys) - mu_y * mu_y
            sig_xy = _pool3(xs * ys) - mu_x * mu_y
            ssim_n = (2.0 * mu_x * mu_y + c1) * (2.0 * sig_xy + c2)
            ssim_d = (mu_x * mu_x + sig_x + c1) * (mu_y * mu_y + sig_y + c2)
            # EUP approximate reciprocal + one Newton step (ssim_d >= c1*c2 > 0);
            # keeps ~f32 accuracy while avoiding the full-precision divide sequence.
            r = pl.reciprocal(ssim_d, approx=True)
            r = r * (2.0 - ssim_d * r)
            ssim_map = (_pool3(ms) * valid) * jnp.clip(
                (1.0 - ssim_n * r) * 0.5, 0.0, 1.0)
            totals[i] = totals[i] + jnp.sum(ssim_map)
    return totals


# ----------------------------------------------------------------------------------
# Pallas kernels
# ----------------------------------------------------------------------------------

def view_loss_kernel(warp_ref, ref_ref, mask_ref, rec_ref, ssim_ref, *,
                     n_ssim, views_per_block, num_view_blocks, row_band,
                     inv_photo, inv_gx, inv_gy, inv_ssim):
    # warp_ref: [1,vp,C,H,W]; ref_ref: [1,C,H,W]; mask_ref: [1,vp,1,H,W]
    # rec_ref / ssim_ref: [1,vp,1,1] per-(batch,view) scalars.
    C, H, W = ref_ref.shape[-3:]
    vp = views_per_block
    r_img = ref_ref[...].reshape(C, H, W)
    w_all = warp_ref[...].reshape(vp, C, H, W)
    m_all = mask_ref[...].reshape(vp, H, W)

    row = lax.broadcasted_iota(jnp.int32, (H, W), 0)
    col = lax.broadcasted_iota(jnp.int32, (H, W), 1)
    valid_col = (col < (W - 1)).astype(jnp.float32)
    valid_row = (row < (H - 1)).astype(jnp.float32)

    # ---- reconstruction term: smooth-L1 photometric + x/y gradient losses, fused
    #      into a single per-pixel map (per-term 1/N baked in) -> one reduce per view.
    for v in range(vp):
        e = (w_all[v] - r_img) * m_all[v]
        ex = (_shift_w(e, 1) - e) * valid_col
        ey = (_shift_h(e, 1) - e) * valid_row
        rec_map = ((0.5 * inv_photo) * _huber(e)
                   + (0.5 * inv_gx) * _huber(ex)
                   + (0.5 * inv_gy) * _huber(ey))
        rec_ref[0, v] = jnp.sum(rec_map).reshape(1, 1)

    # ---- masked SSIM: only for the views the loss consumes (torch: view < 3) ------
    if num_view_blocks == 1:
        # All views of this batch element live in this block: static gating, and the
        # reference statistics inside _masked_ssim_sums are shared across SSIM views.
        n_local = min(n_ssim, vp)
        ssim_sums = _masked_ssim_sums(
            r_img, [(w_all[v], m_all[v]) for v in range(n_local)], row_band)
        for v in range(vp):
            if v < n_local:
                ssim_ref[0, v] = (ssim_sums[v] * inv_ssim).reshape(1, 1)
            else:
                ssim_ref[0, v] = jnp.zeros((1, 1), jnp.float32)
    else:
        # One view per block: dynamic gate on the global view index; discarded views
        # skip the whole SSIM section.
        ssim_ref[0, 0] = jnp.zeros((1, 1), jnp.float32)

        @pl.when(pl.program_id(1) < n_ssim)
        def _():
            s = _masked_ssim_sums(r_img, [(w_all[0], m_all[0])], row_band)[0]
            ssim_ref[0, 0] = (s * inv_ssim).reshape(1, 1)


def topk_smooth_kernel(rec_sc_ref, masks_ref, depth_ref, ref_ref,
                       rec_out_ref, smooth_out_ref, *, inv_npix, inv_sx, inv_sy):
    # rec_sc_ref: SMEM f32 [V-1]; masks_ref: [1,V-1,1,H,W]; depth_ref: [1,1,H,W];
    # ref_ref: [1,C,H,W]; outputs: per-batch (1,1,1) blocks (batch axis is parallel).
    vm1 = masks_ref.shape[1]
    C, H, W = ref_ref.shape[-3:]
    masks = masks_ref[...].reshape(vm1, H, W)
    im = ref_ref[...].reshape(C, H, W)
    d = depth_ref[...].reshape(H, W)

    # per-pixel min over views of (rec_v + 1e4*(1-mask_v))  == torch topk(neg, k=1)
    best = rec_sc_ref[0] + 10000.0 * (1.0 - masks[0])
    for v in range(1, vm1):
        best = jnp.minimum(best, rec_sc_ref[v] + 10000.0 * (1.0 - masks[v]))
    top_mask = (best < 10000.0).astype(jnp.float32)
    rec_out_ref[...] = (jnp.sum(best * top_mask) * inv_npix).reshape(1, 1, 1)

    # edge-aware depth smoothness (lambda_wt = 1.0); x/y terms fused -> one reduce.
    row = lax.broadcasted_iota(jnp.int32, (H, W), 0)
    col = lax.broadcasted_iota(jnp.int32, (H, W), 1)
    valid_col = (col < (W - 1)).astype(jnp.float32)
    valid_row = (row < (H - 1)).astype(jnp.float32)
    ddx = _shift_w(d, 1) - d
    ddy = _shift_h(d, 1) - d
    wx = jnp.exp(-jnp.mean(jnp.abs(_shift_w(im, 1) - im), axis=0))
    wy = jnp.exp(-jnp.mean(jnp.abs(_shift_h(im, 1) - im), axis=0))
    smooth_map = (inv_sx * jnp.abs(ddx * wx) * valid_col
                  + inv_sy * jnp.abs(ddy * wy) * valid_row)
    smooth_out_ref[...] = jnp.sum(smooth_map).reshape(1, 1, 1)


# ----------------------------------------------------------------------------------
# pallas_call wrappers
# ----------------------------------------------------------------------------------

def _vmem_limit_bytes(block_bytes):
    # Generation-aware VMEM budget: enough to double-buffer the largest block plus
    # band-sized SSIM temporaries, capped below the physical per-core capacity
    # (64 MiB/TC on v7x, 128 MiB on v5e/v6e).
    try:
        cap = int(pltpu.get_tpu_info().vmem_capacity_bytes)
    except Exception:  # interpret mode / older runtimes
        cap = 64 * 1024 * 1024
    want = max(32 * 1024 * 1024, 4 * int(block_bytes))
    return int(min(want, (cap * 3) // 4))


def run_view_loss(warped_all, ref_nchw, masks_all, n_ssim, fold_views):
    # warped_all: [B,V-1,C,H,W], ref_nchw: [B,C,H,W], masks_all: [B,V-1,1,H,W]
    # Returns (per-view rec scalars [V-1], total masked-SSIM loss scalar).
    B, vm1, C, H, W = warped_all.shape
    vp = vm1 if fold_views else 1
    nvb = vm1 // vp
    row_band = 256  # multiple of 8; degenerates to a single band at small H
    kern = functools.partial(
        view_loss_kernel,
        n_ssim=n_ssim, views_per_block=vp, num_view_blocks=nvb, row_band=row_band,
        inv_photo=1.0 / float(B * C * H * W),
        inv_gx=1.0 / float(B * C * H * (W - 1)),
        inv_gy=1.0 / float(B * C * (H - 1) * W),
        inv_ssim=1.0 / float(B * C * (H - 2) * (W - 2)),
    )
    out = jax.ShapeDtypeStruct((B, vm1, 1, 1), jnp.float32)
    block_bytes = 4 * H * W * (vp * C + C + vp)
    rec_parts, ssim_parts = pl.pallas_call(
        kern,
        grid=(B, nvb),
        in_specs=[
            pl.BlockSpec((1, vp, C, H, W), lambda b, v: (b, v, 0, 0, 0)),
            pl.BlockSpec((1, C, H, W), lambda b, v: (b, 0, 0, 0)),
            pl.BlockSpec((1, vp, 1, H, W), lambda b, v: (b, v, 0, 0, 0)),
        ],
        out_specs=(
            pl.BlockSpec((1, vp, 1, 1), lambda b, v: (b, v, 0, 0)),
            pl.BlockSpec((1, vp, 1, 1), lambda b, v: (b, v, 0, 0)),
        ),
        out_shape=(out, out),
        compiler_params=pltpu.CompilerParams(
            dimension_semantics=("parallel", "parallel"),
            vmem_limit_bytes=_vmem_limit_bytes(block_bytes),
        ),
    )(warped_all, ref_nchw, masks_all)
    rec_vals = jnp.sum(rec_parts.reshape(B, vm1), axis=0)   # per-view scalars
    ssim_loss = jnp.sum(ssim_parts)                         # gated views wrote 0
    return rec_vals, ssim_loss


def run_topk_smooth(rec_vals, masks_all, depth_nchw, ref_nchw):
    # rec_vals: [V-1] f32, masks_all: [B,V-1,1,H,W], depth_nchw: [B,1,H,W], ref: [B,C,H,W]
    B, vm1, _, H, W = masks_all.shape
    C = ref_nchw.shape[1]
    kern = functools.partial(
        topk_smooth_kernel,
        inv_npix=1.0 / float(B * H * W),
        inv_sx=1.0 / float(B * H * (W - 1)),
        inv_sy=1.0 / float(B * (H - 1) * W),
    )
    out = jax.ShapeDtypeStruct((B, 1, 1), jnp.float32)
    block_bytes = 4 * H * W * (vm1 + 1 + C)
    rec_b, smooth_b = pl.pallas_call(
        kern,
        grid=(B,),
        in_specs=[
            pl.BlockSpec(memory_space=pltpu.MemorySpace.SMEM),
            pl.BlockSpec((1, vm1, 1, H, W), lambda b: (b, 0, 0, 0, 0)),
            pl.BlockSpec((1, 1, H, W), lambda b: (b, 0, 0, 0)),
            pl.BlockSpec((1, C, H, W), lambda b: (b, 0, 0, 0)),
        ],
        out_specs=(
            pl.BlockSpec((1, 1, 1), lambda b: (b, 0, 0)),
            pl.BlockSpec((1, 1, 1), lambda b: (b, 0, 0)),
        ),
        out_shape=(out, out),
        compiler_params=pltpu.CompilerParams(
            dimension_semantics=("parallel",),
            vmem_limit_bytes=_vmem_limit_bytes(block_bytes),
        ),
    )(rec_vals, masks_all, depth_nchw, ref_nchw)
    return jnp.sum(rec_b), jnp.sum(smooth_b)


# ----------------------------------------------------------------------------------
# Plain-JAX glue: camera algebra + channels-first bilinear inverse warping
# ----------------------------------------------------------------------------------

def _meshgrid_abs(height, width):
    x = jnp.tile(jnp.arange(width, dtype=jnp.float32)[None, :], (height, 1))
    y = jnp.tile(jnp.arange(height, dtype=jnp.float32)[:, None], (1, width))
    ones = jnp.ones((height * width,), jnp.float32)
    return jnp.stack([x.reshape(-1), y.reshape(-1), ones], axis=0)  # [3, H*W]


def _bilinear_sample_nchw(im, x, y):
    # im: [B,C,H,W]; x,y: [B,H*W] absolute pixel coords. Returns NCHW warp + [B,1,H,W] mask.
    B, C, H, W = im.shape
    max_x = W - 1
    max_y = H - 1
    x0 = jnp.floor(x).astype(jnp.int32)
    x1 = x0 + 1
    y0 = jnp.floor(y).astype(jnp.int32)
    y1 = y0 + 1
    mask = ((x0 >= 0) & (x1 <= max_x) & (y0 >= 0) & (y1 <= max_y)).astype(jnp.float32)
    x0c = jnp.clip(x0, 0, max_x)
    x1c = jnp.clip(x1, 0, max_x)
    y0c = jnp.clip(y0, 0, max_y)
    y1c = jnp.clip(y1, 0, max_y)

    im_flat = im.reshape(B, C, H * W)

    def gather(yy, xx):
        idx = (yy * W + xx)[:, None, :]
        idx = jnp.broadcast_to(idx, (B, C, idx.shape[-1]))
        return jnp.take_along_axis(im_flat, idx, axis=2)       # [B,C,H*W]

    pa = gather(y0c, x0c)
    pb = gather(y1c, x0c)
    pc = gather(y0c, x1c)
    pd = gather(y1c, x1c)

    x1f = x1.astype(jnp.float32)
    y1f = y1.astype(jnp.float32)
    wa = ((x1f - x) * (y1f - y))[:, None, :]
    wb = ((x1f - x) * (1.0 - (y1f - y)))[:, None, :]
    wc = ((1.0 - (x1f - x)) * (y1f - y))[:, None, :]
    wd = ((1.0 - (x1f - x)) * (1.0 - (y1f - y)))[:, None, :]
    out = wa * pa + wb * pb + wc * pc + wd * pd                 # [B,C,H*W]
    return out.reshape(B, C, H, W), mask.reshape(B, 1, H, W)


def inverse_warping_nchw(img, left_cam, right_cam, depth):
    # img: [B,C,H,W]; cams: [B,2,4,4] (slot 0: extrinsic [R|t], slot 1: intrinsic K); depth: [B,H,W]
    B, C, H, W = img.shape
    R_left = left_cam[:, 0, 0:3, 0:3]
    R_right = right_cam[:, 0, 0:3, 0:3]
    t_left = left_cam[:, 0, 0:3, 3:4]
    t_right = right_cam[:, 0, 0:3, 3:4]
    K_left = left_cam[:, 1, 0:3, 0:3]
    K_left_inv = jnp.linalg.inv(K_left)

    R_rel = jnp.matmul(R_right, jnp.transpose(R_left, (0, 2, 1)))
    t_rel = t_right - jnp.matmul(R_rel, t_left)
    filler = jnp.tile(jnp.array([[[0.0, 0.0, 0.0, 1.0]]], jnp.float32), (B, 1, 1))
    transform_mat = jnp.concatenate(
        [jnp.concatenate([R_rel, t_rel], axis=2), filler], axis=1)           # [B,4,4]

    depth_flat = depth.reshape(B, 1, H * W)
    grid = jnp.tile(_meshgrid_abs(H, W)[None], (B, 1, 1))                     # [B,3,HW]
    cam_coords = jnp.matmul(K_left_inv, grid) * depth_flat                    # [B,3,HW]
    ones = jnp.ones((B, 1, H * W), jnp.float32)
    cam_coords_hom = jnp.concatenate([cam_coords, ones], axis=1)              # [B,4,HW]

    K_hom = jnp.concatenate(
        [jnp.concatenate([K_left, jnp.zeros((B, 3, 1), jnp.float32)], axis=2), filler], axis=1)
    proj = jnp.matmul(K_hom, transform_mat)                                   # [B,4,4]
    pcoords = jnp.matmul(proj, cam_coords_hom)                                # [B,4,HW]
    x = pcoords[:, 0, :] / (pcoords[:, 2, :] + 1e-10)
    y = pcoords[:, 1, :] / (pcoords[:, 2, :] + 1e-10)
    return _bilinear_sample_nchw(img, x, y)


# ----------------------------------------------------------------------------------
# UnSupLoss_07 forward
# ----------------------------------------------------------------------------------

def unsup_loss_07(imgs, cams, depth, stage_idx, fold_views=None):
    """imgs: [B,V,C,H,W] f32, cams: [B,V,2,4,4] f32, depth: [B,h,w] f32 (stage resolution)."""
    B, V, C, H, W = imgs.shape
    stride = 4 if stage_idx == 0 else (2 if stage_idx == 1 else 1)
    # nearest F.interpolate(scale_factor=1/stride): exact for H,W divisible by stride
    imgs_s = imgs[:, :, :, ::stride, ::stride]
    h, w = imgs_s.shape[3], imgs_s.shape[4]

    ref_img_nchw = imgs_s[:, 0]                                 # [B,C,h,w]
    ref_cam = cams[:, 0]

    warped_list = []
    mask_list = []
    for view in range(1, V):
        warped_v, mask_v = inverse_warping_nchw(
            imgs_s[:, view], ref_cam, cams[:, view], depth)     # NCHW, no transposes
        warped_list.append(warped_v)                            # [B,C,h,w]
        mask_list.append(mask_v)                                # [B,1,h,w]
    warped_all = jnp.stack(warped_list, axis=1)                 # [B,V-1,C,h,w] batch-major
    masks_all = jnp.stack(mask_list, axis=1)                    # [B,V-1,1,h,w]

    if fold_views is None:
        # Fold all views into one block when the per-batch working set is small
        # (stage 0/1 and demo shapes): the view-loss kernel is grid-overhead bound
        # there. Keep one view per block at full resolution.
        fold_views = (V - 1) * C * h * w * 4 <= (2 << 20)

    n_ssim = min(2, V - 1)                                      # torch: only views 1 and 2
    rec_vals, ssim_loss = run_view_loss(
        warped_all, ref_img_nchw, masks_all, n_ssim, fold_views)

    reconstr_loss, smooth_loss = run_topk_smooth(
        rec_vals, masks_all, depth[:, None, :, :], ref_img_nchw)

    return 12.0 * reconstr_loss + 6.0 * ssim_loss + 0.19 * smooth_loss


# ----------------------------------------------------------------------------------
# Demo
# ----------------------------------------------------------------------------------

def _make_cams(B, V, h, w):
    f = 0.8 * w
    cx, cy = (w - 1) / 2.0, (h - 1) / 2.0
    K = jnp.array([[f, 0.0, cx], [0.0, f, cy], [0.0, 0.0, 1.0]], jnp.float32)
    cam_list = []
    for v in range(V):
        ang = 0.02 * v
        ca, sa = math.cos(ang), math.sin(ang)
        R = jnp.array([[ca, 0.0, sa], [0.0, 1.0, 0.0], [-sa, 0.0, ca]], jnp.float32)
        t = jnp.array([0.05 * v, -0.03 * v, 0.02 * v], jnp.float32).reshape(3, 1)
        extr = jnp.concatenate(
            [jnp.concatenate([R, t], axis=1),
             jnp.array([[0.0, 0.0, 0.0, 1.0]], jnp.float32)], axis=0)         # [4,4]
        intr = jnp.zeros((4, 4), jnp.float32).at[:3, :3].set(K).at[3, 3].set(1.0)
        cam_list.append(jnp.stack([extr, intr], axis=0))                      # [2,4,4]
    cams = jnp.stack(cam_list, axis=0)                                        # [V,2,4,4]
    return jnp.tile(cams[None], (B, 1, 1, 1, 1))                              # [B,V,2,4,4]


if __name__ == "__main__":
    key = jax.random.PRNGKey(0)
    B, V, C, H, W = 2, 3, 3, 16, 128   # W=128 keeps the lane axis fully dense
    stage_idx = 2                      # no interpolation; depth resolution matches H, W

    k1, k2 = jax.random.split(key)
    imgs = jax.random.uniform(k1, (B, V, C, H, W), dtype=jnp.float32)
    depth = 1.2 + 0.6 * jax.random.uniform(k2, (B, H, W), dtype=jnp.float32)
    cams = _make_cams(B, V, H, W)

    loss_fn = jax.jit(unsup_loss_07, static_argnums=(3, 4))
    # Auto path -> folded-views kernel (small-resolution tiling).
    loss = loss_fn(imgs, cams, depth, stage_idx, None)
    # Forced per-view path -> dynamic SSIM gating + banded pooling (full-res tiling).
    loss_pv = loss_fn(imgs, cams, depth, stage_idx, False)
    jax.block_until_ready((loss, loss_pv))

    assert loss.shape == () and bool(jnp.isfinite(loss))
    assert loss_pv.shape == () and bool(jnp.isfinite(loss_pv))
    assert bool(jnp.allclose(loss, loss_pv, rtol=1e-3, atol=1e-5))
    print("KERNEL_OK")
</pallas_src>

<mosaic_0001>
module attributes {stable_mosaic.version = 11 : i64} {
  func.func @topk_smooth_kernel(%arg0: i32, %arg1: memref<2xf32, #tpu.memory_space<smem>>, %arg2: memref<1x2x1x16x128xf32, #tpu.memory_space<vmem>>, %arg3: memref<1x1x16x128xf32, #tpu.memory_space<vmem>>, %arg4: memref<1x3x16x128xf32, #tpu.memory_space<vmem>>, %arg5: memref<1x1x1xf32, #tpu.memory_space<vmem>>, %arg6: memref<1x1x1xf32, #tpu.memory_space<vmem>>) attributes {dimension_semantics = [#tpu.dimension_semantics<parallel>], iteration_bounds = array<i64: 2>, scalar_prefetch = 0 : i64, scratch_operands = 0 : i64, tpu.core_type = #tpu.core_type<tc>, window_params = [{transform_indices = @transform_0, window_bounds = array<i64: 2>}, {transform_indices = @transform_1, window_bounds = array<i64: 1, 2, 1, 16, 128>}, {transform_indices = @transform_2, window_bounds = array<i64: 1, 1, 16, 128>}, {transform_indices = @transform_3, window_bounds = array<i64: 1, 3, 16, 128>}, {transform_indices = @transform_4, window_bounds = array<i64: 1, 1, 1>}, {transform_indices = @transform_5, window_bounds = array<i64: 1, 1, 1>}]} {
    %c0 = arith.constant 0 : index
    %c0_0 = arith.constant 0 : index
    %c0_1 = arith.constant 0 : index
    %c0_2 = arith.constant 0 : index
    %c0_3 = arith.constant 0 : index
    %0 = vector.load %arg2[%c0, %c0_0, %c0_1, %c0_2, %c0_3] : memref<1x2x1x16x128xf32, #tpu.memory_space<vmem>>, vector<1x2x1x16x128xf32>
    %1 = vector.shape_cast %0 : vector<1x2x1x16x128xf32> to vector<2x16x128xf32>
    %c0_4 = arith.constant 0 : index
    %c0_5 = arith.constant 0 : index
    %c0_6 = arith.constant 0 : index
    %c0_7 = arith.constant 0 : index
    %2 = vector.load %arg4[%c0_4, %c0_5, %c0_6, %c0_7] : memref<1x3x16x128xf32, #tpu.memory_space<vmem>>, vector<1x3x16x128xf32>
    %3 = vector.shape_cast %2 : vector<1x3x16x128xf32> to vector<3x16x128xf32>
    %c0_8 = arith.constant 0 : index
    %c0_9 = arith.constant 0 : index
    %c0_10 = arith.constant 0 : index
    %c0_11 = arith.constant 0 : index
    %4 = vector.load %arg3[%c0_8, %c0_9, %c0_10, %c0_11] : memref<1x1x16x128xf32, #tpu.memory_space<vmem>>, vector<1x1x16x128xf32>
    %5 = vector.shape_cast %4 : vector<1x1x16x128xf32> to vector<16x128xf32>
    %c0_12 = arith.constant 0 : index
    %6 = memref.load %arg1[%c0_12] : memref<2xf32, #tpu.memory_space<smem>>
    %7 = vector.extract_strided_slice %1 {offsets = [0, 0, 0], sizes = [1, 16, 128], strides = [1, 1, 1]} : vector<2x16x128xf32> to vector<1x16x128xf32>
    %8 = vector.shape_cast %7 : vector<1x16x128xf32> to vector<16x128xf32>
    %cst = arith.constant 1.000000e+00 : f32
    %9 = vector.broadcast %cst : f32 to vector<16x128xf32>
    %10 = arith.subf %9, %8 : vector<16x128xf32>
    %cst_13 = arith.constant 1.000000e+04 : f32
    %11 = vector.broadcast %cst_13 : f32 to vector<16x128xf32>
    %12 = arith.mulf %11, %10 : vector<16x128xf32>
    %13 = vector.broadcast %6 : f32 to vector<16x128xf32>
    %14 = arith.addf %13, %12 : vector<16x128xf32>
    %c1 = arith.constant 1 : index
    %15 = memref.load %arg1[%c1] : memref<2xf32, #tpu.memory_space<smem>>
    %16 = vector.extract_strided_slice %1 {offsets = [1, 0, 0], sizes = [1, 16, 128], strides = [1, 1, 1]} : vector<2x16x128xf32> to vector<1x16x128xf32>
    %17 = vector.shape_cast %16 : vector<1x16x128xf32> to vector<16x128xf32>
    %cst_14 = arith.constant 1.000000e+00 : f32
    %18 = vector.broadcast %cst_14 : f32 to vector<16x128xf32>
    %19 = arith.subf %18, %17 : vector<16x128xf32>
    %cst_15 = arith.constant 1.000000e+04 : f32
    %20 = vector.broadcast %cst_15 : f32 to vector<16x128xf32>
    %21 = arith.mulf %20, %19 : vector<16x128xf32>
    %22 = vector.broadcast %15 : f32 to vector<16x128xf32>
    %23 = arith.addf %22, %21 : vector<16x128xf32>
    %24 = arith.minimumf %14, %23 : vector<16x128xf32>
    %cst_16 = arith.constant 1.000000e+04 : f32
    %25 = vector.broadcast %cst_16 : f32 to vector<16x128xf32>
    %26 = arith.cmpf olt, %24, %25 : vector<16x128xf32>
    %27 = arith.extui %26 : vector<16x128xi1> to vector<16x128xi32>
    %28 = arith.sitofp %27 : vector<16x128xi32> to vector<16x128xf32>
    %29 = arith.mulf %24, %28 : vector<16x128xf32>
    %30 = vector.shape_cast %29 : vector<16x128xf32> to vector<1x16x128xf32>
    %cst_17 = arith.constant dense<0.000000e+00> : vector<1xf32>
    %31 = vector.multi_reduction <add>, %30, %cst_17 [1, 2] : vector<1x16x128xf32> to vector<1xf32>
    %32 = vector.shape_cast %31 : vector<1xf32> to vector<1x1x1xf32>
    %33 = vector.extract %32[0, 0, 0] : f32 from vector<1x1x1xf32>
    %cst_18 = arith.constant 2.44140625E-4 : f32
    %34 = arith.mulf %33, %cst_18 : f32
    %35 = vector.broadcast %34 : f32 to vector<1x1x1xf32>
    %c0_19 = arith.constant 0 : index
    %c0_20 = arith.constant 0 : index
    %c0_21 = arith.constant 0 : index
    %36 = vector.load %arg5[%c0_19, %c0_20, %c0_21] : memref<1x1x1xf32, #tpu.memory_space<vmem>>, vector<1x1x1xf32>
    tpu.vector_store %arg5[%c0_19, %c0_20, %c0_21], %35 {strides = array<i32>} : memref<1x1x1xf32, #tpu.memory_space<vmem>>, vector<1x1x1xf32>,
    %37 = tpu.iota {dimensions = array<i32: 0>} : vector<16x128xi32>
    %38 = tpu.iota {dimensions = array<i32: 1>} : vector<16x128xi32>
    %c127_i32 = arith.constant 127 : i32
    %39 = vector.broadcast %c127_i32 : i32 to vector<16x128xi32>
    %40 = arith.cmpi slt, %38, %39 : vector<16x128xi32>
    %41 = arith.extui %40 : vector<16x128xi1> to vector<16x128xi32>
    %42 = arith.sitofp %41 : vector<16x128xi32> to vector<16x128xf32>
    %c15_i32 = arith.constant 15 : i32
    %43 = vector.broadcast %c15_i32 : i32 to vector<16x128xi32>
    %44 = arith.cmpi slt, %37, %43 : vector<16x128xi32>
    %45 = arith.extui %44 : vector<16x128xi1> to vector<16x128xi32>
    %46 = arith.sitofp %45 : vector<16x128xi32> to vector<16x128xf32>
    %c127_i32_22 = arith.constant 127 : i32
    %47 = tpu.dynamic_rotate %5 by %c127_i32_22 dim 1 : vector<16x128xf32>, i32 -> vector<16x128xf32>
    %48 = arith.subf %47, %5 : vector<16x128xf32>
    %c15_i32_23 = arith.constant 15 : i32
    %49 = tpu.dynamic_rotate %5 by %c15_i32_23 dim 0 : vector<16x128xf32>, i32 -> vector<16x128xf32>
    %50 = arith.subf %49, %5 : vector<16x128xf32>
    %c127_i32_24 = arith.constant 127 : i32
    %51 = tpu.dynamic_rotate %3 by %c127_i32_24 dim 2 : vector<3x16x128xf32>, i32 -> vector<3x16x128xf32>
    %52 = arith.subf %51, %3 : vector<3x16x128xf32>
    %53 = math.absf %52 : vector<3x16x128xf32>
    %cst_25 = arith.constant dense<0.000000e+00> : vector<16x128xf32>
    %54 = vector.multi_reduction <add>, %53, %cst_25 [0] : vector<3x16x128xf32> to vector<16x128xf32>
    %cst_26 = arith.constant 3.000000e+00 : f32
    %55 = vector.broadcast %cst_26 : f32 to vector<16x128xf32>
    %56 = arith.divf %54, %55 : vector<16x128xf32>
    %cst_27 = arith.constant 0.000000e+00 : f32
    %57 = vector.broadcast %cst_27 : f32 to vector<16x128xf32>
    %58 = arith.subf %57, %56 : vector<16x128xf32>
    %59 = math.exp %58 : vector<16x128xf32>
    %c15_i32_28 = arith.constant 15 : i32
    %60 = tpu.dynamic_rotate %3 by %c15_i32_28 dim 1 : vector<3x16x128xf32>, i32 -> vector<3x16x128xf32>
    %61 = arith.subf %60, %3 : vector<3x16x128xf32>
    %62 = math.absf %61 : vector<3x16x128xf32>
    %cst_29 = arith.constant dense<0.000000e+00> : vector<16x128xf32>
    %63 = vector.multi_reduction <add>, %62, %cst_29 [0] : vector<3x16x128xf32> to vector<16x128xf32>
    %cst_30 = arith.constant 3.000000e+00 : f32
    %64 = vector.broadcast %cst_30 : f32 to vector<16x128xf32>
    %65 = arith.divf %63, %64 : vector<16x128xf32>
    %cst_31 = arith.constant 0.000000e+00 : f32
    %66 = vector.broadcast %cst_31 : f32 to vector<16x128xf32>
    %67 = arith.subf %66, %65 : vector<16x128xf32>
    %68 = math.exp %67 : vector<16x128xf32>
    %69 = arith.mulf %48, %59 : vector<16x128xf32>
    %70 = math.absf %69 : vector<16x128xf32>
    %cst_32 = arith.constant 2.460630e-04 : f32
    %71 = vector.broadcast %cst_32 : f32 to vector<16x128xf32>
    %72 = arith.mulf %71, %70 : vector<16x128xf32>
    %73 = arith.mulf %72, %42 : vector<16x128xf32>
    %74 = arith.mulf %50, %68 : vector<16x128xf32>
    %75 = math.absf %74 : vector<16x128xf32>
    %cst_33 = arith.constant 2.6041668E-4 : f32
    %76 = vector.broadcast %cst_33 : f32 to vector<16x128xf32>
    %77 = arith.mulf %76, %75 : vector<16x128xf32>
    %78 = arith.mulf %77, %46 : vector<16x128xf32>
    %79 = arith.addf %73, %78 : vector<16x128xf32>
    %80 = vector.shape_cast %79 : vector<16x128xf32> to vector<1x16x128xf32>
    %cst_34 = arith.constant dense<0.000000e+00> : vector<1xf32>
    %81 = vector.multi_reduction <add>, %80, %cst_34 [1, 2] : vector<1x16x128xf32> to vector<1xf32>
    %82 = vector.shape_cast %81 : vector<1xf32> to vector<1x1x1xf32>
    %83 = vector.extract %82[0, 0, 0] : f32 from vector<1x1x1xf32>
    %84 = vector.broadcast %83 : f32 to vector<1x1x1xf32>
    %c0_35 = arith.constant 0 : index
    %c0_36 = arith.constant 0 : index
    %c0_37 = arith.constant 0 : index
    %85 = vector.load %arg6[%c0_35, %c0_36, %c0_37] : memref<1x1x1xf32, #tpu.memory_space<vmem>>, vector<1x1x1xf32>
    tpu.vector_store %arg6[%c0_35, %c0_36, %c0_37], %84 {strides = array<i32>} : memref<1x1x1xf32, #tpu.memory_space<vmem>>, vector<1x1x1xf32>,
    return
  }
  func.func @transform_0(%arg0: i32) -> i32 {
    %c0_i32 = arith.constant 0 : i32
    %c0_i32_0 = arith.constant 0 : i32
    return %c0_i32 : i32
  }
  func.func @transform_1(%arg0: i32) -> (i32, i32, i32, i32, i32) {
    %c0_i32 = arith.constant 0 : i32
    %c0_i32_0 = arith.constant 0 : i32
    %c0_i32_1 = arith.constant 0 : i32
    %c0_i32_2 = arith.constant 0 : i32
    %c0_i32_3 = arith.constant 0 : i32
    return %arg0, %c0_i32, %c0_i32_0, %c0_i32_1, %c0_i32_2 : i32, i32, i32, i32, i32
  }
  func.func @transform_2(%arg0: i32) -> (i32, i32, i32, i32) {
    %c0_i32 = arith.constant 0 : i32
    %c0_i32_0 = arith.constant 0 : i32
    %c0_i32_1 = arith.constant 0 : i32
    %c0_i32_2 = arith.constant 0 : i32
    return %arg0, %c0_i32, %c0_i32_0, %c0_i32_1 : i32, i32, i32, i32
  }
  func.func @transform_3(%arg0: i32) -> (i32, i32, i32, i32) {
    %c0_i32 = arith.constant 0 : i32
    %c0_i32_0 = arith.constant 0 : i32
    %c0_i32_1 = arith.constant 0 : i32
    %c0_i32_2 = arith.constant 0 : i32
    return %arg0, %c0_i32, %c0_i32_0, %c0_i32_1 : i32, i32, i32, i32
  }
  func.func @transform_4(%arg0: i32) -> (i32, i32, i32) {
    %c0_i32 = arith.constant 0 : i32
    %c0_i32_0 = arith.constant 0 : i32
    %c0_i32_1 = arith.constant 0 : i32
    return %arg0, %c0_i32, %c0_i32_0 : i32, i32, i32
  }
  func.func @transform_5(%arg0: i32) -> (i32, i32, i32) {
    %c0_i32 = arith.constant 0 : i32
    %c0_i32_0 = arith.constant 0 : i32
    %c0_i32_1 = arith.constant 0 : i32
    return %arg0, %c0_i32, %c0_i32_0 : i32, i32, i32
  }
}

module attributes {stable_mosaic.version = 11 : i64} {
  func.func @view_loss_kernel(%arg0: i32, %arg1: i32, %arg2: memref<1x2x3x16x128xf32, #tpu.memory_space<vmem>>, %arg3: memref<1x3x16x128xf32, #tpu.memory_space<vmem>>, %arg4: memref<1x2x1x16x128xf32, #tpu.memory_space<vmem>>, %arg5: memref<1x2x1x1xf32, #tpu.memory_space<vmem>>, %arg6: memref<1x2x1x1xf32, #tpu.memory_space<vmem>>) attributes {dimension_semantics = [#tpu.dimension_semantics<parallel>, #tpu.dimension_semantics<parallel>], iteration_bounds = array<i64: 2, 1>, scalar_prefetch = 0 : i64, scratch_operands = 0 : i64, tpu.core_type = #tpu.core_type<tc>, window_params = [{transform_indices = @transform_0, window_bounds = array<i64: 1, 2, 3, 16, 128>}, {transform_indices = @transform_1, window_bounds = array<i64: 1, 3, 16, 128>}, {transform_indices = @transform_2, window_bounds = array<i64: 1, 2, 1, 16, 128>}, {transform_indices = @transform_3, window_bounds = array<i64: 1, 2, 1, 1>}, {transform_indices = @transform_4, window_bounds = array<i64: 1, 2, 1, 1>}]} {
    %c0 = arith.constant 0 : index
    %c0_0 = arith.constant 0 : index
    %c0_1 = arith.constant 0 : index
    %c0_2 = arith.constant 0 : index
    %0 = vector.load %arg3[%c0, %c0_0, %c0_1, %c0_2] : memref<1x3x16x128xf32, #tpu.memory_space<vmem>>, vector<1x3x16x128xf32>
    %1 = vector.shape_cast %0 : vector<1x3x16x128xf32> to vector<3x16x128xf32>
    %c0_3 = arith.constant 0 : index
    %c0_4 = arith.constant 0 : index
    %c0_5 = arith.constant 0 : index
    %c0_6 = arith.constant 0 : index
    %c0_7 = arith.constant 0 : index
    %2 = vector.load %arg2[%c0_3, %c0_4, %c0_5, %c0_6, %c0_7] : memref<1x2x3x16x128xf32, #tpu.memory_space<vmem>>, vector<1x2x3x16x128xf32>
    %3 = vector.shape_cast %2 : vector<1x2x3x16x128xf32> to vector<2x3x16x128xf32>
    %c0_8 = arith.constant 0 : index
    %c0_9 = arith.constant 0 : index
    %c0_10 = arith.constant 0 : index
    %c0_11 = arith.constant 0 : index
    %c0_12 = arith.constant 0 : index
    %4 = vector.load %arg4[%c0_8, %c0_9, %c0_10, %c0_11, %c0_12] : memref<1x2x1x16x128xf32, #tpu.memory_space<vmem>>, vector<1x2x1x16x128xf32>
    %5 = vector.shape_cast %4 : vector<1x2x1x16x128xf32> to vector<2x16x128xf32>
    %6 = tpu.iota {dimensions = array<i32: 0>} : vector<16x128xi32>
    %7 = tpu.iota {dimensions = array<i32: 1>} : vector<16x128xi32>
    %c127_i32 = arith.constant 127 : i32
    %8 = vector.broadcast %c127_i32 : i32 to vector<16x128xi32>
    %9 = arith.cmpi slt, %7, %8 : vector<16x128xi32>
    %10 = arith.extui %9 : vector<16x128xi1> to vector<16x128xi32>
    %11 = arith.sitofp %10 : vector<16x128xi32> to vector<16x128xf32>
    %c15_i32 = arith.constant 15 : i32
    %12 = vector.broadcast %c15_i32 : i32 to vector<16x128xi32>
    %13 = arith.cmpi slt, %6, %12 : vector<16x128xi32>
    %14 = arith.extui %13 : vector<16x128xi1> to vector<16x128xi32>
    %15 = arith.sitofp %14 : vector<16x128xi32> to vector<16x128xf32>
    %16 = vector.extract_strided_slice %3 {offsets = [0, 0, 0, 0], sizes = [1, 3, 16, 128], strides = [1, 1, 1, 1]} : vector<2x3x16x128xf32> to vector<1x3x16x128xf32>
    %17 = vector.shape_cast %16 : vector<1x3x16x128xf32> to vector<3x16x128xf32>
    %18 = arith.subf %17, %1 : vector<3x16x128xf32>
    %19 = vector.extract_strided_slice %5 {offsets = [0, 0, 0], sizes = [1, 16, 128], strides = [1, 1, 1]} : vector<2x16x128xf32> to vector<1x16x128xf32>
    %20 = vector.shape_cast %19 : vector<1x16x128xf32> to vector<16x128xf32>
    %21 = vector.shape_cast %20 : vector<16x128xf32> to vector<1x16x128xf32>
    %22 = vector.broadcast %21 : vector<1x16x128xf32> to vector<3x16x128xf32>
    %23 = arith.mulf %18, %22 : vector<3x16x128xf32>
    %c127_i32_13 = arith.constant 127 : i32
    %24 = tpu.dynamic_rotate %23 by %c127_i32_13 dim 2 : vector<3x16x128xf32>, i32 -> vector<3x16x128xf32>
    %25 = arith.subf %24, %23 : vector<3x16x128xf32>
    %26 = vector.shape_cast %11 : vector<16x128xf32> to vector<1x16x128xf32>
    %27 = vector.broadcast %26 : vector<1x16x128xf32> to vector<3x16x128xf32>
    %28 = arith.mulf %25, %27 : vector<3x16x128xf32>
    %c15_i32_14 = arith.constant 15 : i32
    %29 = tpu.dynamic_rotate %23 by %c15_i32_14 dim 1 : vector<3x16x128xf32>, i32 -> vector<3x16x128xf32>
    %30 = arith.subf %29, %23 : vector<3x16x128xf32>
    %31 = vector.shape_cast %15 : vector<16x128xf32> to vector<1x16x128xf32>
    %32 = vector.broadcast %31 : vector<1x16x128xf32> to vector<3x16x128xf32>
    %33 = arith.mulf %30, %32 : vector<3x16x128xf32>
    %34 = math.absf %23 : vector<3x16x128xf32>
    %cst = arith.constant 1.000000e+00 : f32
    %35 = vector.broadcast %cst : f32 to vector<3x16x128xf32>
    %36 = arith.cmpf olt, %34, %35 : vector<3x16x128xf32>
    %cst_15 = arith.constant 5.000000e-01 : f32
    %37 = vector.broadcast %cst_15 : f32 to vector<3x16x128xf32>
    %38 = arith.mulf %37, %23 : vector<3x16x128xf32>
    %39 = arith.mulf %38, %23 : vector<3x16x128xf32>
    %cst_16 = arith.constant 5.000000e-01 : f32
    %40 = vector.broadcast %cst_16 : f32 to vector<3x16x128xf32>
    %41 = arith.subf %34, %40 : vector<3x16x128xf32>
    %42 = arith.select %36, %39, %41 : vector<3x16x128xi1>, vector<3x16x128xf32>
    %cst_17 = arith.constant 4.06901054E-5 : f32
    %43 = vector.broadcast %cst_17 : f32 to vector<3x16x128xf32>
    %44 = arith.mulf %43, %42 : vector<3x16x128xf32>
    %45 = math.absf %28 : vector<3x16x128xf32>
    %cst_18 = arith.constant 1.000000e+00 : f32
    %46 = vector.broadcast %cst_18 : f32 to vector<3x16x128xf32>
    %47 = arith.cmpf olt, %45, %46 : vector<3x16x128xf32>
    %cst_19 = arith.constant 5.000000e-01 : f32
    %48 = vector.broadcast %cst_19 : f32 to vector<3x16x128xf32>
    %49 = arith.mulf %48, %28 : vector<3x16x128xf32>
    %50 = arith.mulf %49, %28 : vector<3x16x128xf32>
    %cst_20 = arith.constant 5.000000e-01 : f32
    %51 = vector.broadcast %cst_20 : f32 to vector<3x16x128xf32>
    %52 = arith.subf %45, %51 : vector<3x16x128xf32>
    %53 = arith.select %47, %50, %52 : vector<3x16x128xi1>, vector<3x16x128xf32>
    %cst_21 = arith.constant 4.101050e-05 : f32
    %54 = vector.broadcast %cst_21 : f32 to vector<3x16x128xf32>
    %55 = arith.mulf %54, %53 : vector<3x16x128xf32>
    %56 = arith.addf %44, %55 : vector<3x16x128xf32>
    %57 = math.absf %33 : vector<3x16x128xf32>
    %cst_22 = arith.constant 1.000000e+00 : f32
    %58 = vector.broadcast %cst_22 : f32 to vector<3x16x128xf32>
    %59 = arith.cmpf olt, %57, %58 : vector<3x16x128xf32>
    %cst_23 = arith.constant 5.000000e-01 : f32
    %60 = vector.broadcast %cst_23 : f32 to vector<3x16x128xf32>
    %61 = arith.mulf %60, %33 : vector<3x16x128xf32>
    %62 = arith.mulf %61, %33 : vector<3x16x128xf32>
    %cst_24 = arith.constant 5.000000e-01 : f32
    %63 = vector.broadcast %cst_24 : f32 to vector<3x16x128xf32>
    %64 = arith.subf %57, %63 : vector<3x16x128xf32>
    %65 = arith.select %59, %62, %64 : vector<3x16x128xi1>, vector<3x16x128xf32>
    %cst_25 = arith.constant 4.34027788E-5 : f32
    %66 = vector.broadcast %cst_25 : f32 to vector<3x16x128xf32>
    %67 = arith.mulf %66, %65 : vector<3x16x128xf32>
    %68 = arith.addf %56, %67 : vector<3x16x128xf32>
    %69 = vector.shape_cast %68 : vector<3x16x128xf32> to vector<1x3x16x128xf32>
    %cst_26 = arith.constant dense<0.000000e+00> : vector<1xf32>
    %70 = vector.multi_reduction <add>, %69, %cst_26 [1, 2, 3] : vector<1x3x16x128xf32> to vector<1xf32>
    %71 = vector.shape_cast %70 : vector<1xf32> to vector<1x1x1x1xf32>
    %72 = vector.extract %71[0, 0, 0, 0] : f32 from vector<1x1x1x1xf32>
    %73 = vector.broadcast %72 : f32 to vector<1x1xf32>
    %c0_27 = arith.constant 0 : index
    %c0_28 = arith.constant 0 : index
    %c0_29 = arith.constant 0 : index
    %c0_30 = arith.constant 0 : index
    %74 = vector.load %arg5[%c0_27, %c0_28, %c0_29, %c0_30] : memref<1x2x1x1xf32, #tpu.memory_space<vmem>>, vector<1x1x1x1xf32>
    %75 = vector.shape_cast %74 : vector<1x1x1x1xf32> to vector<1x1xf32>
    %76 = vector.shape_cast %73 : vector<1x1xf32> to vector<1x1x1x1xf32>
    tpu.vector_store %arg5[%c0_27, %c0_28, %c0_29, %c0_30], %76 {strides = array<i32>} : memref<1x2x1x1xf32, #tpu.memory_space<vmem>>, vector<1x1x1x1xf32>,
    %77 = vector.extract_strided_slice %3 {offsets = [1, 0, 0, 0], sizes = [1, 3, 16, 128], strides = [1, 1, 1, 1]} : vector<2x3x16x128xf32> to vector<1x3x16x128xf32>
    %78 = vector.shape_cast %77 : vector<1x3x16x128xf32> to vector<3x16x128xf32>
    %79 = arith.subf %78, %1 : vector<3x16x128xf32>
    %80 = vector.extract_strided_slice %5 {offsets = [1, 0, 0], sizes = [1, 16, 128], strides = [1, 1, 1]} : vector<2x16x128xf32> to vector<1x16x128xf32>
    %81 = vector.shape_cast %80 : vector<1x16x128xf32> to vector<16x128xf32>
    %82 = vector.shape_cast %81 : vector<16x128xf32> to vector<1x16x128xf32>
    %83 = vector.broadcast %82 : vector<1x16x128xf32> to vector<3x16x128xf32>
    %84 = arith.mulf %79, %83 : vector<3x16x128xf32>
    %c127_i32_31 = arith.constant 127 : i32
    %85 = tpu.dynamic_rotate %84 by %c127_i32_31 dim 2 : vector<3x16x128xf32>, i32 -> vector<3x16x128xf32>
    %86 = arith.subf %85, %84 : vector<3x16x128xf32>
    %87 = vector.shape_cast %11 : vector<16x128xf32> to vector<1x16x128xf32>
    %88 = vector.broadcast %87 : vector<1x16x128xf32> to vector<3x16x128xf32>
    %89 = arith.mulf %86, %88 : vector<3x16x128xf32>
    %c15_i32_32 = arith.constant 15 : i32
    %90 = tpu.dynamic_rotate %84 by %c15_i32_32 dim 1 : vector<3x16x128xf32>, i32 -> vector<3x16x128xf32>
    %91 = arith.subf %90, %84 : vector<3x16x128xf32>
    %92 = vector.shape_cast %15 : vector<16x128xf32> to vector<1x16x128xf32>
    %93 = vector.broadcast %92 : vector<1x16x128xf32> to vector<3x16x128xf32>
    %94 = arith.mulf %91, %93 : vector<3x16x128xf32>
    %95 = math.absf %84 : vector<3x16x128xf32>
    %cst_33 = arith.constant 1.000000e+00 : f32
    %96 = vector.broadcast %cst_33 : f32 to vector<3x16x128xf32>
    %97 = arith.cmpf olt, %95, %96 : vector<3x16x128xf32>
    %cst_34 = arith.constant 5.000000e-01 : f32
    %98 = vector.broadcast %cst_34 : f32 to vector<3x16x128xf32>
    %99 = arith.mulf %98, %84 : vector<3x16x128xf32>
    %100 = arith.mulf %99, %84 : vector<3x16x128xf32>
    %cst_35 = arith.constant 5.000000e-01 : f32
    %101 = vector.broadcast %cst_35 : f32 to vector<3x16x128xf32>
    %102 = arith.subf %95, %101 : vector<3x16x128xf32>
    %103 = arith.select %97, %100, %102 : vector<3x16x128xi1>, vector<3x16x128xf32>
    %cst_36 = arith.constant 4.06901054E-5 : f32
    %104 = vector.broadcast %cst_36 : f32 to vector<3x16x128xf32>
    %105 = arith.mulf %104, %103 : vector<3x16x128xf32>
    %106 = math.absf %89 : vector<3x16x128xf32>
    %cst_37 = arith.constant 1.000000e+00 : f32
    %107 = vector.broadcast %cst_37 : f32 to vector<3x16x128xf32>
    %108 = arith.cmpf olt, %106, %107 : vector<3x16x128xf32>
    %cst_38 = arith.constant 5.000000e-01 : f32
    %109 = vector.broadcast %cst_38 : f32 to vector<3x16x128xf32>
    %110 = arith.mulf %109, %89 : vector<3x16x128xf32>
    %111 = arith.mulf %110, %89 : vector<3x16x128xf32>
    %cst_39 = arith.constant 5.000000e-01 : f32
    %112 = vector.broadcast %cst_39 : f32 to vector<3x16x128xf32>
    %113 = arith.subf %106, %112 : vector<3x16x128xf32>
    %114 = arith.select %108, %111, %113 : vector<3x16x128xi1>, vector<3x16x128xf32>
    %cst_40 = arith.constant 4.101050e-05 : f32
    %115 = vector.broadcast %cst_40 : f32 to vector<3x16x128xf32>
    %116 = arith.mulf %115, %114 : vector<3x16x128xf32>
    %117 = arith.addf %105, %116 : vector<3x16x128xf32>
    %118 = math.absf %94 : vector<3x16x128xf32>
    %cst_41 = arith.constant 1.000000e+00 : f32
    %119 = vector.broadcast %cst_41 : f32 to vector<3x16x128xf32>
    %120 = arith.cmpf olt, %118, %119 : vector<3x16x128xf32>
    %cst_42 = arith.constant 5.000000e-01 : f32
    %121 = vector.broadcast %cst_42 : f32 to vector<3x16x128xf32>
    %122 = arith.mulf %121, %94 : vector<3x16x128xf32>
    %123 = arith.mulf %122, %94 : vector<3x16x128xf32>
    %cst_43 = arith.constant 5.000000e-01 : f32
    %124 = vector.broadcast %cst_43 : f32 to vector<3x16x128xf32>
    %125 = arith.subf %118, %124 : vector<3x16x128xf32>
    %126 = arith.select %120, %123, %125 : vector<3x16x128xi1>, vector<3x16x128xf32>
    %cst_44 = arith.constant 4.34027788E-5 : f32
    %127 = vector.broadcast %cst_44 : f32 to vector<3x16x128xf32>
    %128 = arith.mulf %127, %126 : vector<3x16x128xf32>
    %129 = arith.addf %117, %128 : vector<3x16x128xf32>
    %130 = vector.shape_cast %129 : vector<3x16x128xf32> to vector<1x3x16x128xf32>
    %cst_45 = arith.constant dense<0.000000e+00> : vector<1xf32>
    %131 = vector.multi_reduction <add>, %130, %cst_45 [1, 2, 3] : vector<1x3x16x128xf32> to vector<1xf32>
    %132 = vector.shape_cast %131 : vector<1xf32> to vector<1x1x1x1xf32>
    %133 = vector.extract %132[0, 0, 0, 0] : f32 from vector<1x1x1x1xf32>
    %134 = vector.broadcast %133 : f32 to vector<1x1xf32>
    %c0_46 = arith.constant 0 : index
    %c1 = arith.constant 1 : index
    %c0_47 = arith.constant 0 : index
    %c0_48 = arith.constant 0 : index
    %135 = vector.load %arg5[%c0_46, %c1, %c0_47, %c0_48] : memref<1x2x1x1xf32, #tpu.memory_space<vmem>>, vector<1x1x1x1xf32>
    %136 = vector.shape_cast %135 : vector<1x1x1x1xf32> to vector<1x1xf32>
    %137 = vector.shape_cast %134 : vector<1x1xf32> to vector<1x1x1x1xf32>
    tpu.vector_store %arg5[%c0_46, %c1, %c0_47, %c0_48], %137 {strides = array<i32>} : memref<1x2x1x1xf32, #tpu.memory_space<vmem>>, vector<1x1x1x1xf32>,
    %138 = vector.extract_strided_slice %3 {offsets = [0, 0, 0, 0], sizes = [1, 3, 16, 128], strides = [1, 1, 1, 1]} : vector<2x3x16x128xf32> to vector<1x3x16x128xf32>
    %139 = vector.shape_cast %138 : vector<1x3x16x128xf32> to vector<3x16x128xf32>
    %140 = vector.extract_strided_slice %5 {offsets = [0, 0, 0], sizes = [1, 16, 128], strides = [1, 1, 1]} : vector<2x16x128xf32> to vector<1x16x128xf32>
    %141 = vector.shape_cast %140 : vector<1x16x128xf32> to vector<16x128xf32>
    %142 = vector.extract_strided_slice %3 {offsets = [1, 0, 0, 0], sizes = [1, 3, 16, 128], strides = [1, 1, 1, 1]} : vector<2x3x16x128xf32> to vector<1x3x16x128xf32>
    %143 = vector.shape_cast %142 : vector<1x3x16x128xf32> to vector<3x16x128xf32>
    %144 = vector.extract_strided_slice %5 {offsets = [1, 0, 0], sizes = [1, 16, 128], strides = [1, 1, 1]} : vector<2x16x128xf32> to vector<1x16x128xf32>
    %145 = vector.shape_cast %144 : vector<1x16x128xf32> to vector<16x128xf32>
    %c127_i32_49 = arith.constant 127 : i32
    %146 = tpu.dynamic_rotate %1 by %c127_i32_49 dim 2 : vector<3x16x128xf32>, i32 -> vector<3x16x128xf32>
    %147 = arith.addf %1, %146 : vector<3x16x128xf32>
    %c126_i32 = arith.constant 126 : i32
    %148 = tpu.dynamic_rotate %1 by %c126_i32 dim 2 : vector<3x16x128xf32>, i32 -> vector<3x16x128xf32>
    %149 = arith.addf %147, %148 : vector<3x16x128xf32>
    %c15_i32_50 = arith.constant 15 : i32
    %150 = tpu.dynamic_rotate %149 by %c15_i32_50 dim 1 : vector<3x16x128xf32>, i32 -> vector<3x16x128xf32>
    %151 = arith.addf %149, %150 : vector<3x16x128xf32>
    %c14_i32 = arith.constant 14 : i32
    %152 = tpu.dynamic_rotate %149 by %c14_i32 dim 1 : vector<3x16x128xf32>, i32 -> vector<3x16x128xf32>
    %153 = arith.addf %151, %152 : vector<3x16x128xf32>
    %cst_51 = arith.constant 0.111111112 : f32
    %154 = vector.broadcast %cst_51 : f32 to vector<3x16x128xf32>
    %155 = arith.mulf %153, %154 : vector<3x16x128xf32>
    %156 = arith.mulf %1, %1 : vector<3x16x128xf32>
    %c127_i32_52 = arith.constant 127 : i32
    %157 = tpu.dynamic_rotate %156 by %c127_i32_52 dim 2 : vector<3x16x128xf32>, i32 -> vector<3x16x128xf32>
    %158 = arith.addf %156, %157 : vector<3x16x128xf32>
    %c126_i32_53 = arith.constant 126 : i32
    %159 = tpu.dynamic_rotate %156 by %c126_i32_53 dim 2 : vector<3x16x128xf32>, i32 -> vector<3x16x128xf32>
    %160 = arith.addf %158, %159 : vector<3x16x128xf32>
    %c15_i32_54 = arith.constant 15 : i32
    %161 = tpu.dynamic_rotate %160 by %c15_i32_54 dim 1 : vector<3x16x128xf32>, i32 -> vector<3x16x128xf32>
    %162 = arith.addf %160, %161 : vector<3x16x128xf32>
    %c14_i32_55 = arith.constant 14 : i32
    %163 = tpu.dynamic_rotate %160 by %c14_i32_55 dim 1 : vector<3x16x128xf32>, i32 -> vector<3x16x128xf32>
    %164 = arith.addf %162, %163 : vector<3x16x128xf32>
    %cst_56 = arith.constant 0.111111112 : f32
    %165 = vector.broadcast %cst_56 : f32 to vector<3x16x128xf32>
    %166 = arith.mulf %164, %165 : vector<3x16x128xf32>
    %167 = arith.mulf %155, %155 : vector<3x16x128xf32>
    %168 = arith.subf %166, %167 : vector<3x16x128xf32>
    %169 = tpu.iota {dimensions = array<i32: 0>} : vector<16x128xi32>
    %170 = tpu.iota {dimensions = array<i32: 1>} : vector<16x128xi32>
    %c14_i32_57 = arith.constant 14 : i32
    %171 = vector.broadcast %c14_i32_57 : i32 to vector<16x128xi32>
    %172 = arith.cmpi slt, %169, %171 : vector<16x128xi32>
    %c126_i32_58 = arith.constant 126 : i32
    %173 = vector.broadcast %c126_i32_58 : i32 to vector<16x128xi32>
    %174 = arith.cmpi slt, %170, %173 : vector<16x128xi32>
    %175 = arith.andi %172, %174 : vector<16x128xi1>
    %176 = arith.extui %175 : vector<16x128xi1> to vector<16x128xi32>
    %177 = arith.sitofp %176 : vector<16x128xi32> to vector<16x128xf32>
    %c127_i32_59 = arith.constant 127 : i32
    %178 = tpu.dynamic_rotate %139 by %c127_i32_59 dim 2 : vector<3x16x128xf32>, i32 -> vector<3x16x128xf32>
    %179 = arith.addf %139, %178 : vector<3x16x128xf32>
    %c126_i32_60 = arith.constant 126 : i32
    %180 = tpu.dynamic_rotate %139 by %c126_i32_60 dim 2 : vector<3x16x128xf32>, i32 -> vector<3x16x128xf32>
    %181 = arith.addf %179, %180 : vector<3x16x128xf32>
    %c15_i32_61 = arith.constant 15 : i32
    %182 = tpu.dynamic_rotate %181 by %c15_i32_61 dim 1 : vector<3x16x128xf32>, i32 -> vector<3x16x128xf32>
    %183 = arith.addf %181, %182 : vector<3x16x128xf32>
    %c14_i32_62 = arith.constant 14 : i32
    %184 = tpu.dynamic_rotate %181 by %c14_i32_62 dim 1 : vector<3x16x128xf32>, i32 -> vector<3x16x128xf32>
    %185 = arith.addf %183, %184 : vector<3x16x128xf32>
    %cst_63 = arith.constant 0.111111112 : f32
    %186 = vector.broadcast %cst_63 : f32 to vector<3x16x128xf32>
    %187 = arith.mulf %185, %186 : vector<3x16x128xf32>
    %188 = arith.mulf %139, %139 : vector<3x16x128xf32>
    %c127_i32_64 = arith.constant 127 : i32
    %189 = tpu.dynamic_rotate %188 by %c127_i32_64 dim 2 : vector<3x16x128xf32>, i32 -> vector<3x16x128xf32>
    %190 = arith.addf %188, %189 : vector<3x16x128xf32>
    %c126_i32_65 = arith.constant 126 : i32
    %191 = tpu.dynamic_rotate %188 by %c126_i32_65 dim 2 : vector<3x16x128xf32>, i32 -> vector<3x16x128xf32>
    %192 = arith.addf %190, %191 : vector<3x16x128xf32>
    %c15_i32_66 = arith.constant 15 : i32
    %193 = tpu.dynamic_rotate %192 by %c15_i32_66 dim 1 : vector<3x16x128xf32>, i32 -> vector<3x16x128xf32>
    %194 = arith.addf %192, %193 : vector<3x16x128xf32>
    %c14_i32_67 = arith.constant 14 : i32
    %195 = tpu.dynamic_rotate %192 by %c14_i32_67 dim 1 : vector<3x16x128xf32>, i32 -> vector<3x16x128xf32>
    %196 = arith.addf %194, %195 : vector<3x16x128xf32>
    %cst_68 = arith.constant 0.111111112 : f32
    %197 = vector.broadcast %cst_68 : f32 to vector<3x16x128xf32>
    %198 = arith.mulf %196, %197 : vector<3x16x128xf32>
    %199 = arith.mulf %187, %187 : vector<3x16x128xf32>
    %200 = arith.subf %198, %199 : vector<3x16x128xf32>
    %201 = arith.mulf %1, %139 : vector<3x16x128xf32>
    %c127_i32_69 = arith.constant 127 : i32
    %202 = tpu.dynamic_rotate %201 by %c127_i32_69 dim 2 : vector<3x16x128xf32>, i32 -> vector<3x16x128xf32>
    %203 = arith.addf %201, %202 : vector<3x16x128xf32>
    %c126_i32_70 = arith.constant 126 : i32
    %204 = tpu.dynamic_rotate %201 by %c126_i32_70 dim 2 : vector<3x16x128xf32>, i32 -> vector<3x16x128xf32>
    %205 = arith.addf %203, %204 : vector<3x16x128xf32>
    %c15_i32_71 = arith.constant 15 : i32
    %206 = tpu.dynamic_rotate %205 by %c15_i32_71 dim 1 : vector<3x16x128xf32>, i32 -> vector<3x16x128xf32>
    %207 = arith.addf %205, %206 : vector<3x16x128xf32>
    %c14_i32_72 = arith.constant 14 : i32
    %208 = tpu.dynamic_rotate %205 by %c14_i32_72 dim 1 : vector<3x16x128xf32>, i32 -> vector<3x16x128xf32>
    %209 = arith.addf %207, %208 : vector<3x16x128xf32>
    %cst_73 = arith.constant 0.111111112 : f32
    %210 = vector.broadcast %cst_73 : f32 to vector<3x16x128xf32>
    %211 = arith.mulf %209, %210 : vector<3x16x128xf32>
    %212 = arith.mulf %155, %187 : vector<3x16x128xf32>
    %213 = arith.subf %211, %212 : vector<3x16x128xf32>
    %cst_74 = arith.constant 2.000000e+00 : f32
    %214 = vector.broadcast %cst_74 : f32 to vector<3x16x128xf32>
    %215 = arith.mulf %214, %155 : vector<3x16x128xf32>
    %216 = arith.mulf %215, %187 : vector<3x16x128xf32>
    %cst_75 = arith.constant 9.99999974E-5 : f32
    %217 = vector.broadcast %cst_75 : f32 to vector<3x16x128xf32>
    %218 = arith.addf %216, %217 : vector<3x16x128xf32>
    %cst_76 = arith.constant 2.000000e+00 : f32
    %219 = vector.broadcast %cst_76 : f32 to vector<3x16x128xf32>
    %220 = arith.mulf %219, %213 : vector<3x16x128xf32>
    %cst_77 = arith.constant 8.99999984E-4 : f32
    %221 = vector.broadcast %cst_77 : f32 to vector<3x16x128xf32>
    %222 = arith.addf %220, %221 : vector<3x16x128xf32>
    %223 = arith.mulf %218, %222 : vector<3x16x128xf32>
    %224 = arith.mulf %155, %155 : vector<3x16x128xf32>
    %225 = arith.addf %224, %168 : vector<3x16x128xf32>
    %cst_78 = arith.constant 9.99999974E-5 : f32
    %226 = vector.broadcast %cst_78 : f32 to vector<3x16x128xf32>
    %227 = arith.addf %225, %226 : vector<3x16x128xf32>
    %228 = arith.mulf %187, %187 : vector<3x16x128xf32>
    %229 = arith.addf %228, %200 : vector<3x16x128xf32>
    %cst_79 = arith.constant 8.99999984E-4 : f32
    %230 = vector.broadcast %cst_79 : f32 to vector<3x16x128xf32>
    %231 = arith.addf %229, %230 : vector<3x16x128xf32>
    %232 = arith.mulf %227, %231 : vector<3x16x128xf32>
    %233 = tpu.reciprocal %232 {approx = true} : vector<3x16x128xf32> -> vector<3x16x128xf32>
    %234 = arith.mulf %232, %233 : vector<3x16x128xf32>
    %cst_80 = arith.constant 2.000000e+00 : f32
    %235 = vector.broadcast %cst_80 : f32 to vector<3x16x128xf32>
    %236 = arith.subf %235, %234 : vector<3x16x128xf32>
    %237 = arith.mulf %233, %236 : vector<3x16x128xf32>
    %c127_i32_81 = arith.constant 127 : i32
    %238 = tpu.dynamic_rotate %141 by %c127_i32_81 dim 1 : vector<16x128xf32>, i32 -> vector<16x128xf32>
    %239 = arith.addf %141, %238 : vector<16x128xf32>
    %c126_i32_82 = arith.constant 126 : i32
    %240 = tpu.dynamic_rotate %141 by %c126_i32_82 dim 1 : vector<16x128xf32>, i32 -> vector<16x128xf32>
    %241 = arith.addf %239, %240 : vector<16x128xf32>
    %c15_i32_83 = arith.constant 15 : i32
    %242 = tpu.dynamic_rotate %241 by %c15_i32_83 dim 0 : vector<16x128xf32>, i32 -> vector<16x128xf32>
    %243 = arith.addf %241, %242 : vector<16x128xf32>
    %c14_i32_84 = arith.constant 14 : i32
    %244 = tpu.dynamic_rotate %241 by %c14_i32_84 dim 0 : vector<16x128xf32>, i32 -> vector<16x128xf32>
    %245 = arith.addf %243, %244 : vector<16x128xf32>
    %cst_85 = arith.constant 0.111111112 : f32
    %246 = vector.broadcast %cst_85 : f32 to vector<16x128xf32>
    %247 = arith.mulf %245, %246 : vector<16x128xf32>
    %248 = arith.mulf %247, %177 : vector<16x128xf32>
    %249 = arith.mulf %223, %237 : vector<3x16x128xf32>
    %cst_86 = arith.constant 1.000000e+00 : f32
    %250 = vector.broadcast %cst_86 : f32 to vector<3x16x128xf32>
    %251 = arith.subf %250, %249 : vector<3x16x128xf32>
    %cst_87 = arith.constant 5.000000e-01 : f32
    %252 = vector.broadcast %cst_87 : f32 to vector<3x16x128xf32>
    %253 = arith.mulf %251, %252 : vector<3x16x128xf32>
    %cst_88 = arith.constant 0.000000e+00 : f32
    %cst_89 = arith.constant 1.000000e+00 : f32
    %254 = vector.broadcast %cst_88 : f32 to vector<3x16x128xf32>
    %255 = arith.maximumf %254, %253 : vector<3x16x128xf32>
    %256 = vector.broadcast %cst_89 : f32 to vector<3x16x128xf32>
    %257 = arith.minimumf %256, %255 : vector<3x16x128xf32>
    %258 = vector.shape_cast %248 : vector<16x128xf32> to vector<1x16x128xf32>
    %259 = vector.broadcast %258 : vector<1x16x128xf32> to vector<3x16x128xf32>
    %260 = arith.mulf %259, %257 : vector<3x16x128xf32>
    %261 = vector.shape_cast %260 : vector<3x16x128xf32> to vector<1x3x16x128xf32>
    %cst_90 = arith.constant dense<0.000000e+00> : vector<1xf32>
    %262 = vector.multi_reduction <add>, %261, %cst_90 [1, 2, 3] : vector<1x3x16x128xf32> to vector<1xf32>
    %263 = vector.shape_cast %262 : vector<1xf32> to vector<1x1x1x1xf32>
    %264 = vector.extract %263[0, 0, 0, 0] : f32 from vector<1x1x1x1xf32>
    %cst_91 = arith.constant 0.000000e+00 : f32
    %265 = arith.addf %cst_91, %264 : f32
    %c127_i32_92 = arith.constant 127 : i32
    %266 = tpu.dynamic_rotate %143 by %c127_i32_92 dim 2 : vector<3x16x128xf32>, i32 -> vector<3x16x128xf32>
    %267 = arith.addf %143, %266 : vector<3x16x128xf32>
    %c126_i32_93 = arith.constant 126 : i32
    %268 = tpu.dynamic_rotate %143 by %c126_i32_93 dim 2 : vector<3x16x128xf32>, i32 -> vector<3x16x128xf32>
    %269 = arith.addf %267, %268 : vector<3x16x128xf32>
    %c15_i32_94 = arith.constant 15 : i32
    %270 = tpu.dynamic_rotate %269 by %c15_i32_94 dim 1 : vector<3x16x128xf32>, i32 -> vector<3x16x128xf32>
    %271 = arith.addf %269, %270 : vector<3x16x128xf32>
    %c14_i32_95 = arith.constant 14 : i32
    %272 = tpu.dynamic_rotate %269 by %c14_i32_95 dim 1 : vector<3x16x128xf32>, i32 -> vector<3x16x128xf32>
    %273 = arith.addf %271, %272 : vector<3x16x128xf32>
    %cst_96 = arith.constant 0.111111112 : f32
    %274 = vector.broadcast %cst_96 : f32 to vector<3x16x128xf32>
    %275 = arith.mulf %273, %274 : vector<3x16x128xf32>
    %276 = arith.mulf %143, %143 : vector<3x16x128xf32>
    %c127_i32_97 = arith.constant 127 : i32
    %277 = tpu.dynamic_rotate %276 by %c127_i32_97 dim 2 : vector<3x16x128xf32>, i32 -> vector<3x16x128xf32>
    %278 = arith.addf %276, %277 : vector<3x16x128xf32>
    %c126_i32_98 = arith.constant 126 : i32
    %279 = tpu.dynamic_rotate %276 by %c126_i32_98 dim 2 : vector<3x16x128xf32>, i32 -> vector<3x16x128xf32>
    %280 = arith.addf %278, %279 : vector<3x16x128xf32>
    %c15_i32_99 = arith.constant 15 : i32
    %281 = tpu.dynamic_rotate %280 by %c15_i32_99 dim 1 : vector<3x16x128xf32>, i32 -> vector<3x16x128xf32>
    %282 = arith.addf %280, %281 : vector<3x16x128xf32>
    %c14_i32_100 = arith.constant 14 : i32
    %283 = tpu.dynamic_rotate %280 by %c14_i32_100 dim 1 : vector<3x16x128xf32>, i32 -> vector<3x16x128xf32>
    %284 = arith.addf %282, %283 : vector<3x16x128xf32>
    %cst_101 = arith.constant 0.111111112 : f32
    %285 = vector.broadcast %cst_101 : f32 to vector<3x16x128xf32>
    %286 = arith.mulf %284, %285 : vector<3x16x128xf32>
    %287 = arith.mulf %275, %275 : vector<3x16x128xf32>
    %288 = arith.subf %286, %287 : vector<3x16x128xf32>
    %289 = arith.mulf %1, %143 : vector<3x16x128xf32>
    %c127_i32_102 = arith.constant 127 : i32
    %290 = tpu.dynamic_rotate %289 by %c127_i32_102 dim 2 : vector<3x16x128xf32>, i32 -> vector<3x16x128xf32>
    %291 = arith.addf %289, %290 : vector<3x16x128xf32>
    %c126_i32_103 = arith.constant 126 : i32
    %292 = tpu.dynamic_rotate %289 by %c126_i32_103 dim 2 : vector<3x16x128xf32>, i32 -> vector<3x16x128xf32>
    %293 = arith.addf %291, %292 : vector<3x16x128xf32>
    %c15_i32_104 = arith.constant 15 : i32
    %294 = tpu.dynamic_rotate %293 by %c15_i32_104 dim 1 : vector<3x16x128xf32>, i32 -> vector<3x16x128xf32>
    %295 = arith.addf %293, %294 : vector<3x16x128xf32>
    %c14_i32_105 = arith.constant 14 : i32
    %296 = tpu.dynamic_rotate %293 by %c14_i32_105 dim 1 : vector<3x16x128xf32>, i32 -> vector<3x16x128xf32>
    %297 = arith.addf %295, %296 : vector<3x16x128xf32>
    %cst_106 = arith.constant 0.111111112 : f32
    %298 = vector.broadcast %cst_106 : f32 to vector<3x16x128xf32>
    %299 = arith.mulf %297, %298 : vector<3x16x128xf32>
    %300 = arith.mulf %155, %275 : vector<3x16x128xf32>
    %301 = arith.subf %299, %300 : vector<3x16x128xf32>
    %cst_107 = arith.constant 2.000000e+00 : f32
    %302 = vector.broadcast %cst_107 : f32 to vector<3x16x128xf32>
    %303 = arith.mulf %302, %155 : vector<3x16x128xf32>
    %304 = arith.mulf %303, %275 : vector<3x16x128xf32>
    %cst_108 = arith.constant 9.99999974E-5 : f32
    %305 = vector.broadcast %cst_108 : f32 to vector<3x16x128xf32>
    %306 = arith.addf %304, %305 : vector<3x16x128xf32>
    %cst_109 = arith.constant 2.000000e+00 : f32
    %307 = vector.broadcast %cst_109 : f32 to vector<3x16x128xf32>
    %308 = arith.mulf %307, %301 : vector<3x16x128xf32>
    %cst_110 = arith.constant 8.99999984E-4 : f32
    %309 = vector.broadcast %cst_110 : f32 to vector<3x16x128xf32>
    %310 = arith.addf %308, %309 : vector<3x16x128xf32>
    %311 = arith.mulf %306, %310 : vector<3x16x128xf32>
    %312 = arith.mulf %155, %155 : vector<3x16x128xf32>
    %313 = arith.addf %312, %168 : vector<3x16x128xf32>
    %cst_111 = arith.constant 9.99999974E-5 : f32
    %314 = vector.broadcast %cst_111 : f32 to vector<3x16x128xf32>
    %315 = arith.addf %313, %314 : vector<3x16x128xf32>
    %316 = arith.mulf %275, %275 : vector<3x16x128xf32>
    %317 = arith.addf %316, %288 : vector<3x16x128xf32>
    %cst_112 = arith.constant 8.99999984E-4 : f32
    %318 = vector.broadcast %cst_112 : f32 to vector<3x16x128xf32>
    %319 = arith.addf %317, %318 : vector<3x16x128xf32>
    %320 = arith.mulf %315, %319 : vector<3x16x128xf32>
    %321 = tpu.reciprocal %320 {approx = true} : vector<3x16x128xf32> -> vector<3x16x128xf32>
    %322 = arith.mulf %320, %321 : vector<3x16x128xf32>
    %cst_113 = arith.constant 2.000000e+00 : f32
    %323 = vector.broadcast %cst_113 : f32 to vector<3x16x128xf32>
    %324 = arith.subf %323, %322 : vector<3x16x128xf32>
    %325 = arith.mulf %321, %324 : vector<3x16x128xf32>
    %c127_i32_114 = arith.constant 127 : i32
    %326 = tpu.dynamic_rotate %145 by %c127_i32_114 dim 1 : vector<16x128xf32>, i32 -> vector<16x128xf32>
    %327 = arith.addf %145, %326 : vector<16x128xf32>
    %c126_i32_115 = arith.constant 126 : i32
    %328 = tpu.dynamic_rotate %145 by %c126_i32_115 dim 1 : vector<16x128xf32>, i32 -> vector<16x128xf32>
    %329 = arith.addf %327, %328 : vector<16x128xf32>
    %c15_i32_116 = arith.constant 15 : i32
    %330 = tpu.dynamic_rotate %329 by %c15_i32_116 dim 0 : vector<16x128xf32>, i32 -> vector<16x128xf32>
    %331 = arith.addf %329, %330 : vector<16x128xf32>
    %c14_i32_117 = arith.constant 14 : i32
    %332 = tpu.dynamic_rotate %329 by %c14_i32_117 dim 0 : vector<16x128xf32>, i32 -> vector<16x128xf32>
    %333 = arith.addf %331, %332 : vector<16x128xf32>
    %cst_118 = arith.constant 0.111111112 : f32
    %334 = vector.broadcast %cst_118 : f32 to vector<16x128xf32>
    %335 = arith.mulf %333, %334 : vector<16x128xf32>
    %336 = arith.mulf %335, %177 : vector<16x128xf32>
    %337 = arith.mulf %311, %325 : vector<3x16x128xf32>
    %cst_119 = arith.constant 1.000000e+00 : f32
    %338 = vector.broadcast %cst_119 : f32 to vector<3x16x128xf32>
    %339 = arith.subf %338, %337 : vector<3x16x128xf32>
    %cst_120 = arith.constant 5.000000e-01 : f32
    %340 = vector.broadcast %cst_120 : f32 to vector<3x16x128xf32>
    %341 = arith.mulf %339, %340 : vector<3x16x128xf32>
    %cst_121 = arith.constant 0.000000e+00 : f32
    %cst_122 = arith.constant 1.000000e+00 : f32
    %342 = vector.broadcast %cst_121 : f32 to vector<3x16x128xf32>
    %343 = arith.maximumf %342, %341 : vector<3x16x128xf32>
    %344 = vector.broadcast %cst_122 : f32 to vector<3x16x128xf32>
    %345 = arith.minimumf %344, %343 : vector<3x16x128xf32>
    %346 = vector.shape_cast %336 : vector<16x128xf32> to vector<1x16x128xf32>
    %347 = vector.broadcast %346 : vector<1x16x128xf32> to vector<3x16x128xf32>
    %348 = arith.mulf %347, %345 : vector<3x16x128xf32>
    %349 = vector.shape_cast %348 : vector<3x16x128xf32> to vector<1x3x16x128xf32>
    %cst_123 = arith.constant dense<0.000000e+00> : vector<1xf32>
    %350 = vector.multi_reduction <add>, %349, %cst_123 [1, 2, 3] : vector<1x3x16x128xf32> to vector<1xf32>
    %351 = vector.shape_cast %350 : vector<1xf32> to vector<1x1x1x1xf32>
    %352 = vector.extract %351[0, 0, 0, 0] : f32 from vector<1x1x1x1xf32>
    %cst_124 = arith.constant 0.000000e+00 : f32
    %353 = arith.addf %cst_124, %352 : f32
    %cst_125 = arith.constant 9.44822386E-5 : f32
    %354 = arith.mulf %265, %cst_125 : f32
    %355 = vector.broadcast %354 : f32 to vector<1x1xf32>
    %c0_126 = arith.constant 0 : index
    %c0_127 = arith.constant 0 : index
    %c0_128 = arith.constant 0 : index
    %c0_129 = arith.constant 0 : index
    %356 = vector.load %arg6[%c0_126, %c0_127, %c0_128, %c0_129] : memref<1x2x1x1xf32, #tpu.memory_space<vmem>>, vector<1x1x1x1xf32>
    %357 = vector.shape_cast %356 : vector<1x1x1x1xf32> to vector<1x1xf32>
    %358 = vector.shape_cast %355 : vector<1x1xf32> to vector<1x1x1x1xf32>
    tpu.vector_store %arg6[%c0_126, %c0_127, %c0_128, %c0_129], %358 {strides = array<i32>} : memref<1x2x1x1xf32, #tpu.memory_space<vmem>>, vector<1x1x1x1xf32>,
    %cst_130 = arith.constant 9.44822386E-5 : f32
    %359 = arith.mulf %353, %cst_130 : f32
    %360 = vector.broadcast %359 : f32 to vector<1x1xf32>
    %c0_131 = arith.constant 0 : index
    %c1_132 = arith.constant 1 : index
    %c0_133 = arith.constant 0 : index
    %c0_134 = arith.constant 0 : index
    %361 = vector.load %arg6[%c0_131, %c1_132, %c0_133, %c0_134] : memref<1x2x1x1xf32, #tpu.memory_space<vmem>>, vector<1x1x1x1xf32>
    %362 = vector.shape_cast %361 : vector<1x1x1x1xf32> to vector<1x1xf32>
    %363 = vector.shape_cast %360 : vector<1x1xf32> to vector<1x1x1x1xf32>
    tpu.vector_store %arg6[%c0_131, %c1_132, %c0_133, %c0_134], %363 {strides = array<i32>} : memref<1x2x1x1xf32, #tpu.memory_space<vmem>>, vector<1x1x1x1xf32>,
    return
  }
  func.func @transform_0(%arg0: i32, %arg1: i32) -> (i32, i32, i32, i32, i32) {
    %c0_i32 = arith.constant 0 : i32
    %c0_i32_0 = arith.constant 0 : i32
    %c0_i32_1 = arith.constant 0 : i32
    %c0_i32_2 = arith.constant 0 : i32
    return %arg0, %arg1, %c0_i32, %c0_i32_0, %c0_i32_1 : i32, i32, i32, i32, i32
  }
  func.func @transform_1(%arg0: i32, %arg1: i32) -> (i32, i32, i32, i32) {
    %c0_i32 = arith.constant 0 : i32
    %c0_i32_0 = arith.constant 0 : i32
    %c0_i32_1 = arith.constant 0 : i32
    %c0_i32_2 = arith.constant 0 : i32
    return %arg0, %c0_i32, %c0_i32_0, %c0_i32_1 : i32, i32, i32, i32
  }
  func.func @transform_2(%arg0: i32, %arg1: i32) -> (i32, i32, i32, i32, i32) {
    %c0_i32 = arith.constant 0 : i32
    %c0_i32_0 = arith.constant 0 : i32
    %c0_i32_1 = arith.constant 0 : i32
    %c0_i32_2 = arith.constant 0 : i32
    return %arg0, %arg1, %c0_i32, %c0_i32_0, %c0_i32_1 : i32, i32, i32, i32, i32
  }
  func.func @transform_3(%arg0: i32, %arg1: i32) -> (i32, i32, i32, i32) {
    %c0_i32 = arith.constant 0 : i32
    %c0_i32_0 = arith.constant 0 : i32
    %c0_i32_1 = arith.constant 0 : i32
    return %arg0, %arg1, %c0_i32, %c0_i32_0 : i32, i32, i32, i32
  }
  func.func @transform_4(%arg0: i32, %arg1: i32) -> (i32, i32, i32, i32) {
    %c0_i32 = arith.constant 0 : i32
    %c0_i32_0 = arith.constant 0 : i32
    %c0_i32_1 = arith.constant 0 : i32
    return %arg0, %arg1, %c0_i32, %c0_i32_0 : i32, i32, i32, i32
  }
}

</mosaic_0001>

<bundles_post_ra>
// kernel: squeeze.49
= control target key start
LH: loop header
LB: loop body
LE: loop exit
PB: predicated region body
PF: predicated region fallthrough
CT: control target
= control target key end

     0   :  { %s607_s0 = inlined_call_operand.vmem [shape: f32[2,1,3,16,128], index: 0, kind: input, shape index: {}]   ;;  %s608_s1 = inlined_call_operand.vmem [shape: f32[2,3,2048], index: 1, kind: output, shape index: {}]  }
   0x1   :  { %v2_v0 = vld [vmem:[%s607_s0] sm:$0xff]   ;;  %v359_v1 = vld [vmem:[%s607_s0 + $0x8] sm:$0xff]   ;;  %v360_v2 = vld [vmem:[%s607_s0 + $0x10] sm:$0xff]  }
   0x2   :  { %3 = vst [vmem:[#allocation0] ss:$8 sm:$0xf] %v2_v0   ;;  %v361_v3 = vld [vmem:[%s607_s0 + $0x18] sm:$0xff]   ;;  %v362_v4 = vld [vmem:[%s607_s0 + $0x20] sm:$0xff]   ;;  %v363_v5 = vld [vmem:[%s607_s0 + $0x28] sm:$0xff]  }
   0x3   :  { %4 = vst [vmem:[#allocation0] ss:$8 sm:$0xf0] %v2_v0   ;;  %v364_v6 = vld [vmem:[%s607_s0 + $0x30] sm:$0xff]   ;;  %v365_v7 = vld [vmem:[%s607_s0 + $0x38] sm:$0xff]   ;;  %v366_v8 = vld [vmem:[%s607_s0 + $0x40] sm:$0xff]  }
   0x4   :  { %8 = vst [vmem:[#allocation0 + $0x40] ss:$8 sm:$0xf] %v359_v1   ;;  %v367_v9 = vld [vmem:[%s607_s0 + $0x48] sm:$0xff]   ;;  %v368_v10 = vld [vmem:[%s607_s0 + $0x50] sm:$0xff]   ;;  %v369_v11 = vld [vmem:[%s607_s0 + $0x58] sm:$0xff]  }
   0x5   :  { %10 = vst [vmem:[#allocation0 + $0x40] ss:$8 sm:$0xf0] %v359_v1  }
   0x6   :  { %14 = vst [vmem:[#allocation0 + $0x1] ss:$8 sm:$0xf] %v360_v2  }
   0x7   :  { %16 = vst [vmem:[#allocation0 + $0x1] ss:$8 sm:$0xf0] %v360_v2  }
   0x8   :  { %20 = vst [vmem:[#allocation0 + $0x41] ss:$8 sm:$0xf] %v361_v3  }
   0x9   :  { %22 = vst [vmem:[#allocation0 + $0x41] ss:$8 sm:$0xf0] %v361_v3  }
   0xa   :  { %26 = vst [vmem:[#allocation0 + $0x80] ss:$8 sm:$0xf] %v362_v4  }
   0xb   :  { %28 = vst [vmem:[#allocation0 + $0x80] ss:$8 sm:$0xf0] %v362_v4  }
   0xc   :  { %32 = vst [vmem:[#allocation0 + $0xc0] ss:$8 sm:$0xf] %v363_v5  }
   0xd   :  { %34 = vst [vmem:[#allocation0 + $0xc0] ss:$8 sm:$0xf0] %v363_v5   ;;  %v73_v12 = vld [vmem:[#allocation0] sm:$0x3] }
   0xe   :  { %38 = vst [vmem:[#allocation0 + $0x81] ss:$8 sm:$0xf] %v364_v6   ;;  %v78_v13 = vld [vmem:[#allocation0 + $0x8] sm:$0x3] }
   0xf   :  { %40 = vst [vmem:[#allocation0 + $0x81] ss:$8 sm:$0xf0] %v364_v6   ;;  %v84_v14 = vld [vmem:[#allocation0 + $0x10] sm:$0x3] }
  0x10   :  { %44 = vst [vmem:[#allocation0 + $0xc1] ss:$8 sm:$0xf] %v365_v7   ;;  %v90_v15 = vld [vmem:[#allocation0 + $0x18] sm:$0x3] }
  0x11   :  { %46 = vst [vmem:[#allocation0 + $0xc1] ss:$8 sm:$0xf0] %v365_v7   ;;  %v96_v16 = vld [vmem:[#allocation0 + $0x20] sm:$0x3] }
  0x12   :  { %50 = vst [vmem:[#allocation0 + $0x100] ss:$8 sm:$0xf] %v366_v8   ;;  %v102_v17 = vld [vmem:[#allocation0 + $0x28] sm:$0x3] }
  0x13   :  { %52 = vst [vmem:[#allocation0 + $0x100] ss:$8 sm:$0xf0] %v366_v8   ;;  %v108_v18 = vld [vmem:[#allocation0 + $0x30] sm:$0x3] }
  0x14   :  { %56 = vst [vmem:[#allocation0 + $0x140] ss:$8 sm:$0xf] %v367_v9   ;;  %v114_v19 = vld [vmem:[#allocation0 + $0x38] sm:$0x3] }
  0x15   :  { %58 = vst [vmem:[#allocation0 + $0x140] ss:$8 sm:$0xf0] %v367_v9   ;;  %v120_v20 = vld [vmem:[#allocation0 + $0x40] sm:$0x3] }
  0x16   :  { %62 = vst [vmem:[#allocation0 + $0x101] ss:$8 sm:$0xf] %v368_v10   ;;  %v126_v21 = vld [vmem:[#allocation0 + $0x48] sm:$0x3] }
  0x17   :  { %64 = vst [vmem:[#allocation0 + $0x101] ss:$8 sm:$0xf0] %v368_v10   ;;  %v132_v22 = vld [vmem:[#allocation0 + $0x50] sm:$0x3] }
  0x18   :  { %68 = vst [vmem:[#allocation0 + $0x141] ss:$8 sm:$0xf] %v369_v11   ;;  %v138_v23 = vld [vmem:[#allocation0 + $0x58] sm:$0x3] }
  0x19   :  { %70 = vst [vmem:[#allocation0 + $0x141] ss:$8 sm:$0xf0] %v369_v11   ;;  %v144_v24 = vld [vmem:[#allocation0 + $0x60] sm:$0x3] }
  0x1a   :  { %76 = vst [vmem:[%s608_s1] sm:$0x3] %v73_v12  ;;  %v150_v25 = vld [vmem:[#allocation0 + $0x68] sm:$0x3]  ;;  %v156_v26 = vld [vmem:[#allocation0 + $0x70] sm:$0x3] }
  0x1b   :  { %370 = vst [vmem:[%s608_s1 + $0x2] sm:$0x3] %v78_v13  ;;  %v162_v27 = vld [vmem:[#allocation0 + $0x78] sm:$0x3]  ;;  %v168_v28 = vld [vmem:[#allocation0 + $0x80] sm:$0x3] }
  0x1c   :  { %371 = vst [vmem:[%s608_s1 + $0x4] sm:$0x3] %v84_v14  ;;  %v174_v29 = vld [vmem:[#allocation0 + $0x88] sm:$0x3]  ;;  %v180_v30 = vld [vmem:[#allocation0 + $0x90] sm:$0x3] }
  0x1d   :  { %372 = vst [vmem:[%s608_s1 + $0x6] sm:$0x3] %v90_v15  ;;  %v186_v31 = vld [vmem:[#allocation0 + $0x98] sm:$0x3]  ;;  %v192_v32 = vld [vmem:[#allocation0 + $0xa0] sm:$0x3] }
  0x1e   :  { %373 = vst [vmem:[%s608_s1 + $0x8] sm:$0x3] %v96_v16  ;;  %v198_v33 = vld [vmem:[#allocation0 + $0xa8] sm:$0x3]  ;;  %v204_v34 = vld [vmem:[#allocation0 + $0xb0] sm:$0x3] }
  0x1f   :  { %374 = vst [vmem:[%s608_s1 + $0xa] sm:$0x3] %v102_v17  ;;  %v210_v35 = vld [vmem:[#allocation0 + $0xb8] sm:$0x3]  ;;  %v216_v36 = vld [vmem:[#allocation0 + $0xc0] sm:$0x3] }
  0x20   :  { %375 = vst [vmem:[%s608_s1 + $0xc] sm:$0x3] %v108_v18  ;;  %v222_v37 = vld [vmem:[#allocation0 + $0xc8] sm:$0x3]  ;;  %v228_v38 = vld [vmem:[#allocation0 + $0xd0] sm:$0x3] }
  0x21   :  { %376 = vst [vmem:[%s608_s1 + $0xe] sm:$0x3] %v114_v19  ;;  %v234_v39 = vld [vmem:[#allocation0 + $0xd8] sm:$0x3]  ;;  %v240_v40 = vld [vmem:[#allocation0 + $0xe0] sm:$0x3] }
  0x22   :  { %377 = vst [vmem:[%s608_s1 + $0x10] sm:$0x3] %v120_v20  ;;  %v246_v41 = vld [vmem:[#allocation0 + $0xe8] sm:$0x3]  ;;  %v252_v42 = vld [vmem:[#allocation0 + $0xf0] sm:$0x3] }
  0x23   :  { %378 = vst [vmem:[%s608_s1 + $0x12] sm:$0x3] %v126_v21  ;;  %v258_v43 = vld [vmem:[#allocation0 + $0xf8] sm:$0x3]  ;;  %v264_v44 = vld [vmem:[#allocation0 + $0x100] sm:$0x3] }
  0x24   :  { %379 = vst [vmem:[%s608_s1 + $0x14] sm:$0x3] %v132_v22  ;;  %v270_v45 = vld [vmem:[#allocation0 + $0x108] sm:$0x3]  ;;  %v276_v46 = vld [vmem:[#allocation0 + $0x110] sm:$0x3] }
  0x25   :  { %380 = vst [vmem:[%s608_s1 + $0x16] sm:$0x3] %v138_v23  ;;  %v282_v47 = vld [vmem:[#allocation0 + $0x118] sm:$0x3]  ;;  %v288_v48 = vld [vmem:[#allocation0 + $0x120] sm:$0x3] }
  0x26   :  { %381 = vst [vmem:[%s608_s1 + $0x18] sm:$0x3] %v144_v24  ;;  %v294_v49 = vld [vmem:[#allocation0 + $0x128] sm:$0x3]  ;;  %v300_v50 = vld [vmem:[#allocation0 + $0x130] sm:$0x3] }
  0x27   :  { %382 = vst [vmem:[%s608_s1 + $0x1a] sm:$0x3] %v150_v25  ;;  %v306_v51 = vld [vmem:[#allocation0 + $0x138] sm:$0x3]  ;;  %v312_v52 = vld [vmem:[#allocation0 + $0x140] sm:$0x3] }
  0x28   :  { %383 = vst [vmem:[%s608_s1 + $0x1c] sm:$0x3] %v156_v26  ;;  %v318_v53 = vld [vmem:[#allocation0 + $0x148] sm:$0x3]  ;;  %v324_v54 = vld [vmem:[#allocation0 + $0x150] sm:$0x3] }
  0x29   :  { %384 = vst [vmem:[%s608_s1 + $0x1e] sm:$0x3] %v162_v27  ;;  %v330_v55 = vld [vmem:[#allocation0 + $0x158] sm:$0x3]  ;;  %v336_v56 = vld [vmem:[#allocation0 + $0x160] sm:$0x3] }
  0x2a   :  { %385 = vst [vmem:[%s608_s1 + $0x20] sm:$0x3] %v168_v28  ;;  %v342_v57 = vld [vmem:[#allocation0 + $0x168] sm:$0x3]  ;;  %v348_v58 = vld [vmem:[#allocation0 + $0x170] sm:$0x3] }
  0x2b   :  { %386 = vst [vmem:[%s608_s1 + $0x22] sm:$0x3] %v174_v29  ;;  %v354_v59 = vld [vmem:[#allocation0 + $0x178] sm:$0x3] }
  0x2c   :  { %387 = vst [vmem:[%s608_s1 + $0x24] sm:$0x3] %v180_v30 }
  0x2d   :  { %388 = vst [vmem:[%s608_s1 + $0x26] sm:$0x3] %v186_v31 }
  0x2e   :  { %389 = vst [vmem:[%s608_s1 + $0x28] sm:$0x3] %v192_v32 }
  0x2f   :  { %390 = vst [vmem:[%s608_s1 + $0x2a] sm:$0x3] %v198_v33 }
  0x30   :  { %391 = vst [vmem:[%s608_s1 + $0x2c] sm:$0x3] %v204_v34 }
  0x31   :  { %392 = vst [vmem:[%s608_s1 + $0x2e] sm:$0x3] %v210_v35 }
  0x32   :  { %393 = vst [vmem:[%s608_s1 + $0x30] sm:$0x3] %v216_v36 }
  0x33   :  { %394 = vst [vmem:[%s608_s1 + $0x32] sm:$0x3] %v222_v37 }
  0x34   :  { %395 = vst [vmem:[%s608_s1 + $0x34] sm:$0x3] %v228_v38 }
  0x35   :  { %396 = vst [vmem:[%s608_s1 + $0x36] sm:$0x3] %v234_v39 }
  0x36   :  { %397 = vst [vmem:[%s608_s1 + $0x38] sm:$0x3] %v240_v40 }
  0x37   :  { %398 = vst [vmem:[%s608_s1 + $0x3a] sm:$0x3] %v246_v41 }
  0x38   :  { %399 = vst [vmem:[%s608_s1 + $0x3c] sm:$0x3] %v252_v42 }
  0x39   :  { %400 = vst [vmem:[%s608_s1 + $0x3e] sm:$0x3] %v258_v43 }
  0x3a   :  { %401 = vst [vmem:[%s608_s1 + $0x40] sm:$0x3] %v264_v44 }
  0x3b   :  { %402 = vst [vmem:[%s608_s1 + $0x42] sm:$0x3] %v270_v45 }
  0x3c   :  { %403 = vst [vmem:[%s608_s1 + $0x44] sm:$0x3] %v276_v46 }
  0x3d   :  { %404 = vst [vmem:[%s608_s1 + $0x46] sm:$0x3] %v282_v47 }
  0x3e   :  { %405 = vst [vmem:[%s608_s1 + $0x48] sm:$0x3] %v288_v48 }
  0x3f   :  { %406 = vst [vmem:[%s608_s1 + $0x4a] sm:$0x3] %v294_v49 }
  0x40   :  { %407 = vst [vmem:[%s608_s1 + $0x4c] sm:$0x3] %v300_v50 }
  0x41   :  { %408 = vst [vmem:[%s608_s1 + $0x4e] sm:$0x3] %v306_v51 }
  0x42   :  { %409 = vst [vmem:[%s608_s1 + $0x50] sm:$0x3] %v312_v52 }
  0x43   :  { %410 = vst [vmem:[%s608_s1 + $0x52] sm:$0x3] %v318_v53 }
  0x44   :  { %411 = vst [vmem:[%s608_s1 + $0x54] sm:$0x3] %v324_v54 }
  0x45   :  { %412 = vst [vmem:[%s608_s1 + $0x56] sm:$0x3] %v330_v55 }
  0x46   :  { %413 = vst [vmem:[%s608_s1 + $0x58] sm:$0x3] %v336_v56 }
  0x47   :  { %414 = vst [vmem:[%s608_s1 + $0x5a] sm:$0x3] %v342_v57 }
  0x48   :  { %415 = vst [vmem:[%s608_s1 + $0x5c] sm:$0x3] %v348_v58 }
  0x49   :  { %416 = vst [vmem:[%s608_s1 + $0x5e] sm:$0x3] %v354_v59 }

// kernel: custom-call.31
= control target key start
LH: loop header
LB: loop body
LE: loop exit
PB: predicated region body
PF: predicated region fallthrough
CT: control target
= control target key end

     0   :  { %5 = vsyncpa [#allocation6], 0  ;;  %s911_s0 = inlined_call_operand.vmem [shape: f32[2,3,3], index: 0, kind: input, shape index: {}]   ;;  %s912_s1 = inlined_call_operand.vmem [shape: f32[2,3,3], index: 1, kind: output, shape index: {0}]   ;;  %s913_s2 = inlined_call_operand.hbm [shape: s32[2,3], index: 2, kind: output, shape index: {1}]   ;;  %s914_s3 = inlined_call_operand.vmem [shape: s32[2,3], index: 3, kind: output, shape index: {2}]  }
   0x1   :  { %7 = vsyncpa [#allocation6 + $0x1], 0  ;;  %s735_s12 = smov 0   ;;  %s737_s13 = smov 0  }
   0x2   :  { %s739_s14 = smov 0   ;;  %s741_s15 = smov 0  }
   0x3 LB: > { %s756_s16 = sadd.s32 4294967295, %s708_s15   ;;  %s571_s17 = sadd.s32 4294967294, %s708_s15   ;;  %s708_s15 = sphi %s741_s15, %s920_s15   ;;  %s704_s14 = sphi %s739_s14, %s919_s14   ;;  %s700_s13 = sphi %s737_s13, %s918_s13   ;;  %s696_s12 = sphi %s735_s12, %s917_s12  }
   0x4   : > { %s760_s18 = sadd.s32 1, %s708_s15   ;;  %s17_s19 = sshrl.u32 %s708_s15, 3 }
   0x5   : > { %s18_s20 = sshrl.u32 %s760_s18, 3  ;;  %s22_s21 = sadd.s32 1, %s704_s14 }
   0x6   : > { %s19_s22 = ssub.s32 %s17_s19, %s18_s20  ;;  %p32_p0 = scmp.ne.s32.totalorder %s704_s14, %s700_s13 }
   0x7   : > { %p20_p1 = scmp.eq.s32.totalorder %s19_s22, 0  ;;  %p33_p2 = scmp.eq.s32.totalorder %s756_s16, 1 }
   0x8   : > { %p38_p3 = scmp.ne.s32.totalorder %s700_s13, %s696_s12  ;;  %p39_p4 = scmp.eq.s32.totalorder %s571_s17, 1 }
   0x9   : > { %s771_s23 = scalar_select %p20_p1, %s704_s14, %s22_s21  }
   0xa   : > { %p773_p5 = por %p33_p2, %p32_p0  ;;  %p777_p6 = por %p39_p4, %p38_p3 }
   0xb   : > { %p573_p7 = scmp.ge.s32.totalorder %s708_s15, 2 }
   0xc   : > { %s85_s26 = sand.u32 (!%p573_p7), 1, %s708_s15   ;;  %s575_s27 = sshll.u32 (!%p573_p7), %s708_s15, 2 }
   0xd   : > { %83 = sbr.rel (%p573_p7) target bundleno = 20 (0x14), region = 16  ;;  %s574_s28 = sshll.u32 (!%p573_p7), %s85_s26, 2 }
   0xe   : > { %s89_s4 = scalar_lea.vmem (!%p573_p7), %s911_s0, %s575_s27  ;;  %s87_s5 = scalar_lea.vmem (!%p573_p7), [#allocation1], %s574_s28 }
  0x12   : > { %v106_v0 = vld [vmem:[%s89_s4] sm:$0xf] }
  0x13   : > { %107 = vst [vmem:[%s87_s5] sm:$0xf] %v106_v0 }
  0x14 PF: > { %p576_p8 = scmp.ge.s32.totalorder %s708_s15, 1  ;;  %p124_p9 = scmp.lt.s32.totalorder %s708_s15, 3 }
  0x16   : > { %p125_p10 = pnand %p576_p8, %p124_p9 }
  0x18   : > { %128 = sbr.rel (%p125_p10) target bundleno = 484 (0x1e4), region = 50 }
  0x1d   : > { %s135_s6 = sand.u32 1, %s756_s16   ;;  %s146_s7 = sand.u32 1, %s700_s13   ;;  %v168_v1 = vlaneseq  ;;  %v714_v4 = vmov 0  }
  0x1e   : > { %s793_s8 = sshll.u32 %s135_s6, 2  ;;  %s797_s9 = sshll.u32 %s146_s7, 1 }
  0x1f   : > { %v800_v2 = vshrl.u32 %v168_v1, 7  ;;  %s137_s10 = scalar_lea.vmem [#allocation1], %s793_s8  ;;  %s163_s11 = sand.u32 7, %s756_s16  }
  0x20   : > { %v157_v3 = vld [vmem:[%s137_s10] sm:$0xf]  ;;  %s805_s17 = scalar_lea.vmem [#allocation4], %s163_s11  ;;  %s141_s19 = scalar_lea.vmem [#allocation3], %s793_s8 }
  0x21   : > { %158 = vst [vmem:[#allocation0] sm:$0xf] %v157_v3  ;;  %s148_s20 = scalar_lea.vmem [#allocation5], %s797_s9  ;;  %s154_s21 = scalar_lea.vmem [#allocation8], %s797_s9 }
  0x22   : > { %172 = vst [vmem:[#allocation9] sm:$0xff] %v800_v2  ;;  %s811_s22 = scalar_lea.vmem [#allocation7], %s163_s11  ;;  %s813_s26 = smov 0  }
  0x23   : > { %167 = vst [vmem:[%s805_s17] sm:$0x1] %v714_v4 }
  0x28   : > { %v161_v5 = vld [vmem:[#allocation0] sm:$0xff] }
  0x29   : > { %162 = vst [vmem:[#allocation2] sm:$0xff] %v161_v5 }
  0x2a LB: >> { %vm188_vm0 = vcmp.lt.s32.totalorder %v800_v2, 3  ;;  %v820_v8 = vstv %s712_s26  ;;  %s229_s27 = ssub.s32 128, %s712_s26  ;;  %v235_v39 = vand.u32 127, %v168_v1  ;;  %s241_s28 = scalar_lea.vmem [#allocation2], %s712_s26  ;;  %v238_v42 = vld [vmem:[%s805_s17] ss:$0 sm:$0xff]  ;;  %s712_s26 = sphi %s813_s26, %s178_s26  }
  0x2b   : >> { %vm187_vm1 = vcmp.ge.s32.totalorder %v800_v2, %v820_v8  ;;  %s247_s4 = scalar_lea.vmem [#allocation9], %s712_s26  ;;  %vm267_vm14 = vcmp.gt.s32.totalorder %v800_v2, %v820_v8  ;;  %s178_s26 = sadd.s32 1, %s712_s26  }
  0x2c   : >> { %vm189_vm3 = vmand %vm187_vm1, %vm188_vm0  ;;  %vm236_vm12 = vcmp.eq.s32.totalorder %v235_v39, %v820_v8  ;;  %v249_v44 = vld [vmem:[%s247_s4] ss:$0 sm:$0xff]  ;;  %p175_p11 = scmp.ge.s32.totalorder %s178_s26, 3  }
  0x2d   : > { %s409_s6 = sshrl.u32 (%p175_p11), %s756_s16, 3  ;;  %s415_s26 = sshll.u32 (%p175_p11), %s148_s20, 4  ;;  %s416_s26 = int_to_ptr.vmem [resolvable:$true] %s415_s26 }
  0x2e   : > { %s852_s10 = sshll.u32 (%p175_p11), %s409_s6, 1  ;;  %s363_s6 = scalar_lea.sflag (%p175_p11), [#allocation6], %s146_s7 }
  0x30   : >> { %v183_v6 = vld [vmem:[#allocation2] sm:$0xff]  ;;  %v243_v40 = vld [vmem:[%s241_s28] ss:$0 sm:$0xff] }
  0x31   : >> { %v184_v7 = vand.u32 2147483647, %v183_v6 }
  0x33   : >> { %vm581_vm2 = vcmp.gt.f32.partialorder %v184_v7, -inf }
  0x34   : >> { %vm191_vm4 = vmand %vm189_vm3, %vm581_vm2 }
  0x35   : >> { %v192_v9 = vsel %vm191_vm4, %v800_v2, %v820_v8  ;;  %v193_v10 = vsel %vm191_vm4, %v184_v7, -inf  ;;  %vm284_vm4 = vmand %vm267_vm14, %vm236_vm12 }
  0x36   : >> { %v194_v11 = vrot.slane %v193_v10, 1  ;;  %v195_v12 = vrot.slane %v192_v9, 1 }
  0x38   : >> { %vm196_vm5 = vcmp.ge.f32.partialorder %v194_v11, %v193_v10  ;;  %v199_v13 = vrot.slane %v194_v11, 1  ;;  %v200_v14 = vrot.slane %v195_v12, 1 }
  0x39   : >> { %v197_v15 = vsel %vm196_vm5, %v194_v11, %v193_v10  ;;  %v198_v16 = vsel %vm196_vm5, %v195_v12, %v192_v9  ;;  %vm259_vm5 = vcmp.gt.s32.totalorder %v235_v39, %v820_v8 }
  0x3a   : >> { %vm201_vm6 = vcmp.ge.f32.partialorder %v199_v13, %v197_v15  ;;  %v204_v17 = vrot.slane %v199_v13, 1  ;;  %v205_v18 = vrot.slane %v200_v14, 1 }
  0x3b   : >> { %v202_v19 = vsel %vm201_vm6, %v199_v13, %v197_v15  ;;  %v203_v20 = vsel %vm201_vm6, %v200_v14, %v198_v16 }
  0x3c   : >> { %vm206_vm7 = vcmp.ge.f32.partialorder %v204_v17, %v202_v19  ;;  %v209_v21 = vrot.slane %v204_v17, 1  ;;  %v210_v22 = vrot.slane %v205_v18, 1 }
  0x3d   : >> { %v207_v23 = vsel %vm206_vm7, %v204_v17, %v202_v19  ;;  %v208_v24 = vsel %vm206_vm7, %v205_v18, %v203_v20 }
  0x3e   : >> { %vm211_vm8 = vcmp.ge.f32.partialorder %v209_v21, %v207_v23  ;;  %v214_v25 = vrot.slane %v209_v21, 1  ;;  %v215_v26 = vrot.slane %v210_v22, 1 }
  0x3f   : >> { %v212_v27 = vsel %vm211_vm8, %v209_v21, %v207_v23  ;;  %v213_v28 = vsel %vm211_vm8, %v210_v22, %v208_v24 }
  0x40   : >> { %vm216_vm9 = vcmp.ge.f32.partialorder %v214_v25, %v212_v27  ;;  %v219_v29 = vrot.slane %v214_v25, 1  ;;  %v220_v30 = vrot.slane %v215_v26, 1 }
  0x41   : >> { %v217_v31 = vsel %vm216_vm9, %v214_v25, %v212_v27  ;;  %v218_v32 = vsel %vm216_vm9, %v215_v26, %v213_v28 }
  0x42   : >> { %vm221_vm10 = vcmp.ge.f32.partialorder %v219_v29, %v217_v31  ;;  %v224_v33 = vrot.slane %v219_v29, 1  ;;  %v225_v34 = vrot.slane %v220_v30, 1 }
  0x43   : >> { %v222_v35 = vsel %vm221_vm10, %v219_v29, %v217_v31  ;;  %v223_v36 = vsel %vm221_vm10, %v220_v30, %v218_v32 }
  0x44   : >> { %vm226_vm11 = vcmp.ge.f32.partialorder %v224_v33, %v222_v35 }
  0x45   : >> { %v228_v37 = vsel %vm226_vm11, %v225_v34, %v223_v36 }
  0x46   : >> { %230 = vrot.lane.b32.xlu0 %v228_v37, %s229_s27 }
  0xb8   : >> { %v231_v38 = vpop.permute.xlu0 %230 }
  0xb9   : >> { %590 = vpush %v231_v38 }
  0xea   : >> { %s591_s29 = spop %590 }
  0xeb   : >> { %v237_v41 = vstv %s591_s29  ;;  %s242_s30 = scalar_lea.vmem [#allocation2], %s591_s29  ;;  %s248_s5 = scalar_lea.vmem [#allocation9], %s591_s29 }
  0xec   : >> { %v244_v43 = vld [vmem:[%s242_s30] ss:$0 sm:$0xff]  ;;  %v239_v46 = vsel %vm236_vm12, %v237_v41, %v238_v42 }
  0xed   : >> { %v250_v45 = vld [vmem:[%s248_s5] ss:$0 sm:$0xff]  ;;  %245 = vst [vmem:[%s242_s30] sm:$0x1] %v243_v40  ;;  %vm253_vm13 = vcmp.ne.f32.partialorder %v244_v43, 0.0  ;;  %v260_v62 = vsel %vm259_vm5, %v244_v43, 0.0 }
  0xee   : >> { %246 = vst [vmem:[%s241_s28] sm:$0x1] %v244_v43  ;;  %vm254_vm15 = vmand %vm236_vm12, %vm253_vm13  ;;  %s413_s28 = scalar_lea.hbm (%p175_p11), %s913_s2, %s852_s10 }
  0xef   : >> { %251 = vst [vmem:[%s248_s5] sm:$0x1] %v249_v44  ;;  %v255_v47 = vsel %vm254_vm15, %v244_v43, 1.0  ;;  %s417_s29 = sshll.u32 (%p175_p11), %s413_s28, 4  ;;  %s418_s29 = int_to_ptr.hbm [resolvable:$true] %s417_s29 }
  0xf0   : >> { %252 = vst [vmem:[%s247_s4] sm:$0x1] %v250_v45  ;;  %v268_v48 = vsel %vm267_vm14, %v255_v47, 1.0  ;;  %s656_s11 = sshra.s32 (%p175_p11), %s418_s29, 4  ;;  %s657_s11 = int_to_ptr.hbm [resolvable:$true] %s656_s11 }
  0xf1   : >> { %640 = vrcp.f32 %v268_v48  ;;  %240 = vst [vmem:[%s805_s17] sm:$0x1] %v239_v46  ;;  %v280_v52 = vand.u32 2147483648, %v268_v48  ;;  %v278_v54 = vand.u32 2147483647, %v268_v48  ;;  %vm274_vm1 = vweird.f32 %v268_v48  ;;  %s585_s17 = sshll.u32 (%p175_p11), %s756_s16, 2  ;;  %s658_s16 = scalar_lea.hbm (%p175_p11), %s657_s11, 2 }
  0xf2   : > { %s372_s5 = scalar_lea.vmem (%p175_p11), %s912_s1, %s585_s17  ;;  %p659_p12 = scmp.ne.s32.totalorder (%p175_p11), %s657_s11, %s658_s16 }
  0xf3   : >> { %v281_v56 = vor.u32 1.1754944e-38, %v280_v52  ;;  %vm279_vm3 = vcmp.eq.f32.partialorder %v278_v54, 8.507059e+37  ;;  %s662_s17 = scalar_lea.hbm (%p175_p11), %s913_s2, 2  ;;  %p663_p1 = scmp.lt.s32.totalorder (%p175_p11), %s657_s11, %s913_s2 }
  0xf4   : > { %p660_p13 = pnand (%p175_p11), %p659_p12, %p773_p5  ;;  %p664_p2 = scmp.lt.s32.totalorder (%p175_p11), %s662_s17, %s658_s16 }
  0xf5   : >> { %v264_v58 = vld [vmem:[#allocation2] sm:$0xff] }
  0xf6   : > { %p661_p0 = pneg (%p175_p11), %p660_p13  ;;  %p665_p3 = por (%p175_p11), %p664_p2, %p663_p1 }
  0xf7   : >> { %v641_v49 = vpop.eup %640  ;;  %v291_v4 = vld [vmem:[#allocation9] sm:$0xff] (%p175_p11) }
  0xf8   : >> { %v270_v50 = vmul.f32 %v641_v49, %v268_v48  ;;  %vm275_vm0 = vweird.f32 %v641_v49  ;;  %v348_v1 = vld [vmem:[#allocation4] sm:$0x3] (%p175_p11)  ;;  %p666_p4 = pnand (%p175_p11), %p665_p3, %p661_p0 }
  0xf9   : >> { %vm276_vm2 = vmor %vm274_vm1, %vm275_vm0  ;;  %351 = vst [vmem:[%s148_s20] sm:$0x3] (%p175_p11), %v348_v1 }
  0xfa   : >> { %v271_v51 = vsub.f32 1.0, %v270_v50 }
  0xfc   : >> { %v272_v53 = vmul.f32 %v641_v49, %v271_v51 }
  0xfe   : >> { %v273_v55 = vadd.f32 %v641_v49, %v272_v53 }
 0x100   : >> { %v277_v57 = vsel %vm276_vm2, %v641_v49, %v273_v55 }
 0x101   : >> { %v282_v59 = vsel %vm279_vm3, %v281_v56, %v277_v57 }
 0x102   : >> { %v283_v60 = vmul.f32 %v282_v59, %v264_v58 }
 0x104   : >> { %v285_v61 = vsel %vm284_vm4, %v283_v60, 0.0 }
 0x105   : >> { %286 = vadd.xlane.f32.xlu0 %v285_v61 }
 0x12e   : > { %307 = vxpose.xlu0.b32.start.end [1/1] (short) (narrow) (%p175_p11), %v291_v4, 8 }
 0x178   : >> { %v287_v63 = vpop.xlane.xlu0 %286 }
 0x179   : >> { %v288_v0 = vmul.f32 %v287_v63, %v260_v62  ;;  %177 = sbr.rel (!%p175_p11) target bundleno = 42 (0x2a), region = 202 }
 0x17b   : >> { %v289_v3 = vsub.f32 %v283_v60, %v288_v0 }
 0x17d   : >> { %290 = vst [vmem:[#allocation2] sm:$0xff] %v289_v3 }
 0x184   : > { %v342_v5 = vld [vmem:[#allocation2] sm:$0xf] }
 0x185   : > { %345 = vst [vmem:[%s141_s19] sm:$0xf] %v342_v5 }
 0x18c   : > { %v389_v2 = vld [vmem:[%s141_s19] sm:$0xf] }
 0x18d   : > { %390 = vst [vmem:[%s372_s5] sm:$0xf] %v389_v2 }
 0x18e   : > { %669 = shalt.err (!%p666_p4)
}
 0x18f   : > { %592 = dma.vmem_to_hbm [thread:$0]  (%p773_p5), %s416_s26, 32, %s418_s29, %s363_s6  }
 0x190   : > { %s426_s19 = scalar_lea.vmem (%p773_p5), %s914_s3, %s852_s10 }
 0x1d2   : > { %v323_v6 = vpop.trf.xlu0 }
 0x1d3   : > { %339 = vst [vmem:[%s811_s22] sm:$0x1] %v323_v6 }
 0x1d7   : > { %423 = sbr.rel (!%p773_p5) target bundleno = 484 (0x1e4), region = 96 }
 0x1da   : > { %v354_v7 = vld [vmem:[#allocation7] sm:$0x3] }
 0x1db   : > { %357 = vst [vmem:[%s154_s21] sm:$0x3] %v354_v7 }
 0x1e2   : > { %v443_v8 = vld [vmem:[%s154_s21] sm:$0x3] }
 0x1e3   : > { %444 = vst [vmem:[%s426_s19] sm:$0x3] %v443_v8 }
 0x1e4 PF: > { %s472_s20 = sand.u32 1, %s696_s12   ;;  %p595_p8 = pnand %p573_p7, %p777_p6 }
 0x1e5   : > { %s473_s24 = scalar_lea.sflag [#allocation6], %s472_s20 }
 0x1e6   : > { %p596_p9 = pneg %p595_p8 }
 0x1e8   : > { %691 = dma.done.wait (%p596_p9), %s473_s24, 32  }
 0x1e9   : > { %693 = vsyncadd (%p596_p9), %s473_s24, 4294967264  ;;  %p10_p5 = scmp.ge.s32.totalorder %s760_s18, 4   ;;  %s917_s12 = smov %s700_s13 }
 0x1ea   : > { %s918_s13 = smov %s704_s14  ;;  %s919_s14 = smov %s771_s23 }
 0x1eb   : > { %s920_s15 = smov %s760_s18  ;;  %12 = sbr.rel (!%p10_p5) target bundleno = 3 (0x3), region = 213 }
 0x1f0   :  { %486 = vsyncpa [#allocation6], 1 }
 0x1f1   :  { %488 = vsyncpa [#allocation6 + $0x1], 1 }

// kernel: custom-call.33
= control target key start
LH: loop header
LB: loop body
LE: loop exit
PB: predicated region body
PF: predicated region fallthrough
CT: control target
= control target key end

     0   :  { %s373_s6 = smov 0   ;;  %s375_s7 = smov 0   ;;  %s422_s0 = inlined_call_operand.vmem [shape: f32[2,1,3,3], index: 0, kind: input, shape index: {}]   ;;  %s423_s1 = inlined_call_operand.vmem [shape: f32[2,1,3,3], index: 1, kind: output, shape index: {}]  }
   0x1   :  { %s377_s8 = smov 0  }
   0x2 LB: > { %s299_s9 = sadd.s32 4294967295, %s360_s8   ;;  %s33_s10 = sadd.s32 1, %s356_s7  ;;  %s360_s8 = sphi %s377_s8, %s7_s8   ;;  %s356_s7 = sphi %s375_s7, %s425_s7   ;;  %s352_s6 = sphi %s373_s6, %s424_s6  }
   0x3   : > { %p35_p0 = scmp.ge.s32.totalorder %s33_s10, 2  ;;  %p301_p1 = scmp.ge.s32.totalorder %s360_s8, 2 }
   0x4   : > { %s49_s11 = sand.u32 (!%p301_p1), 1, %s360_s8   ;;  %s303_s12 = sshll.u32 (!%p301_p1), %s356_s7, 2 }
   0x5   : > { %s427_s10 = smov (%p35_p0, %s33_s10), 0  ;;  %47 = sbr.rel (%p301_p1) target bundleno = 12 (0xc), region = 16 }
   0x6   : > { %s302_s13 = sshll.u32 (!%p301_p1), %s49_s11, 2  ;;  %s56_s16 = scalar_lea.vmem (!%p301_p1), %s422_s0, %s303_s12 }
   0x7   : > { %s51_s17 = scalar_lea.vmem (!%p301_p1), [#allocation1], %s302_s13 }
   0xa   : > { %v73_v0 = vld [vmem:[%s56_s16] sm:$0xf] }
   0xb   : > { %74 = vst [vmem:[%s51_s17] sm:$0xf] %v73_v0 }
   0xc PF: > { %p304_p2 = scmp.ge.s32.totalorder %s360_s8, 1  ;;  %p91_p3 = scmp.lt.s32.totalorder %s360_s8, 3 }
   0xe   : > { %p92_p4 = pnand %p304_p2, %p91_p3 }
  0x10   : > { %95 = sbr.rel (%p92_p4) target bundleno = 437 (0x1b5), region = 50 }
  0x15   : > { %s400_s18 = sand.u32 1, %s299_s9   ;;  %v113_v1 = vlaneseq  ;;  %v362_v20 = vmov -1.0   ;;  %s308_s22 = sshll.u32 %s352_s6, 2 }
  0x16   : > { %s305_s19 = sshll.u32 %s400_s18, 2  ;;  %s206_s25 = scalar_lea.vmem %s423_s1, %s308_s22 }
  0x17   : > { %s104_s20 = scalar_lea.vmem [#allocation1], %s305_s19  ;;  %v114_v3 = vand.u32 127, %v113_v1  ;;  %v117_v4 = vshrl.u32 %v113_v1, 7  ;;  %s108_s21 = scalar_lea.vmem [#allocation3], %s305_s19 }
  0x18   : > { %v111_v2 = vld [vmem:[%s104_s20] sm:$0xf] }
  0x19   : > { %112 = vst [vmem:[#allocation0] sm:$0xf] %v111_v2  ;;  %vm119_vm0 = vcmp.eq.s32.totalorder %v117_v4, %v114_v3  ;;  %vm115_vm1 = vcmp.lt.s32.totalorder %v114_v3, 3  ;;  %vm124_vm2 = vcmp.ge.s32.totalorder %v117_v4, %v114_v3  ;;  %vm151_vm8 = vcmp.eq.s32.totalorder %v114_v3, 0 }
  0x1a   : > { %vm125_vm3 = vmand %vm124_vm2, %vm115_vm1  ;;  %vm148_vm9 = vcmp.eq.s32.totalorder %v114_v3, %v117_v4  ;;  %v152_v21 = vsel %vm151_vm8, 1.0, %v362_v20  ;;  %vm159_vm10 = vcmp.eq.s32.totalorder %v114_v3, 1  ;;  %vm169_vm11 = vcmp.eq.s32.totalorder %v114_v3, 2 }
  0x1b   : > { %v153_v22 = vsel %vm148_vm9, %v152_v21, 0.0 }
  0x20   : > { %v120_v5 = vld [vmem:[#allocation0] sm:$0xff] }
  0x21   : > { %v121_v6 = vsel %vm119_vm0, %v120_v5, 0.0  ;;  %v126_v15 = vsel %vm125_vm3, %v120_v5, 0.0 }
  0x22   : > { %122 = vadd.xlane.f32.xlu0 %v121_v6 }
  0x95   : > { %v123_v7 = vpop.xlane.xlu0 %122 }
  0x96   : > { %336 = vrcp.f32 %v123_v7  ;;  %v138_v11 = vand.u32 2147483648, %v123_v7  ;;  %v136_v13 = vand.u32 2147483647, %v123_v7  ;;  %vm132_vm5 = vweird.f32 %v123_v7 }
  0x98   : > { %v139_v16 = vor.u32 1.1754944e-38, %v138_v11  ;;  %vm137_vm7 = vcmp.eq.f32.partialorder %v136_v13, 8.507059e+37 }
  0x9c   : > { %v337_v8 = vpop.eup %336 }
  0x9d   : > { %v128_v9 = vmul.f32 %v337_v8, %v123_v7  ;;  %vm133_vm4 = vweird.f32 %v337_v8 }
  0x9e   : > { %vm134_vm6 = vmor %vm132_vm5, %vm133_vm4 }
  0x9f   : > { %v129_v10 = vsub.f32 1.0, %v128_v9 }
  0xa1   : > { %v130_v12 = vmul.f32 %v337_v8, %v129_v10 }
  0xa3   : > { %v131_v14 = vadd.f32 %v337_v8, %v130_v12 }
  0xa5   : > { %v135_v17 = vsel %vm134_vm6, %v337_v8, %v131_v14 }
  0xa6   : > { %v140_v18 = vsel %vm137_vm7, %v139_v16, %v135_v17 }
  0xa7   : > { %v141_v19 = vmul.f32 %v140_v18, %v126_v15 }
  0xa9   : > { %142 = vst [vmem:[#allocation4] sm:$0xff] %v141_v19 }
  0xb0   : > { %v155_v23 = vld [vmem:[#allocation4 + $0x1] ss:$0 sm:$0xff]  ;;  %v165_v26 = vld [vmem:[#allocation4 + $0x2] ss:$0 sm:$0xff] }
  0xb1   : > { %v156_v24 = vxor.u32 2147483648, %v155_v23  ;;  %v166_v28 = vxor.u32 2147483648, %v165_v26 }
  0xb3   : > { %v160_v25 = vmul.f32 %v156_v24, %v153_v22 }
  0xb5   : > { %161 = vadd.xlane.f32.xlu0 %v160_v25 }
 0x128   : > { %v162_v27 = vpop.xlane.xlu0 %161 }
 0x129   : > { %v163_v29 = vsel %vm159_vm10, %v162_v27, %v153_v22 }
 0x12a   : > { %v170_v30 = vmul.f32 %v166_v28, %v163_v29 }
 0x12c   : > { %171 = vadd.xlane.f32.xlu1 %v170_v30 }
 0x19f   : > { %v172_v31 = vpop.xlane.xlu1 %171 }
 0x1a0   : > { %v173_v32 = vsel %vm169_vm11, %v172_v31, %v163_v29 }
 0x1a1   : > { %v188_v33 = vmul.f32 %v173_v32, %v140_v18 }
 0x1a3   : > { %v190_v34 = vsel %vm132_vm5, %v173_v32, %v188_v33 }
 0x1a4   : > { %191 = vst [vmem:[#allocation2] sm:$0xff] %v190_v34 }
 0x1ab   : > { %v194_v35 = vld [vmem:[#allocation2] sm:$0xf] }
 0x1ac   : > { %197 = vst [vmem:[%s108_s21] sm:$0xf] %v194_v35 }
 0x1b3   : > { %v223_v36 = vld [vmem:[%s108_s21] sm:$0xf] }
 0x1b4   : > { %224 = vst [vmem:[%s206_s25] sm:$0xf] %v223_v36 }
 0x1b5 PF: > { %s7_s8 = sadd.s32 1, %s360_s8   ;;  %s424_s6 = smov %s356_s7 }
 0x1b6   : > { %p4_p5 = scmp.ge.s32.totalorder %s7_s8, 4   ;;  %s425_s7 = smov %s427_s10 }
 0x1b8   :  { %6 = sbr.rel (!%p4_p5) target bundleno = 2 (0x2), region = 112 }

// kernel: custom-call.32
= control target key start
LH: loop header
LB: loop body
LE: loop exit
PB: predicated region body
PF: predicated region fallthrough
CT: control target
= control target key end

     0   :  { %s372_s6 = smov 0   ;;  %s374_s7 = smov 0   ;;  %s421_s0 = inlined_call_operand.vmem [shape: f32[2,1,3,3], index: 0, kind: input, shape index: {}]   ;;  %s422_s1 = inlined_call_operand.vmem [shape: f32[2,1,3,3], index: 1, kind: output, shape index: {}]  }
   0x1   :  { %s376_s8 = smov 0  }
   0x2 LB: > { %s298_s9 = sadd.s32 4294967295, %s359_s8   ;;  %s33_s10 = sadd.s32 1, %s355_s7  ;;  %s359_s8 = sphi %s376_s8, %s7_s8   ;;  %s355_s7 = sphi %s374_s7, %s424_s7   ;;  %s351_s6 = sphi %s372_s6, %s423_s6  }
   0x3   : > { %p35_p0 = scmp.ge.s32.totalorder %s33_s10, 2  ;;  %p300_p1 = scmp.ge.s32.totalorder %s359_s8, 2 }
   0x4   : > { %s49_s11 = sand.u32 (!%p300_p1), 1, %s359_s8   ;;  %s302_s12 = sshll.u32 (!%p300_p1), %s355_s7, 2 }
   0x5   : > { %s426_s10 = smov (%p35_p0, %s33_s10), 0  ;;  %47 = sbr.rel (%p300_p1) target bundleno = 12 (0xc), region = 16 }
   0x6   : > { %s301_s13 = sshll.u32 (!%p300_p1), %s49_s11, 2  ;;  %s56_s16 = scalar_lea.vmem (!%p300_p1), %s421_s0, %s302_s12 }
   0x7   : > { %s51_s17 = scalar_lea.vmem (!%p300_p1), [#allocation1], %s301_s13 }
   0xa   : > { %v73_v0 = vld [vmem:[%s56_s16] sm:$0xf] }
   0xb   : > { %74 = vst [vmem:[%s51_s17] sm:$0xf] %v73_v0 }
   0xc PF: > { %p303_p2 = scmp.ge.s32.totalorder %s359_s8, 1  ;;  %p91_p3 = scmp.lt.s32.totalorder %s359_s8, 3 }
   0xe   : > { %p92_p4 = pnand %p303_p2, %p91_p3 }
  0x10   : > { %95 = sbr.rel (%p92_p4) target bundleno = 437 (0x1b5), region = 50 }
  0x15   : > { %s399_s18 = sand.u32 1, %s298_s9   ;;  %v113_v1 = vlaneseq  ;;  %v361_v20 = vmov -1.0   ;;  %s307_s22 = sshll.u32 %s351_s6, 2 }
  0x16   : > { %s304_s19 = sshll.u32 %s399_s18, 2  ;;  %s205_s25 = scalar_lea.vmem %s422_s1, %s307_s22 }
  0x17   : > { %s104_s20 = scalar_lea.vmem [#allocation1], %s304_s19  ;;  %v114_v3 = vand.u32 127, %v113_v1  ;;  %v117_v4 = vshrl.u32 %v113_v1, 7  ;;  %s108_s21 = scalar_lea.vmem [#allocation3], %s304_s19 }
  0x18   : > { %v111_v2 = vld [vmem:[%s104_s20] sm:$0xf] }
  0x19   : > { %112 = vst [vmem:[#allocation0] sm:$0xf] %v111_v2  ;;  %vm119_vm0 = vcmp.eq.s32.totalorder %v117_v4, %v114_v3  ;;  %vm115_vm1 = vcmp.lt.s32.totalorder %v114_v3, 3  ;;  %vm124_vm2 = vcmp.le.s32.totalorder %v117_v4, %v114_v3  ;;  %vm151_vm8 = vcmp.eq.s32.totalorder %v114_v3, 2 }
  0x1a   : > { %vm125_vm3 = vmand %vm124_vm2, %vm115_vm1  ;;  %vm148_vm9 = vcmp.eq.s32.totalorder %v114_v3, %v117_v4  ;;  %v152_v21 = vsel %vm151_vm8, 1.0, %v361_v20  ;;  %vm159_vm10 = vcmp.eq.s32.totalorder %v114_v3, 1  ;;  %vm168_vm11 = vcmp.eq.s32.totalorder %v114_v3, 0 }
  0x1b   : > { %v153_v22 = vsel %vm148_vm9, %v152_v21, 0.0 }
  0x20   : > { %v120_v5 = vld [vmem:[#allocation0] sm:$0xff] }
  0x21   : > { %v121_v6 = vsel %vm119_vm0, %v120_v5, 0.0  ;;  %v126_v15 = vsel %vm125_vm3, %v120_v5, 0.0 }
  0x22   : > { %122 = vadd.xlane.f32.xlu0 %v121_v6 }
  0x95   : > { %v123_v7 = vpop.xlane.xlu0 %122 }
  0x96   : > { %335 = vrcp.f32 %v123_v7  ;;  %v138_v11 = vand.u32 2147483648, %v123_v7  ;;  %v136_v13 = vand.u32 2147483647, %v123_v7  ;;  %vm132_vm5 = vweird.f32 %v123_v7 }
  0x98   : > { %v139_v16 = vor.u32 1.1754944e-38, %v138_v11  ;;  %vm137_vm7 = vcmp.eq.f32.partialorder %v136_v13, 8.507059e+37 }
  0x9c   : > { %v336_v8 = vpop.eup %335 }
  0x9d   : > { %v128_v9 = vmul.f32 %v336_v8, %v123_v7  ;;  %vm133_vm4 = vweird.f32 %v336_v8 }
  0x9e   : > { %vm134_vm6 = vmor %vm132_vm5, %vm133_vm4 }
  0x9f   : > { %v129_v10 = vsub.f32 1.0, %v128_v9 }
  0xa1   : > { %v130_v12 = vmul.f32 %v336_v8, %v129_v10 }
  0xa3   : > { %v131_v14 = vadd.f32 %v336_v8, %v130_v12 }
  0xa5   : > { %v135_v17 = vsel %vm134_vm6, %v336_v8, %v131_v14 }
  0xa6   : > { %v140_v18 = vsel %vm137_vm7, %v139_v16, %v135_v17 }
  0xa7   : > { %v141_v19 = vmul.f32 %v140_v18, %v126_v15 }
  0xa9   : > { %142 = vst [vmem:[#allocation4] sm:$0xff] %v141_v19 }
  0xb0   : > { %v155_v23 = vld [vmem:[#allocation4 + $0x1] ss:$0 sm:$0xff]  ;;  %v164_v26 = vld [vmem:[#allocation4] ss:$0 sm:$0xff] }
  0xb1   : > { %v156_v24 = vxor.u32 2147483648, %v155_v23  ;;  %v165_v28 = vxor.u32 2147483648, %v164_v26 }
  0xb3   : > { %v160_v25 = vmul.f32 %v156_v24, %v153_v22 }
  0xb5   : > { %161 = vadd.xlane.f32.xlu0 %v160_v25 }
 0x128   : > { %v162_v27 = vpop.xlane.xlu0 %161 }
 0x129   : > { %v163_v29 = vsel %vm159_vm10, %v162_v27, %v153_v22 }
 0x12a   : > { %v169_v30 = vmul.f32 %v165_v28, %v163_v29 }
 0x12c   : > { %170 = vadd.xlane.f32.xlu1 %v169_v30 }
 0x19f   : > { %v171_v31 = vpop.xlane.xlu1 %170 }
 0x1a0   : > { %v172_v32 = vsel %vm168_vm11, %v171_v31, %v163_v29 }
 0x1a1   : > { %v187_v33 = vmul.f32 %v172_v32, %v140_v18 }
 0x1a3   : > { %v189_v34 = vsel %vm132_vm5, %v172_v32, %v187_v33 }
 0x1a4   : > { %190 = vst [vmem:[#allocation2] sm:$0xff] %v189_v34 }
 0x1ab   : > { %v193_v35 = vld [vmem:[#allocation2] sm:$0xf] }
 0x1ac   : > { %196 = vst [vmem:[%s108_s21] sm:$0xf] %v193_v35 }
 0x1b3   : > { %v222_v36 = vld [vmem:[%s108_s21] sm:$0xf] }
 0x1b4   : > { %223 = vst [vmem:[%s205_s25] sm:$0xf] %v222_v36 }
 0x1b5 PF: > { %s7_s8 = sadd.s32 1, %s359_s8   ;;  %s423_s6 = smov %s355_s7 }
 0x1b6   : > { %p4_p5 = scmp.ge.s32.totalorder %s7_s8, 4   ;;  %s424_s7 = smov %s426_s10 }
 0x1b8   :  { %6 = sbr.rel (!%p4_p5) target bundleno = 2 (0x2), region = 111 }

// kernel: unsup_loss_07.3
= control target key start
LH: loop header
LB: loop body
LE: loop exit
PB: predicated region body
PF: predicated region fallthrough
CT: control target
= control target key end

     0   :  { %11 = vsyncpa [#allocation3], 0  ;;  %s699_s18 = smov 0   ;;  %s822_s0 = inlined_call_operand.vmem [shape: f32[2], index: 0, kind: input, shape index: {}]   ;;  %s823_s1 = inlined_call_operand.vmem [shape: f32[2,2,1,16,128], index: 1, kind: input, shape index: {}]   ;;  %s824_s2 = inlined_call_operand.vmem [shape: f32[2,1,16,128], index: 2, kind: input, shape index: {}]   ;;  %s825_s3 = inlined_call_operand.vmem [shape: f32[2,3,16,128], index: 3, kind: input, shape index: {}]   ;;  %s826_s4 = inlined_call_operand.vmem [shape: f32[2,1,1], index: 4, kind: output, shape index: {0}]   ;;  %s827_s5 = inlined_call_operand.vmem [shape: f32[2,1,1], index: 5, kind: output, shape index: {1}]  }
   0x1 LB: > { %s580_s19 = sadd.s32 4294967295, %s663_s18   ;;  %p582_p0 = scmp.ge.s32.totalorder %s663_s18, 1  ;;  %s663_s18 = sphi %s699_s18, %s17_s18  }
   0x2   : > { %p173_p1 = scmp.lt.s32.totalorder %s663_s18, 3  ;;  %s185_s22 = sshll.u32 %s822_s0, 4  ;;  %s186_s22 = int_to_ptr.vmem [resolvable:$true] %s185_s22 }
   0x3   : > { %p614_p3 = scmp.eq.s32.totalorder %s580_s19, 0  ;;  %s665_s23 = smov [#allocation2]  }
   0x4   : > { %p174_p2 = pnand %p582_p0, %p173_p1 }
   0x6   : > { %p610_p4 = pneg %p174_p2  ;;  %222 = sbr.rel (%p174_p2) target bundleno = 357 (0x165), region = 36 }
   0x8   : > { %p611_p5 = pnand %p614_p3, %p610_p4 }
   0xa   : > { %613 = dma.vmem_to_smem (!%p611_p5), %s186_s22, 16, %s665_s23, [#allocation3]  }
   0xb   : > { %658 = dma.done.wait (%p614_p3), [#allocation3], 16  }
   0xc   : > { %660 = vsyncadd (%p614_p3), [#allocation3], 4294967280 }
   0xd   : > { %229 = sfence }
   0xe   : > { %p263_p6 = scmp.lt.s32.totalorder %s580_s19, 1  ;;  %s666_s28 = smov 127   ;;  %v336_v8 = vlaneseq  ;;  %v667_v10 = vmov 3.0   ;;  %vm334_vm6 = vcmask 0  }
   0xf   : > { %628 = vrcp.f32 %v667_v10  ;;  %s761_s9 = sld [smem:[#allocation2]]  ;;  %v668_v10 = vmov 0.0  }
  0x10   : > { %s829_s19 = smov (!%p263_p6, %s580_s19), 1  ;;  %v745_v9 = vshrl.u32 %v336_v8, 7  ;;  %s766_s10 = sld [smem:[#allocation2 + $0x1]] }
  0x11   : > { %s601_s24 = smul.u32 48, %s829_s19  ;;  %s600_s29 = sshll.u32 %s829_s19, 4 }
  0x12   : > { %s272_s7 = scalar_lea.vmem %s824_s2, %s600_s29  ;;  %vm358_vm0 = vcmp.lt.s32.totalorder %v745_v9, 7  ;;  %s599_s8 = sshll.u32 %s829_s19, 5 }
  0x13   : > { %s277_s27 = scalar_lea.vmem %s825_s3, %s601_s24  ;;  %v738_v6 = vld [vmem:[%s272_s7] sm:$0xff]  ;;  %v740_v7 = vld [vmem:[%s272_s7 + $0x8] sm:$0xff]  ;;  %s267_s13 = scalar_lea.vmem %s823_s1, %s599_s8 }
  0x14   : > { %v716_v0 = vld [vmem:[%s277_s27 + $0x10] sm:$0xff]  ;;  %v718_v1 = vld [vmem:[%s277_s27] sm:$0xff]  ;;  %v725_v3 = vld [vmem:[%s277_s27 + $0x18] sm:$0xff]  ;;  %s280_s17 = scalar_lea.vmem %s826_s4, %s829_s19  ;;  %s283_s23 = scalar_lea.vmem %s827_s5, %s829_s19 }
  0x15   : > { %367 = vrot.lane.b32.xlu1 %v716_v0, %s666_s28  ;;  %363 = vrot.lane.b32.xlu0 %v718_v1, %s666_s28  ;;  %v722_v2 = vld [vmem:[%s277_s27 + $0x20] sm:$0xff]  ;;  %v727_v4 = vld [vmem:[%s277_s27 + $0x8] sm:$0xff]  ;;  %v407_v11 = vrot.slane %v716_v0, 1  ;;  %v410_v12 = vrot.slane %v725_v3, 1  ;;  %v406_v13 = vrot.slane %v718_v1, 1  ;;  %v754_v16 = vpop.eup %628 }
  0x16   : > { %371 = vrot.lane.b32.xlu2 %v722_v2, %s666_s28  ;;  %v729_v5 = vld [vmem:[%s277_s27 + $0x28] sm:$0xff]  ;;  %v409_v15 = vrot.slane %v727_v4, 1  ;;  %v408_v20 = vrot.slane %v722_v2, 1  ;;  %v392_v23 = vmul.f32 3.0, %v754_v16  ;;  %v284_v30 = vld [vmem:[%s267_s13] sm:$0xff]  ;;  %v286_v32 = vld [vmem:[%s267_s13 + $0x10] sm:$0xff]  ;;  %vm396_vm2 = vweird.f32 %v754_v16 }
  0x17   : > { %v413_v14 = vsel %vm358_vm0, %v407_v11, %v410_v12  ;;  %v416_v17 = vsel %vm358_vm0, %v410_v12, %v407_v11  ;;  %v411_v21 = vrot.slane %v729_v5, 1  ;;  %v285_v31 = vld [vmem:[%s267_s13 + $0x8] sm:$0xff]  ;;  %v287_v34 = vld [vmem:[%s267_s13 + $0x18] sm:$0xff]  ;;  %v297_v35 = vsub.f32 1.0, %v284_v30 }
  0x18   : > { %v415_v18 = vsel %vm358_vm0, %v409_v15, %v406_v13  ;;  %v420_v19 = vsub.f32 %v413_v14, %v716_v0  ;;  %v412_v22 = vsel %vm358_vm0, %v406_v13, %v409_v15  ;;  %v421_v24 = vsub.f32 %v416_v17, %v725_v3 }
  0x19   : > { %v419_v25 = vsub.f32 %v415_v18, %v727_v4  ;;  %v417_v26 = vsel %vm358_vm0, %v411_v21, %v408_v20  ;;  %v418_v28 = vsub.f32 %v412_v22, %v718_v1  ;;  %v414_v29 = vsel %vm358_vm0, %v408_v20, %v411_v21 }
  0x1a   : > { %v426_v27 = vand.u32 2147483647, %v420_v19  ;;  %v393_v33 = vsub.f32 1.0, %v392_v23  ;;  %v298_v36 = vsub.f32 1.0, %v285_v31  ;;  %v305_v37 = vsub.f32 1.0, %v286_v32 }
  0x1b   : > { %v427_v38 = vand.u32 2147483647, %v421_v24  ;;  %v425_v39 = vand.u32 2147483647, %v419_v25  ;;  %v423_v40 = vsub.f32 %v417_v26, %v729_v5  ;;  %v306_v41 = vsub.f32 1.0, %v287_v34 }
  0x1c   : > { %v422_v42 = vsub.f32 %v414_v29, %v722_v2  ;;  %v299_v43 = vmul.f32 10000.0, %v297_v35  ;;  %v300_v44 = vmul.f32 10000.0, %v298_v36  ;;  %v307_v45 = vmul.f32 10000.0, %v305_v37 }
  0x1d   : > { %369 = vrot.lane.b32.xlu1 %v725_v3, %s666_s28  ;;  %365 = vrot.lane.b32.xlu0 %v727_v4, %s666_s28  ;;  %v424_v46 = vand.u32 2147483647, %v418_v28  ;;  %v301_v47 = vstv %s761_s9  ;;  %v308_v48 = vmul.f32 10000.0, %v306_v41  ;;  %v309_v49 = vstv %s766_s10 }
  0x1e   : > { %373 = vrot.lane.b32.xlu2 %v729_v5, %s666_s28  ;;  %v394_v50 = vmul.f32 %v754_v16, %v393_v33  ;;  %v302_v51 = vadd.f32 %v301_v47, %v299_v43  ;;  %v303_v52 = vadd.f32 %v301_v47, %v300_v44  ;;  %v310_v53 = vadd.f32 %v309_v49, %v307_v45 }
  0x1f   : > { %v432_v54 = vadd.f32 %v427_v38, %v425_v39  ;;  %v429_v55 = vand.u32 2147483647, %v423_v40  ;;  %v311_v57 = vadd.f32 %v309_v49, %v308_v48  ;;  %v428_v59 = vand.u32 2147483647, %v422_v42 }
  0x20   : > { %v312_v58 = vmin.f32 %v302_v51, %v310_v53  ;;  %v430_v61 = vadd.f32 %v426_v27, %v424_v46  ;;  %v395_v62 = vadd.f32 %v754_v16, %v394_v50  ;;  %v356_v41 = vrot.slane %v738_v6, 1 }
  0x21   : > { %v313_v60 = vmin.f32 %v303_v52, %v311_v57  ;;  %v433_v63 = vadd.f32 %v432_v54, %v429_v55  ;;  %v357_v42 = vrot.slane %v740_v7, 1 }
  0x22   : > { %vm314_vm1 = vcmp.lt.f32.partialorder %v312_v58, 10000.0  ;;  %v397_v19 = vsel %vm396_vm2, %v754_v16, %v395_v62  ;;  %v431_v20 = vadd.f32 %v430_v61, %v428_v59  ;;  %v338_v59 = vadd.s32 8, %v745_v9 }
  0x23   : > { %vm315_vm3 = vcmp.lt.f32.partialorder %v313_v60, 10000.0  ;;  %v593_v11 = vsel %vm314_vm1, 1.0, %v668_v10  ;;  %v435_v23 = vmul.f32 %v433_v63, %v397_v19  ;;  %v360_v45 = vsel %vm358_vm0, %v357_v42, %v356_v41 }
  0x24   : > { %v594_v12 = vsel %vm315_vm3, 1.0, %v668_v10  ;;  %v320_v13 = vmul.f32 %v593_v11, %v312_v58  ;;  %v434_v29 = vmul.f32 %v431_v20, %v397_v19  ;;  %v359_v51 = vsel %vm358_vm0, %v356_v41, %v357_v42 }
  0x25   : > { %350 = vrot.lane.b32.xlu0 %v738_v6, %s666_s28  ;;  %352 = vrot.lane.b32.xlu1 %v740_v7, %s666_s28  ;;  %v321_v15 = vmul.f32 %v594_v12, %v313_v60  ;;  %v361_v55 = vsub.f32 %v359_v51, %v738_v6  ;;  %v340_v60 = vand.u32 127, %v336_v8  ;;  %vm345_vm5 = vcmp.lt.s32.totalorder %v338_v59, 15 }
  0x26   : > { %v436_v33 = vsub.f32 0.0, %v434_v29 }
  0x27   : > { %v322_v24 = vadd.f32 %v321_v15, %v320_v13  ;;  %vm341_vm4 = vcmp.lt.s32.totalorder %v340_v60, 127 }
  0x28   : > { %v438_v44 = vmul.f32 1.442695, %v436_v33 }
  0x47   : > { %323 = vadd.xlane.f32.xlu2 %v322_v24 }
  0x70   : > { %v372_v56 = vpop.permute.xlu2 %371 }
  0x71   : > { %v379_v14 = vsub.f32 %v372_v56, %v722_v2  ;;  %v437_v2 = vsub.f32 0.0, %v435_v23 }
  0x73   : > { %v385_v27 = vand.u32 2147483647, %v379_v14 }
  0x78   : > { %v374_v28 = vpop.permute.xlu2 %373 }
  0x79   : > { %v380_v31 = vsub.f32 %v374_v28, %v729_v5 }
  0x7b   : > { %v386_v37 = vand.u32 2147483647, %v380_v31 }
  0x87   : > { %v368_v17 = vpop.permute.xlu1 %367  ;;  %v364_v18 = vpop.permute.xlu0 %363 }
  0x88   : > { %v377_v21 = vsub.f32 %v368_v17, %v716_v0  ;;  %v375_v22 = vsub.f32 %v364_v18, %v718_v1  ;;  %v440_v0 = vmul.f32 1.442695, %v437_v2  ;;  %v595_v17 = vsel %vm341_vm4, 1.0, %v668_v10 }
  0x89   : > { %v596_v18 = vsel %vm345_vm5, 1.0, %v668_v10 }
  0x8a   : > { %v383_v25 = vand.u32 2147483647, %v377_v21  ;;  %v381_v26 = vand.u32 2147483647, %v375_v22  ;;  %630 = vpow2.f32 %v440_v0 }
  0x8c   : > { %v387_v30 = vadd.f32 %v383_v25, %v381_v26 }
  0x8e   : > { %v388_v32 = vadd.f32 %v387_v30, %v385_v27 }
  0x8f   : > { %v370_v16 = vpop.permute.xlu1 %369  ;;  %v366_v34 = vpop.permute.xlu0 %365 }
  0x90   : > { %v398_v35 = vmul.f32 %v397_v19, %v388_v32  ;;  %v378_v1 = vsub.f32 %v370_v16, %v725_v3  ;;  %v376_v36 = vsub.f32 %v366_v34, %v727_v4  ;;  %v362_v4 = vsub.f32 %v360_v45, %v740_v7  ;;  %v631_v49 = vpop.eup %630 }
  0x92   : > { %v400_v38 = vsub.f32 0.0, %v398_v35  ;;  %v384_v39 = vand.u32 2147483647, %v378_v1  ;;  %v382_v40 = vand.u32 2147483647, %v376_v36  ;;  %v451_v56 = vmul.f32 %v631_v49, %v362_v4 }
  0x94   : > { %v402_v43 = vmul.f32 1.442695, %v400_v38  ;;  %v389_v5 = vadd.f32 %v384_v39, %v382_v40  ;;  %v453_v11 = vand.u32 2147483647, %v451_v56 }
  0x96   : > { %632 = vpow2.f32 %v402_v43  ;;  %v390_v46 = vadd.f32 %v389_v5, %v386_v37 }
  0x97   : > { %v351_v3 = vpop.permute.xlu0 %350  ;;  %634 = vpow2.f32 %v438_v44  ;;  %v353_v58 = vpop.permute.xlu1 %352 }
  0x98   : > { %v399_v47 = vmul.f32 %v397_v19, %v390_v46  ;;  %v354_v48 = vsub.f32 %v351_v3, %v738_v6  ;;  %v355_v62 = vsub.f32 %v353_v58, %v740_v7  ;;  %v455_v6 = vmul.f32 0.00026041668, %v453_v11 }
  0x9a   : > { %v401_v50 = vsub.f32 0.0, %v399_v47  ;;  %v457_v21 = vmul.f32 %v596_v18, %v455_v6 }
  0x9c   : > { %v633_v52 = vpop.eup %632  ;;  %v404_v53 = vmul.f32 1.442695, %v401_v50 }
  0x9d   : > { %v442_v54 = vmul.f32 %v633_v52, %v354_v48  ;;  %v635_v57 = vpop.eup %634 }
  0x9e   : > { %636 = vpow2.f32 %v404_v53  ;;  %v450_v63 = vmul.f32 %v635_v57, %v361_v55 }
  0x9f   : > { %v444_v61 = vand.u32 2147483647, %v442_v54 }
  0xa0   : > { %v452_v15 = vand.u32 2147483647, %v450_v63 }
  0xa1   : > { %v446_v13 = vmul.f32 0.000246063, %v444_v61 }
  0xa2   : > { %v454_v8 = vmul.f32 0.00026041668, %v452_v15 }
  0xa3   : > { %v448_v20 = vmul.f32 %v595_v17, %v446_v13 }
  0xa4   : > { %v637_v12 = vpop.eup %636 }
  0xa5   : > { %v443_v14 = vmul.f32 %v637_v12, %v355_v62  ;;  %v458_v7 = vadd.f32 %v454_v8, %v448_v20 }
  0xa7   : > { %v445_v19 = vand.u32 2147483647, %v443_v14 }
  0xa9   : > { %v447_v9 = vmul.f32 0.000246063, %v445_v19 }
  0xab   : > { %v449_v22 = vmul.f32 %v595_v17, %v447_v9 }
  0xad   : > { %v459_v23 = vadd.f32 %v457_v21, %v449_v22 }
  0xaf   : > { %v460_v24 = vadd.f32 %v459_v23, %v458_v7 }
  0xb1   : > { %461 = vadd.xlane.f32.xlu0 %v460_v24 }
  0xba   : > { %v324_v25 = vpop.xlane.xlu2 %323 }
  0xbb   : > { %v325_v26 = vrot.slane %v324_v25, 4 }
  0xbd   : > { %v326_v27 = vadd.f32 %v325_v26, %v324_v25 }
  0xbf   : > { %v327_v28 = vrot.slane %v326_v27, 2 }
  0xc1   : > { %v328_v29 = vadd.f32 %v327_v28, %v326_v27 }
  0xc3   : > { %v329_v30 = vrot.slane %v328_v29, 1 }
  0xc5   : > { %v330_v2 = vadd.f32 %v329_v30, %v328_v29 }
  0xc7   : > { %602 = vpush %v330_v2 }
  0xf8   : > { %s603_s14 = spop %602 }
  0xf9   : > { %s332_s20 = smul.f32 0.00024414063, %s603_s14 }
  0xfb   : > { %v333_v0 = vstv %s332_s20 }
  0xfc   : > { %335 = vst.msk [vmem:[%s280_s17] sm:$0x1] %vm334_vm6, %v333_v0 }
 0x124   : > { %v462_v10 = vpop.xlane.xlu0 %461 }
 0x125   : > { %v463_v31 = vrot.slane %v462_v10, 4 }
 0x127   : > { %v464_v32 = vadd.f32 %v463_v31, %v462_v10 }
 0x129   : > { %v465_v33 = vrot.slane %v464_v32, 2 }
 0x12b   : > { %v466_v16 = vadd.f32 %v465_v33, %v464_v32 }
 0x12d   : > { %v467_v34 = vrot.slane %v466_v16, 1 }
 0x12f   : > { %v468_v35 = vadd.f32 %v467_v34, %v466_v16 }
 0x131   : > { %604 = vpush %v468_v35 }
 0x162   : > { %s605_s24 = spop %604 }
 0x163   : > { %v470_v1 = vstv %s605_s24 }
 0x164   : > { %471 = vst.msk [vmem:[%s283_s23] sm:$0x1] %vm334_vm6, %v470_v1 }
 0x165 PF: > { %s17_s18 = sadd.s32 1, %s663_s18  }
 0x166   : > { %p14_p7 = scmp.ge.s32.totalorder %s17_s18, 4  }
 0x168   :  { %16 = sbr.rel (!%p14_p7) target bundleno = 1 (0x1), region = 89 }
 0x16d   :  { %501 = vsyncpa [#allocation3], 1 }
 0x16e   :  { %503 = vsyncpa [#allocation3 + $0x1], 1 }

// kernel: unsup_loss_07.2
= control target key start
LH: loop header
LB: loop body
LE: loop exit
PB: predicated region body
PF: predicated region fallthrough
CT: control target
= control target key end

     0   :  { %s2189_s15 = smov 0   ;;  %s2191_s16 = smov 0   ;;  %s4082_s0 = inlined_call_operand.vmem [shape: f32[2,2,3,16,128], index: 0, kind: input, shape index: {}]   ;;  %s4083_s1 = inlined_call_operand.vmem [shape: f32[2,3,16,128], index: 1, kind: input, shape index: {}]   ;;  %s4084_s2 = inlined_call_operand.vmem [shape: f32[2,2,1,16,128], index: 2, kind: input, shape index: {}]   ;;  %s4085_s3 = inlined_call_operand.vmem [shape: f32[2,2,1,1], index: 3, kind: output, shape index: {0}]   ;;  %s4086_s4 = inlined_call_operand.vmem [shape: f32[2,2,1,1], index: 4, kind: output, shape index: {1}]  }
   0x1   :  { %s2193_s17 = smov 0  }
   0x2 LB: > { %s27_s18 = sadd.s32 1, %s2155_s16  ;;  %p2002_p0 = scmp.ge.s32.totalorder %s2159_s17, 1  ;;  %s2159_s17 = sphi %s2193_s17, %s15_s17   ;;  %s2155_s16 = sphi %s2191_s16, %s4307_s16   ;;  %s2151_s15 = sphi %s2189_s15, %s4306_s15  }
   0x3   : > { %p29_p1 = scmp.ge.s32.totalorder %s27_s18, 2  ;;  %p217_p2 = scmp.lt.s32.totalorder %s2159_s17, 3 }
   0x5   : > { %s4309_s18 = smov (%p29_p1, %s27_s18), 0  ;;  %p218_p3 = pnand %p2002_p0, %p217_p2 }
   0x7   : > { %221 = sbr.rel (%p218_p3) target bundleno = 752 (0x2f0), region = 32 }
   0xc   : > { %p275_p4 = scmp.lt.s32.totalorder %s2151_s15, 1  ;;  %s2161_s5 = smov 127   ;;  %v341_v50 = vlaneseq  ;;  %v4087_v59 = vmov 0.0  }
   0xd   : > { %s2162_s6 = smov 126  }
   0xe   : > { %s4311_s15 = smov (!%p275_p4, %s2151_s15), 1  ;;  %v2397_v51 = vand.u32 127, %v341_v50  ;;  %v2399_v52 = vshrl.u32 %v341_v50, 7 }
   0xf   : > { %s2054_s19 = smul.u32 96, %s4311_s15  ;;  %s2053_s20 = sshll.u32 %s4311_s15, 5 }
  0x10   : > { %s2055_s21 = smul.u32 48, %s4311_s15  ;;  %s2215_s24 = scalar_lea.vmem %s4084_s2, %s2053_s20  ;;  %4134 = vst [vmem:[#allocation11_spill] sm:$0xff] %v2397_v51  ;;  %vm397_vm0 = vcmp.lt.s32.totalorder %v2399_v52, 7  ;;  %vm346_vm1 = vcmp.lt.s32.totalorder %v2397_v51, 127 }
  0x11   : > { %s2220_s27 = scalar_lea.vmem %s4082_s0, %s2054_s19  ;;  %v337_v0 = vld [vmem:[%s2215_s24] sm:$0xff]  ;;  %v338_v21 = vld [vmem:[%s2215_s24 + $0x8] sm:$0xff]  ;;  %v340_v30 = vld [vmem:[%s2215_s24 + $0x18] sm:$0xff]  ;;  %4135 = vst [vmem:[#allocation12_spill] sm:$0xff] %v2399_v52  ;;  %v2416_v60 = vsel %vm346_vm1, 1.0, %v4087_v59  ;;  %s2007_s7 = sshll.u32 %s4311_s15, 1 }
  0x12   : > { %s2226_s30 = scalar_lea.vmem %s4083_s1, %s2055_s21  ;;  %v2229_v1 = vld [vmem:[%s2220_s27 + $0x20] sm:$0xff]  ;;  %v2232_v2 = vld [vmem:[%s2220_s27 + $0x10] sm:$0xff]  ;;  %v2256_v11 = vld [vmem:[%s2220_s27 + $0x28] sm:$0xff]  ;;  %s3411_s10 = scalar_lea.vmem %s4085_s3, %s2007_s7 }
  0x13   : > { %4125 = vst [vmem:[#allocation2_spill] sm:$0xff] %v2229_v1  ;;  %v2235_v3 = vld [vmem:[%s2220_s27] sm:$0xff]  ;;  %v2241_v5 = vld [vmem:[%s2226_s30 + $0x10] sm:$0xff]  ;;  %v2253_v10 = vld [vmem:[%s2226_s30 + $0x28] sm:$0xff]  ;;  %s317_s20 = scalar_lea.vmem %s4086_s4, %s2007_s7 }
  0x14   : > { %v2238_v4 = vld [vmem:[%s2226_s30 + $0x20] sm:$0xff]  ;;  %4127 = vst [vmem:[#allocation4_spill] sm:$0xff] %v2241_v5  ;;  %v357_v8 = vsub.f32 %v2232_v2, %v2241_v5  ;;  %v2259_v12 = vld [vmem:[%s2226_s30 + $0x18] sm:$0xff]  ;;  %v2271_v17 = vld [vmem:[%s2226_s30 + $0x8] sm:$0xff]  ;;  %v360_v19 = vsub.f32 %v2256_v11, %v2253_v10 }
  0x15   : > { %4126 = vst [vmem:[#allocation3_spill] sm:$0xff] %v2238_v4  ;;  %v2244_v6 = vld [vmem:[%s2226_s30] sm:$0xff]  ;;  %v359_v7 = vsub.f32 %v2229_v1, %v2238_v4  ;;  %v2262_v13 = vld [vmem:[%s2220_s27 + $0x18] sm:$0xff]  ;;  %v2274_v18 = vld [vmem:[%s2220_s27 + $0x8] sm:$0xff]  ;;  %v2353_v46 = vmul.f32 %v2259_v12, %v2259_v12  ;;  %v2357_v47 = vmul.f32 %v2271_v17, %v2271_v17  ;;  %v2371_v49 = vmul.f32 %v2238_v4, %v2238_v4 }
  0x16   : > { %v355_v9 = vsub.f32 %v2235_v3, %v2244_v6  ;;  %4128 = vst [vmem:[#allocation5_spill] sm:$0xff] %v2253_v10  ;;  %v2266_v15 = vmul.f32 %v357_v8, %v337_v0  ;;  %v358_v20 = vsub.f32 %v2262_v13, %v2259_v12  ;;  %v356_v22 = vsub.f32 %v2274_v18, %v2271_v17  ;;  %v332_v26 = vld [vmem:[%s2220_s27 + $0x38] sm:$0xff]  ;;  %v331_v27 = vld [vmem:[%s2220_s27 + $0x30] sm:$0xff]  ;;  %v334_v34 = vld [vmem:[%s2220_s27 + $0x48] sm:$0xff] }
  0x17   : > { %v2264_v14 = vmul.f32 %v359_v7, %v337_v0  ;;  %4129 = vst [vmem:[#allocation6_spill] sm:$0xff] %v2274_v18  ;;  %v2289_v23 = vmul.f32 %v360_v19, %v338_v21  ;;  %v572_v28 = vsub.f32 %v332_v26, %v2271_v17  ;;  %v571_v29 = vsub.f32 %v331_v27, %v2244_v6  ;;  %v339_v31 = vld [vmem:[%s2215_s24 + $0x10] sm:$0xff]  ;;  %v333_v35 = vld [vmem:[%s2220_s27 + $0x40] sm:$0xff]  ;;  %v336_v40 = vld [vmem:[%s2220_s27 + $0x58] sm:$0xff] }
  0x18   : > { %v2268_v16 = vmul.f32 %v355_v9, %v337_v0  ;;  %371 = vrot.lane.b32.xlu1 %v2266_v15, %s2161_s5  ;;  %v2291_v24 = vmul.f32 %v358_v20, %v338_v21  ;;  %v2293_v25 = vmul.f32 %v356_v22, %v338_v21  ;;  %v574_v36 = vsub.f32 %v334_v34, %v2259_v12  ;;  %v335_v41 = vld [vmem:[%s2220_s27 + $0x50] sm:$0xff] }
  0x19   : > { %375 = vrot.lane.b32.xlu2 %v2264_v14, %s2161_s5  ;;  %v2307_v32 = vmul.f32 %v572_v28, %v340_v30  ;;  %v2309_v33 = vmul.f32 %v571_v29, %v339_v31  ;;  %v573_v37 = vsub.f32 %v333_v35, %v2241_v5  ;;  %v576_v42 = vsub.f32 %v336_v40, %v2253_v10 }
  0x1a   : > { %367 = vrot.lane.b32.xlu0 %v2268_v16, %s2161_s5  ;;  %v2321_v38 = vmul.f32 %v574_v36, %v340_v30  ;;  %v575_v43 = vsub.f32 %v335_v41, %v2238_v4  ;;  %4130 = vst [vmem:[#allocation7_spill] sm:$0xff] %v2353_v46  ;;  %v2367_v48 = vmul.f32 %v2244_v6, %v2244_v6  ;;  %v392_v53 = vrot.slane %v2266_v15, 1 }
  0x1b   : > { %v2323_v39 = vmul.f32 %v573_v37, %v339_v31  ;;  %v2335_v44 = vmul.f32 %v576_v42, %v340_v30  ;;  %4131 = vst [vmem:[#allocation8_spill] sm:$0xff] %v2357_v47  ;;  %v395_v54 = vrot.slane %v2291_v24, 1  ;;  %v393_v55 = vrot.slane %v2264_v14, 1 }
  0x1c   : > { %v2337_v45 = vmul.f32 %v575_v43, %v339_v31  ;;  %4132 = vst [vmem:[#allocation9_spill] sm:$0xff] %v2367_v48  ;;  %v396_v56 = vrot.slane %v2289_v23, 1  ;;  %v391_v63 = vrot.slane %v2268_v16, 1  ;;  %v394_v0 = vrot.slane %v2293_v25, 1 }
  0x1d   : > { %4133 = vst [vmem:[#allocation10_spill] sm:$0xff] %v2371_v49  ;;  %v399_v58 = vsel %vm397_vm0, %v392_v53, %v395_v54  ;;  %v2425_v7 = vadd.s32 8, %v2399_v52  ;;  %v420_v9 = vand.u32 2147483647, %v2264_v14  ;;  %v432_v21 = vmul.f32 0.5, %v2264_v14 }
  0x1e   : > { %v400_v62 = vsel %vm397_vm0, %v393_v55, %v396_v56  ;;  %v2428_v8 = vsub.f32 %v399_v58, %v2266_v15  ;;  %v2439_v22 = vmul.f32 %v2241_v5, %v2241_v5  ;;  %v2445_v26 = vmul.f32 %v2253_v10, %v2253_v10 }
  0x1f   : > { %4136 = vst [vmem:[#allocation13_spill] sm:$0xff] %v2425_v7  ;;  %v2434_v20 = vsub.f32 %v400_v62, %v2264_v14  ;;  %vm350_vm2 = vcmp.lt.s32.totalorder %v2425_v7, 15  ;;  %v401_v27 = vsel %vm397_vm0, %v394_v0, %v391_v63  ;;  %v402_v29 = vsel %vm397_vm0, %v395_v54, %v392_v53 }
  0x20   : > { %373 = vrot.lane.b32.xlu1 %v2291_v24, %s2161_s5  ;;  %4137 = vst [vmem:[#allocation14_spill] sm:$0xff] %v2439_v22  ;;  %v2459_v31 = vadd.f32 -0.5, %v420_v9  ;;  %v403_v37 = vsel %vm397_vm0, %v396_v56, %v393_v55  ;;  %vm2464_vm3 = vcmp.lt.f32.partialorder %v420_v9, 1.0  ;;  %v438_v41 = vmul.f32 %v432_v21, %v2264_v14 }
  0x21   : > { %377 = vrot.lane.b32.xlu2 %v2289_v23, %s2161_s5  ;;  %4138 = vst [vmem:[#allocation15_spill] sm:$0xff] %v2445_v26  ;;  %v2474_v53 = vsel %vm350_vm2, 1.0, %v4087_v59  ;;  %v405_v54 = vsub.f32 %v401_v27, %v2293_v25  ;;  %v398_v56 = vsel %vm397_vm0, %v391_v63, %v394_v0  ;;  %v428_v58 = vmul.f32 0.5, %v2268_v16 }
  0x22   : > { %369 = vrot.lane.b32.xlu0 %v2293_v25, %s2161_s5  ;;  %4141 = vst [vmem:[#allocation16_spill] sm:$0xff] %v2474_v53  ;;  %v417_v62 = vand.u32 2147483647, %v2293_v25  ;;  %v419_v9 = vand.u32 2147483647, %v2291_v24  ;;  %v431_v63 = vmul.f32 0.5, %v2291_v24 }
  0x23   : > { %v421_v21 = vand.u32 2147483647, %v2289_v23  ;;  %v433_v0 = vmul.f32 0.5, %v2289_v23 }
  0x24   : > { %vm2505_vm7 = vcmp.lt.f32.partialorder %v417_v62, 1.0  ;;  %vm2509_vm8 = vcmp.lt.f32.partialorder %v419_v9, 1.0 }
  0x25   : > { %vm2517_vm9 = vcmp.lt.f32.partialorder %v421_v21, 1.0 }
  0x28   : > { %583 = vrot.lane.b32.xlu1 %v2309_v33, %s2161_s5 }
  0x29   : > { %585 = vrot.lane.b32.xlu2 %v2307_v32, %s2161_s5 }
  0x2a   : > { %792 = vrot.lane.b32.xlu0 %v2259_v12, %s2161_s5 }
  0x30   : > { %587 = vrot.lane.b32.xlu1 %v2323_v39, %s2161_s5 }
  0x31   : > { %589 = vrot.lane.b32.xlu2 %v2321_v38, %s2161_s5 }
  0x32   : > { %804 = vrot.lane.b32.xlu0 %v2244_v6, %s2162_s6 }
  0x38   : > { %591 = vrot.lane.b32.xlu1 %v2337_v45, %s2161_s5 }
  0x39   : > { %593 = vrot.lane.b32.xlu2 %v2335_v44, %s2161_s5 }
  0x3a   : > { %810 = vrot.lane.b32.xlu0 %v2259_v12, %s2162_s6 }
  0x40   : > { %808 = vrot.lane.b32.xlu1 %v2241_v5, %s2162_s6 }
  0x41   : > { %786 = vrot.lane.b32.xlu2 %v2244_v6, %s2161_s5 }
  0x42   : > { %814 = vrot.lane.b32.xlu0 %v2253_v10, %s2162_s6 }
  0x48   : > { %877 = vrot.lane.b32.xlu1 %v2353_v46, %s2161_s5 }
  0x49   : > { %788 = vrot.lane.b32.xlu2 %v2271_v17, %s2161_s5 }
  0x4a   : > { %873 = vrot.lane.b32.xlu0 %v2357_v47, %s2161_s5 }
  0x50   : > { %889 = vrot.lane.b32.xlu1 %v2367_v48, %s2162_s6 }
  0x51   : > { %790 = vrot.lane.b32.xlu2 %v2241_v5, %s2161_s5 }
  0x52   : > { %879 = vrot.lane.b32.xlu0 %v2371_v49, %s2161_s5 }
  0x58   : > { %895 = vrot.lane.b32.xlu1 %v2353_v46, %s2162_s6  ;;  %v2016_v46 = vadd.f32 -0.5, %v421_v21  ;;  %v450_v21 = vsel %vm2464_vm3, %v438_v41, %v2459_v31 }
  0x59   : > { %794 = vrot.lane.b32.xlu2 %v2238_v4, %s2161_s5  ;;  %v456_v51 = vmul.f32 4.0690105e-05, %v450_v21 }
  0x5a   : > { %891 = vrot.lane.b32.xlu0 %v2357_v47, %s2162_s6 }
  0x60   : > { %970 = vrot.lane.b32.xlu1 %v2235_v3, %s2161_s5 }
  0x61   : > { %796 = vrot.lane.b32.xlu2 %v2253_v10, %s2161_s5 }
  0x62   : > { %897 = vrot.lane.b32.xlu0 %v2371_v49, %s2162_s6  ;;  %v2014_v49 = vadd.f32 -0.5, %v419_v9 }
  0x68   : > { %976 = vrot.lane.b32.xlu1 %v2262_v13, %s2161_s5  ;;  %v430_v13 = vmul.f32 0.5, %v2266_v15 }
  0x69   : > { %806 = vrot.lane.b32.xlu2 %v2271_v17, %s2162_s6 }
  0x6a   : > { %972 = vrot.lane.b32.xlu0 %v2274_v18, %s2161_s5  ;;  %v2457_v30 = vmul.f32 %v430_v13, %v2266_v15  ;;  %v409_v13 = vsub.f32 %v403_v37, %v2289_v23  ;;  %v434_v37 = vmul.f32 %v428_v58, %v2268_v16 }
  0x6c   : > { %v2559_v41 = vmul.f32 %v2474_v53, %v409_v13 }
  0x70   : > { %988 = vrot.lane.b32.xlu1 %v2235_v3, %s2162_s6  ;;  %v418_v3 = vand.u32 2147483647, %v2266_v15 }
  0x71   : > { %812 = vrot.lane.b32.xlu2 %v2238_v4, %s2162_s6 }
  0x72   : > { %978 = vrot.lane.b32.xlu0 %v2229_v1, %s2161_s5  ;;  %v2450_v28 = vadd.f32 -0.5, %v418_v3  ;;  %vm2477_vm4 = vcmp.lt.f32.partialorder %v418_v3, 1.0  ;;  %v429_v3 = vmul.f32 0.5, %v2293_v25 }
  0x73   : > { %v376_v57 = vpop.permute.xlu2 %375 }
  0x74   : > { %v383_v61 = vsub.f32 %v376_v57, %v2264_v14  ;;  %v407_v14 = vsub.f32 %v402_v29, %v2291_v24  ;;  %v416_v57 = vand.u32 2147483647, %v2268_v16 }
  0x76   : > { %v389_v19 = vmul.f32 %v2416_v60, %v383_v61  ;;  %vm2500_vm6 = vcmp.lt.f32.partialorder %v416_v57, 1.0  ;;  %v2011_v34 = vadd.f32 -0.5, %v416_v57 }
  0x78   : > { %v462_v35 = vand.u32 2147483647, %v389_v19  ;;  %v474_v43 = vmul.f32 0.5, %v389_v19 }
  0x79   : > { %871 = vrot.lane.b32.xlu2 %v2367_v48, %s2161_s5  ;;  %v437_v48 = vmul.f32 %v431_v63, %v2291_v24 }
  0x7a   : > { %990 = vrot.lane.b32.xlu0 %v2274_v18, %s2162_s6  ;;  %vm2494_vm5 = vcmp.lt.f32.partialorder %v462_v35, 1.0  ;;  %v480_v29 = vmul.f32 %v474_v43, %v389_v19  ;;  %v2021_v59 = vadd.f32 -0.5, %v462_v35  ;;  %v435_v19 = vmul.f32 %v429_v3, %v2293_v25 }
  0x7b   : > { %v378_v36 = vpop.permute.xlu2 %377  ;;  %v2012_v35 = vadd.f32 -0.5, %v417_v62  ;;  %v439_v18 = vmul.f32 %v433_v0, %v2289_v23  ;;  %v2526_v62 = vsub.f32 %v398_v56, %v2268_v16  ;;  %v2529_v3 = vmul.f32 %v2474_v53, %v405_v54 }
  0x7c   : > { %v384_v50 = vsub.f32 %v378_v36, %v2289_v23  ;;  %v446_v23 = vsel %vm2500_vm6, %v434_v37, %v2011_v34  ;;  %v492_v63 = vsel %vm2494_vm5, %v480_v29, %v2021_v59  ;;  %v2542_v56 = vmul.f32 %v2474_v53, %v407_v14 }
  0x7d   : > { %v447_v9 = vsel %vm2505_vm7, %v435_v19, %v2012_v35  ;;  %v448_v34 = vsel %vm2477_vm4, %v2457_v30, %v2450_v28  ;;  %v451_v7 = vsel %vm2517_vm9, %v439_v18, %v2016_v46  ;;  %v2552_v31 = vmul.f32 4.0690105e-05, %v446_v23 }
  0x7e   : > { %v390_v61 = vmul.f32 %v2416_v60, %v384_v50  ;;  %v2561_v28 = vmul.f32 4.0690105e-05, %v447_v9  ;;  %v457_v55 = vmul.f32 4.0690105e-05, %v451_v7  ;;  %v506_v29 = vand.u32 2147483647, %v2526_v62 }
  0x7f   : > { %v4101_v35 = vand.u32 2147483647, %v2542_v56  ;;  %v519_v9 = vmul.f32 0.5, %v2529_v3 }
  0x80   : > { %v463_v36 = vand.u32 2147483647, %v390_v61  ;;  %v475_v50 = vmul.f32 0.5, %v390_v61  ;;  %vm2608_vm14 = vcmp.lt.f32.partialorder %v506_v29, 1.0 }
  0x81   : > { %875 = vrot.lane.b32.xlu2 %v2439_v22, %s2161_s5  ;;  %vm2632_vm2 = vcmp.lt.f32.partialorder %v4101_v35, 1.0 }
  0x82   : > { %v481_v58 = vmul.f32 %v475_v50, %v390_v61  ;;  %v2022_v57 = vadd.f32 -0.5, %v463_v36  ;;  %vm2521_vm10 = vcmp.lt.f32.partialorder %v463_v36, 1.0  ;;  %v507_v36 = vand.u32 2147483647, %v2529_v3 }
  0x83   : > { %v586_v43 = vpop.permute.xlu2 %585 }
  0x84   : > { %v596_v1 = vsub.f32 %v586_v43, %v2307_v32  ;;  %v493_v59 = vsel %vm2521_vm10, %v481_v58, %v2022_v57  ;;  %v518_v57 = vmul.f32 0.5, %v2526_v62  ;;  %vm2614_vm15 = vcmp.lt.f32.partialorder %v507_v36, 1.0 }
  0x85   : > { %v499_v14 = vmul.f32 4.10105e-05, %v493_v59  ;;  %v523_v59 = vmul.f32 0.5, %v2559_v41  ;;  %vm846_vm10 = vcmp.lt.s32.totalorder %v2399_v52, 6 }
  0x86   : > { %v602_v61 = vmul.f32 %v2416_v60, %v596_v1  ;;  %v449_v1 = vsel %vm2509_vm8, %v437_v48, %v2014_v49  ;;  %v498_v48 = vmul.f32 4.10105e-05, %v492_v63  ;;  %v2567_v49 = vmul.f32 4.0690105e-05, %v448_v34 }
  0x87   : > { %v2569_v54 = vmul.f32 4.0690105e-05, %v449_v1  ;;  %v521_v1 = vmul.f32 0.5, %v2542_v56 }
  0x88   : > { %v674_v42 = vand.u32 2147483647, %v602_v61  ;;  %v686_v40 = vmul.f32 0.5, %v602_v61  ;;  %v2578_v19 = vadd.f32 %v498_v48, %v456_v51 }
  0x89   : > { %881 = vrot.lane.b32.xlu2 %v2445_v26, %s2161_s5 }
  0x8a   : > { %vm2563_vm11 = vcmp.lt.f32.partialorder %v674_v42, 1.0  ;;  %v692_v18 = vmul.f32 %v686_v40, %v602_v61  ;;  %v2036_v46 = vadd.f32 -0.5, %v674_v42  ;;  %v372_v30 = vpop.permute.xlu1 %371  ;;  %v2586_v61 = vadd.f32 %v499_v14, %v457_v55 }
  0x8b   : > { %v590_v4 = vpop.permute.xlu2 %589  ;;  %v381_v0 = vsub.f32 %v372_v30, %v2266_v15  ;;  %v4100_v15 = vand.u32 2147483647, %v2559_v41  ;;  %v522_v40 = vmul.f32 0.5, %v2434_v20 }
  0x8c   : > { %v598_v13 = vsub.f32 %v590_v4, %v2321_v38  ;;  %v368_v27 = vpop.permute.xlu0 %367  ;;  %v704_v50 = vsel %vm2563_vm11, %v692_v18, %v2036_v46  ;;  %v2602_v18 = vmul.f32 %v518_v57, %v2526_v62  ;;  %v4167_v57 = vand.u32 2147483647, %v2428_v8 }
  0x8d   : > { %v379_v37 = vsub.f32 %v368_v27, %v2268_v16  ;;  %v387_v58 = vmul.f32 %v2416_v60, %v381_v0  ;;  %v520_v16 = vmul.f32 0.5, %v2428_v8  ;;  %v2590_v21 = vmul.f32 4.10105e-05, %v704_v50 }
  0x8e   : > { %v604_v43 = vmul.f32 %v2416_v60, %v598_v13  ;;  %vm2622_vm1 = vcmp.lt.f32.partialorder %v4167_v57, 1.0  ;;  %vm2654_vm4 = vcmp.lt.f32.partialorder %v4100_v15, 1.0  ;;  %v2023_v57 = vadd.f32 -0.5, %v506_v29 }
  0x8f   : > { %v385_v23 = vmul.f32 %v2416_v60, %v379_v37  ;;  %4158 = vst [vmem:[#allocation17_spill] sm:$0xff] %v2590_v21  ;;  %v460_v63 = vand.u32 2147483647, %v387_v58  ;;  %v472_v34 = vmul.f32 0.5, %v387_v58  ;;  %v4181_v29 = vand.u32 2147483647, %v2428_v8 }
  0x90   : > { %v676_v51 = vand.u32 2147483647, %v604_v43  ;;  %v688_v48 = vmul.f32 0.5, %v604_v43  ;;  %v4108_v27 = vand.u32 2147483647, %v2309_v33 }
  0x91   : > { %v458_v7 = vand.u32 2147483647, %v385_v23  ;;  %v470_v42 = vmul.f32 0.5, %v385_v23  ;;  %893 = vrot.lane.b32.xlu2 %v2439_v22, %s2162_s6  ;;  %vm2597_vm12 = vcmp.lt.f32.partialorder %v460_v63, 1.0  ;;  %v478_v46 = vmul.f32 %v472_v34, %v387_v58 }
  0x92   : > { %v2019_v4 = vadd.f32 -0.5, %v460_v63  ;;  %v374_v13 = vpop.permute.xlu1 %373  ;;  %v525_v63 = vmul.f32 %v519_v9, %v2529_v3  ;;  %v2644_v9 = vmul.f32 %v521_v1, %v2542_v56  ;;  %v2663_v1 = vadd.f32 -0.5, %v676_v51 }
  0x93   : > { %vm2604_vm13 = vcmp.lt.f32.partialorder %v458_v7, 1.0  ;;  %v476_v55 = vmul.f32 %v470_v42, %v385_v23  ;;  %v594_v14 = vpop.permute.xlu2 %593  ;;  %v2017_v62 = vadd.f32 -0.5, %v458_v7  ;;  %v382_v37 = vsub.f32 %v374_v13, %v2291_v24 }
  0x94   : > { %v600_v50 = vsub.f32 %v594_v14, %v2335_v44  ;;  %v370_v58 = vpop.permute.xlu0 %369  ;;  %v490_v34 = vsel %vm2597_vm12, %v478_v46, %v2019_v4  ;;  %v4172_v24 = vand.u32 2147483647, %v2434_v20  ;;  %v526_v13 = vmul.f32 %v520_v16, %v2428_v8 }
  0x95   : > { %v380_v42 = vsub.f32 %v370_v58, %v2293_v25  ;;  %v488_v25 = vsel %vm2604_vm13, %v476_v55, %v2017_v62  ;;  %v388_v46 = vmul.f32 %v2416_v60, %v382_v37  ;;  %v2659_v58 = vmul.f32 %v522_v40, %v2434_v20 }
  0x96   : > { %vm2638_vm3 = vcmp.lt.f32.partialorder %v4172_v24, 1.0  ;;  %v2649_v47 = vmul.f32 %v2416_v60, %v600_v50  ;;  %v2661_v16 = vmul.f32 %v688_v48, %v604_v43  ;;  %v2667_v55 = vmul.f32 %v523_v59, %v2559_v41 }
  0x97   : > { %v386_v30 = vmul.f32 %v2416_v60, %v380_v42  ;;  %v496_v62 = vmul.f32 4.10105e-05, %v490_v34  ;;  %v461_v50 = vand.u32 2147483647, %v388_v46  ;;  %v473_v37 = vmul.f32 0.5, %v388_v46 }
  0x98   : > { %vm2669_vm5 = vcmp.lt.f32.partialorder %v676_v51, 1.0  ;;  %v494_v15 = vmul.f32 4.10105e-05, %v488_v25  ;;  %v2024_v43 = vadd.f32 -0.5, %v507_v36  ;;  %v2025_v51 = vadd.f32 -0.5, %v4181_v29 }
  0x99   : > { %v459_v40 = vand.u32 2147483647, %v386_v30  ;;  %v471_v35 = vmul.f32 0.5, %v386_v30  ;;  %899 = vrot.lane.b32.xlu2 %v2445_v26, %s2162_s6  ;;  %vm2678_vm6 = vcmp.lt.f32.partialorder %v461_v50, 1.0  ;;  %v4182_v34 = vand.u32 2147483647, %v2542_v56 }
  0x9a   : > { %v479_v25 = vmul.f32 %v473_v37, %v388_v46  ;;  %v2020_v22 = vadd.f32 -0.5, %v461_v50  ;;  %v584_v26 = vpop.permute.xlu1 %583  ;;  %v690_v59 = vmul.f32 0.5, %v2649_v47  ;;  %v4185_v8 = vand.u32 2147483647, %v2434_v20 }
  0x9b   : > { %v2026_v42 = vadd.f32 -0.5, %v4182_v34  ;;  %vm2686_vm7 = vcmp.lt.f32.partialorder %v459_v40, 1.0  ;;  %v477_v3 = vmul.f32 %v471_v35, %v386_v30  ;;  %v787_v36 = vpop.permute.xlu2 %786  ;;  %v2018_v10 = vadd.f32 -0.5, %v459_v40 }
  0x9c   : > { %v595_v53 = vsub.f32 %v584_v26, %v2309_v33  ;;  %v793_v5 = vpop.permute.xlu0 %792  ;;  %v2027_v29 = vadd.f32 -0.5, %v4185_v8  ;;  %v491_v56 = vsel %vm2678_vm6, %v479_v25, %v2020_v22  ;;  %v500_v46 = vadd.f32 %v494_v15, %v2552_v31 }
  0x9d   : > { %v502_v50 = vadd.f32 %v496_v62, %v2567_v49  ;;  %v4186_v35 = vand.u32 2147483647, %v2559_v41  ;;  %v489_v37 = vsel %vm2686_vm7, %v477_v3, %v2018_v10  ;;  %v536_v20 = vsel %vm2608_vm14, %v2602_v18, %v2023_v57 }
  0x9e   : > { %v601_v40 = vmul.f32 %v2416_v60, %v595_v53  ;;  %v537_v26 = vsel %vm2614_vm15, %v525_v63, %v2024_v43  ;;  %v495_v22 = vmul.f32 4.10105e-05, %v489_v37  ;;  %v798_v31 = vadd.f32 %v787_v36, %v2244_v6 }
  0x9f   : > { %v2028_v30 = vadd.f32 -0.5, %v4186_v35  ;;  %v497_v15 = vmul.f32 4.10105e-05, %v491_v56  ;;  %v538_v41 = vsel %vm2622_vm1, %v526_v13, %v2025_v51  ;;  %v539_v10 = vsel %vm2632_vm2, %v2644_v9, %v2026_v42 }
  0xa0   : > { %v673_v49 = vand.u32 2147483647, %v601_v40  ;;  %v685_v62 = vmul.f32 0.5, %v601_v40  ;;  %v540_v53 = vsel %vm2638_vm3, %v2659_v58, %v2027_v29  ;;  %v501_v21 = vadd.f32 %v495_v22, %v2561_v28 }
  0xa1   : > { %v541_v6 = vsel %vm2654_vm4, %v2667_v55, %v2028_v30  ;;  %v542_v18 = vmul.f32 4.340278e-05, %v536_v20  ;;  %v543_v0 = vmul.f32 4.340278e-05, %v537_v26  ;;  %974 = vrot.lane.b32.xlu2 %v2232_v2, %s2161_s5  ;;  %v544_v7 = vmul.f32 4.340278e-05, %v538_v41 }
  0xa2   : > { %vm2723_vm8 = vcmp.lt.f32.partialorder %v673_v49, 1.0  ;;  %v691_v23 = vmul.f32 %v685_v62, %v601_v40  ;;  %v2035_v63 = vadd.f32 -0.5, %v673_v49  ;;  %v588_v13 = vpop.permute.xlu1 %587  ;;  %v503_v28 = vadd.f32 %v497_v15, %v2569_v54 }
  0xa3   : > { %v789_v14 = vpop.permute.xlu2 %788  ;;  %v545_v9 = vmul.f32 4.340278e-05, %v539_v10  ;;  %v548_v58 = vadd.f32 %v542_v18, %v500_v46  ;;  %v549_v4 = vadd.f32 %v543_v0, %v501_v21  ;;  %v597_v43 = vsub.f32 %v588_v13, %v2323_v39 }
  0xa4   : > { %v703_v57 = vsel %vm2723_vm8, %v691_v23, %v2035_v63  ;;  %v805_v48 = vpop.permute.xlu0 %804  ;;  %v546_v51 = vmul.f32 4.340278e-05, %v540_v53  ;;  %v2736_v34 = vmul.f32 %v690_v59, %v2649_v47  ;;  %v4189_v54 = vand.u32 2147483647, %v2649_v47 }
  0xa5   : > { %v2742_v25 = vadd.f32 %v805_v48, %v798_v31  ;;  %v547_v3 = vmul.f32 4.340278e-05, %v541_v6  ;;  %v801_v36 = vadd.f32 %v793_v5, %v2259_v12  ;;  %v603_v8 = vmul.f32 %v2416_v60, %v597_v43 }
  0xa6   : > { %v2740_v42 = vadd.f32 -0.5, %v4189_v54  ;;  %v550_v29 = vadd.f32 %v544_v7, %v502_v50  ;;  %v554_v56 = vadd.f32 %v549_v4, %v548_v58  ;;  %v2746_v46 = vmul.f32 4.10105e-05, %v703_v57  ;;  %v4192_v4 = vld [vmem:[#allocation4_spill] sm:$0xff] }
  0xa7   : > { %v2749_v35 = vadd.f32 %v789_v14, %v2271_v17  ;;  %v551_v59 = vadd.f32 %v545_v9, %v503_v28  ;;  %v607_v30 = vrot.slane %v2309_v33, 1  ;;  %v675_v37 = vand.u32 2147483647, %v603_v8 }
  0xa8   : > { %v687_v40 = vmul.f32 0.5, %v603_v8  ;;  %v552_v20 = vadd.f32 %v546_v51, %v2578_v19  ;;  %v555_v26 = vadd.f32 %v554_v56, %v550_v29  ;;  %v553_v22 = vadd.f32 %v547_v3, %v2586_v61 }
  0xa9   : > { %v608_v5 = vrot.slane %v2323_v39, 1  ;;  %v610_v12 = vrot.slane %v2307_v32, 1  ;;  %v611_v50 = vrot.slane %v2321_v38, 1  ;;  %980 = vrot.lane.b32.xlu2 %v2256_v11, %s2161_s5  ;;  %vm2759_vm9 = vcmp.lt.f32.partialorder %v675_v37, 1.0 }
  0xaa   : > { %v693_v31 = vmul.f32 %v687_v40, %v603_v8  ;;  %v2037_v15 = vadd.f32 -0.5, %v675_v37  ;;  %v556_v41 = vadd.f32 %v555_v26, %v551_v59  ;;  %v592_v61 = vpop.permute.xlu1 %591  ;;  %v609_v62 = vrot.slane %v2337_v45, 1 }
  0xab   : > { %v791_v49 = vpop.permute.xlu2 %790  ;;  %v612_v10 = vrot.slane %v2335_v44, 1  ;;  %v616_v53 = vsel %vm397_vm0, %v610_v12, %v607_v30  ;;  %v599_v6 = vsub.f32 %v592_v61, %v2337_v45  ;;  %v613_v7 = vsel %vm397_vm0, %v607_v30, %v610_v12 }
  0xac   : > { %v811_v18 = vpop.permute.xlu0 %810  ;;  %v557_v0 = vadd.f32 %v556_v41, %v552_v20  ;;  %v705_v23 = vsel %vm2759_vm9, %v693_v31, %v2037_v15  ;;  %v617_v14 = vsel %vm397_vm0, %v611_v50, %v608_v5  ;;  %v614_v9 = vsel %vm397_vm0, %v608_v5, %v611_v50 }
  0xad   : > { %v819_v63 = vadd.f32 %v811_v18, %v801_v36  ;;  %v2779_v13 = vmul.f32 %v2416_v60, %v599_v6  ;;  %v620_v58 = vsub.f32 %v616_v53, %v2307_v32  ;;  %v800_v57 = vadd.f32 %v791_v49, %v4192_v4 }
  0xae   : > { %v558_v28 = vadd.f32 %v557_v0, %v553_v22  ;;  %v615_v43 = vsel %vm397_vm0, %v609_v62, %v612_v10  ;;  %v2789_v48 = vsel %vm397_vm0, %v612_v10, %v609_v62  ;;  %v622_v51 = vsub.f32 %v617_v14, %v2321_v38  ;;  %v4196_v22 = vld [vmem:[#allocation16_spill] sm:$0xff] }
  0xaf   : > { %v2792_v54 = vmul.f32 4.10105e-05, %v705_v23  ;;  %v689_v60 = vmul.f32 0.5, %v2779_v13  ;;  %v826_v3 = vrot.slane %v819_v63, 1  ;;  %v2796_v36 = vsub.f32 %v613_v7, %v2309_v33 }
  0xb0   : > { %559 = vadd.xlane.f32.xlu0 %v558_v28  ;;  %v844_v8 = vrot.slane %v819_v63, 2  ;;  %v2799_v29 = vsub.f32 %v614_v9, %v2323_v39  ;;  %v632_v56 = vand.u32 2147483647, %v2307_v32  ;;  %v633_v59 = vand.u32 2147483647, %v2323_v39 }
  0xb1   : > { %992 = vrot.lane.b32.xlu2 %v2232_v2, %s2162_s6  ;;  %v4193_v30 = vand.u32 2147483647, %v2649_v47  ;;  %v677_v40 = vand.u32 2147483647, %v2779_v13  ;;  %v2813_v20 = vsub.f32 %v615_v43, %v2337_v45  ;;  %v624_v26 = vsub.f32 %v2789_v48, %v2335_v44 }
  0xb2   : > { %v2818_v5 = vmul.f32 %v4196_v22, %v620_v58  ;;  %v809_v50 = vpop.permute.xlu1 %808  ;;  %v2821_v2 = vmul.f32 %v4196_v22, %v622_v51  ;;  %v634_v47 = vand.u32 2147483647, %v2321_v38  ;;  %v635_v17 = vand.u32 2147483647, %v2337_v45 }
  0xb3   : > { %vm2807_vm11 = vcmp.lt.f32.partialorder %v4193_v30, 1.0  ;;  %v795_v12 = vpop.permute.xlu2 %794  ;;  %v636_v31 = vand.u32 2147483647, %v2335_v44  ;;  %v2827_v15 = vmul.f32 %v689_v60, %v2779_v13  ;;  %v818_v49 = vadd.f32 %v809_v50, %v800_v57 }
  0xb4   : > { %v815_v41 = vpop.permute.xlu0 %814  ;;  %vm2831_vm12 = vcmp.lt.f32.partialorder %v4108_v27, 1.0  ;;  %vm2835_vm13 = vcmp.lt.f32.partialorder %v632_v56, 1.0  ;;  %vm2839_vm14 = vcmp.lt.f32.partialorder %v633_v59, 1.0  ;;  %vm2843_vm15 = vcmp.lt.f32.partialorder %v634_v47, 1.0 }
  0xb5   : > { %vm2847_vm1 = vcmp.lt.f32.partialorder %v635_v17, 1.0  ;;  %vm2851_vm2 = vcmp.lt.f32.partialorder %v636_v31, 1.0  ;;  %vm2855_vm3 = vcmp.lt.f32.partialorder %v677_v40, 1.0  ;;  %v823_v23 = vrot.slane %v818_v49, 1 }
  0xb6   : > { %v841_v7 = vrot.slane %v818_v49, 2  ;;  %v643_v14 = vmul.f32 0.5, %v2309_v33  ;;  %v644_v13 = vmul.f32 0.5, %v2307_v32  ;;  %v645_v28 = vmul.f32 0.5, %v2323_v39 }
  0xb7   : > { %v646_v9 = vmul.f32 0.5, %v2321_v38  ;;  %v647_v58 = vmul.f32 0.5, %v2337_v45  ;;  %v648_v4 = vmul.f32 0.5, %v2335_v44  ;;  %v829_v57 = vsel %vm397_vm0, %v823_v23, %v826_v3 }
  0xb8   : > { %v832_v43 = vsel %vm397_vm0, %v826_v3, %v823_v23  ;;  %v848_v48 = vsel %vm846_vm10, %v841_v7, %v844_v8  ;;  %v851_v51 = vsel %vm846_vm10, %v844_v8, %v841_v7  ;;  %v836_v60 = vadd.f32 %v829_v57, %v818_v49  ;;  %v4212_v7 = vld [vmem:[#allocation5_spill] sm:$0xff] }
  0xb9   : > { %v837_v30 = vadd.f32 %v832_v43, %v819_v63  ;;  %v649_v50 = vmul.f32 %v643_v14, %v2309_v33  ;;  %v650_v21 = vmul.f32 %v644_v13, %v2307_v32  ;;  %998 = vrot.lane.b32.xlu2 %v2256_v11, %s2162_s6  ;;  %v651_v19 = vmul.f32 %v645_v28, %v2323_v39  ;;  %v4216_v57 = vld [vmem:[#allocation17_spill] sm:$0xff] }
  0xba   : > { %v652_v55 = vmul.f32 %v646_v9, %v2321_v38  ;;  %v653_v3 = vmul.f32 %v647_v58, %v2337_v45  ;;  %v654_v23 = vmul.f32 %v648_v4, %v2335_v44  ;;  %v2881_v52 = vadd.f32 %v848_v48, %v836_v60  ;;  %v2888_v38 = vpop.permute.xlu1 %877 }
  0xbb   : > { %v797_v27 = vpop.permute.xlu2 %796  ;;  %v2883_v8 = vadd.f32 %v851_v51, %v837_v30  ;;  %v4211_v63 = vand.u32 2147483647, %v2309_v33  ;;  %v2030_v32 = vadd.f32 -0.5, %v632_v56  ;;  %v2031_v13 = vadd.f32 -0.5, %v633_v59  ;;  %v4217_v30 = vld [vmem:[#allocation2_spill] sm:$0xff] }
  0xbc   : > { %v803_v14 = vadd.f32 %v797_v27, %v4212_v7  ;;  %v874_v11 = vpop.permute.xlu0 %873  ;;  %v2032_v39 = vadd.f32 -0.5, %v634_v47  ;;  %v2033_v28 = vadd.f32 -0.5, %v635_v17  ;;  %v2039_v45 = vadd.f32 -0.5, %v677_v40  ;;  %v4213_v40 = vld [vmem:[#allocation3_spill] sm:$0xff] }
  0xbd   : > { %v2029_v49 = vadd.f32 -0.5, %v4211_v63  ;;  %v630_v44 = vmul.f32 %v4196_v22, %v624_v26  ;;  %v2034_v9 = vadd.f32 -0.5, %v636_v31  ;;  %v708_v58 = vsel %vm2807_vm11, %v2736_v34, %v2740_v42 }
  0xbe   : > { %v2895_v33 = vadd.f32 %v815_v41, %v803_v14  ;;  %v662_v56 = vsel %vm2835_vm13, %v650_v21, %v2030_v32  ;;  %v663_v59 = vsel %vm2839_vm14, %v651_v19, %v2031_v13  ;;  %v2904_v47 = vadd.f32 %v795_v12, %v4213_v40 }
  0xbf   : > { %v661_v27 = vsel %vm2831_vm12, %v649_v50, %v2029_v49  ;;  %v664_v26 = vsel %vm2843_vm15, %v652_v55, %v2032_v39  ;;  %v665_v34 = vsel %vm2847_vm1, %v653_v3, %v2033_v28  ;;  %v666_v42 = vsel %vm2851_vm2, %v654_v23, %v2034_v9  ;;  %v4214_v55 = vld [vmem:[#allocation8_spill] sm:$0xff] }
  0xc0   : > { %v827_v37 = vrot.slane %v2895_v33, 1  ;;  %v845_v22 = vrot.slane %v2895_v33, 2  ;;  %v667_v21 = vmul.f32 4.0690105e-05, %v661_v27  ;;  %v668_v17 = vmul.f32 4.0690105e-05, %v662_v56 }
  0xc1   : > { %v669_v31 = vmul.f32 4.0690105e-05, %v663_v59  ;;  %v670_v19 = vmul.f32 4.0690105e-05, %v664_v26  ;;  %v671_v41 = vmul.f32 4.0690105e-05, %v665_v34  ;;  %v707_v12 = vsel %vm2855_vm3, %v2827_v15, %v2039_v45 }
  0xc2   : > { %v2918_v61 = vadd.f32 %v874_v11, %v4214_v55  ;;  %v672_v62 = vmul.f32 4.0690105e-05, %v666_v42  ;;  %v4215_v10 = vsel %vm2669_vm5, %v2661_v16, %v2663_v1  ;;  %v713_v6 = vmul.f32 4.10105e-05, %v707_v12  ;;  %v2933_v1 = vpop.permute.xlu1 %889 }
  0xc3   : > { %v712_v53 = vmul.f32 4.10105e-05, %v4215_v10  ;;  %v714_v18 = vmul.f32 4.10105e-05, %v708_v58  ;;  %v715_v4 = vadd.f32 %v2746_v46, %v667_v21  ;;  %v716_v43 = vadd.f32 %v4216_v57, %v668_v17  ;;  %v807_v0 = vpop.permute.xlu2 %806 }
  0xc4   : > { %v721_v48 = vand.u32 2147483647, %v2796_v36  ;;  %v717_v15 = vadd.f32 %v2792_v54, %v669_v31  ;;  %v722_v60 = vand.u32 2147483647, %v2818_v5  ;;  %v723_v24 = vand.u32 2147483647, %v2799_v29  ;;  %996 = vrot.lane.b32.xlu0 %v4217_v30, %s2162_s6  ;;  %v880_v16 = vpop.permute.xlu0 %879 }
  0xc5   : > { %v718_v51 = vadd.f32 %v712_v53, %v670_v19  ;;  %v719_v50 = vadd.f32 %v713_v6, %v671_v41  ;;  %v724_v46 = vand.u32 2147483647, %v2821_v2  ;;  %v725_v3 = vand.u32 2147483647, %v2813_v20  ;;  %v4232_v30 = vld [vmem:[#allocation6_spill] sm:$0xff] }
  0xc6   : > { %v726_v23 = vand.u32 2147483647, %v630_v44  ;;  %vm2937_vm4 = vcmp.lt.f32.partialorder %v721_v48, 1.0  ;;  %vm2941_vm5 = vcmp.lt.f32.partialorder %v722_v60, 1.0  ;;  %vm2945_vm6 = vcmp.lt.f32.partialorder %v723_v24, 1.0 }
  0xc7   : > { %v733_v32 = vmul.f32 0.5, %v2796_v36  ;;  %vm2950_vm7 = vcmp.lt.f32.partialorder %v724_v46, 1.0  ;;  %vm2954_vm8 = vcmp.lt.f32.partialorder %v725_v3, 1.0  ;;  %v734_v13 = vmul.f32 0.5, %v2818_v5 }
  0xc8   : > { %vm2958_vm9 = vcmp.lt.f32.partialorder %v726_v23, 1.0  ;;  %v735_v39 = vmul.f32 0.5, %v2799_v29  ;;  %v736_v28 = vmul.f32 0.5, %v2821_v2  ;;  %v737_v45 = vmul.f32 0.5, %v2813_v20 }
  0xc9   : > { %v738_v9 = vmul.f32 0.5, %v630_v44  ;;  %v739_v58 = vmul.f32 %v733_v32, %v2796_v36  ;;  %v740_v27 = vmul.f32 %v734_v13, %v2818_v5  ;;  %v2041_v56 = vadd.f32 -0.5, %v721_v48 }
  0xca   : > { %v2042_v59 = vadd.f32 -0.5, %v722_v60  ;;  %v741_v40 = vmul.f32 %v735_v39, %v2799_v29  ;;  %v742_v26 = vmul.f32 %v736_v28, %v2821_v2  ;;  %v743_v34 = vmul.f32 %v737_v45, %v2813_v20  ;;  %v896_v10 = vpop.permute.xlu1 %895  ;;  %v4231_v60 = vld [vmem:[#allocation10_spill] sm:$0xff] }
  0xcb   : > { %v744_v42 = vmul.f32 %v738_v9, %v630_v44  ;;  %v2043_v21 = vadd.f32 -0.5, %v723_v24  ;;  %v2044_v17 = vadd.f32 -0.5, %v724_v46  ;;  %v2045_v31 = vadd.f32 -0.5, %v725_v3  ;;  %v813_v41 = vpop.permute.xlu2 %812 }
  0xcc   : > { %v2046_v19 = vadd.f32 -0.5, %v726_v23  ;;  %v720_v12 = vadd.f32 %v714_v18, %v672_v62  ;;  %v751_v36 = vsel %vm2937_vm4, %v739_v58, %v2041_v56  ;;  %v752_v5 = vsel %vm2941_vm5, %v740_v27, %v2042_v59  ;;  %v892_v29 = vpop.permute.xlu0 %891  ;;  %v4230_v62 = vld [vmem:[#allocation7_spill] sm:$0xff] }
  0xcd   : > { %v817_v55 = vadd.f32 %v807_v0, %v2749_v35  ;;  %v753_v20 = vsel %vm2945_vm6, %v741_v40, %v2043_v21  ;;  %v754_v2 = vsel %vm2950_vm7, %v742_v26, %v2044_v17  ;;  %v755_v44 = vsel %vm2954_vm8, %v743_v34, %v2045_v31  ;;  %v4238_v17 = vld [vmem:[#allocation9_spill] sm:$0xff] }
  0xce   : > { %v886_v53 = vadd.f32 %v2888_v38, %v4230_v62  ;;  %v756_v6 = vsel %vm2958_vm9, %v744_v42, %v2046_v19  ;;  %v757_v18 = vmul.f32 4.340278e-05, %v751_v36  ;;  %v758_v57 = vmul.f32 4.340278e-05, %v752_v5  ;;  %v3013_v42 = vld [vmem:[%s2220_s27 + $0x20] sm:$0xff] }
  0xcf   : > { %v759_v35 = vmul.f32 4.340278e-05, %v753_v20  ;;  %v760_v48 = vmul.f32 4.340278e-05, %v754_v2  ;;  %v761_v0 = vmul.f32 4.340278e-05, %v755_v44  ;;  %v887_v24 = vadd.f32 %v880_v16, %v4231_v60 }
  0xd0   : > { %v2989_v46 = vmul.f32 %v4232_v30, %v4232_v30  ;;  %v763_v3 = vadd.f32 %v757_v18, %v715_v4  ;;  %v764_v23 = vadd.f32 %v758_v57, %v716_v43  ;;  %v825_v54 = vrot.slane %v817_v55, 1 }
  0xd1   : > { %v765_v63 = vadd.f32 %v759_v35, %v717_v15  ;;  %v762_v49 = vmul.f32 4.340278e-05, %v756_v6  ;;  %v766_v38 = vadd.f32 %v760_v48, %v718_v51  ;;  %v767_v32 = vadd.f32 %v761_v0, %v719_v50 }
  0xd2   : > { %v843_v7 = vrot.slane %v817_v55, 2  ;;  %1056 = vrot.lane.b32.xlu0 %v2989_v46, %s2161_s5  ;;  %v769_v14 = vadd.f32 %v764_v23, %v763_v3  ;;  %v4233_v11 = vrot.slane %v2742_v25, 1  ;;  %v820_v43 = vadd.f32 %v813_v41, %v2904_v47  ;;  %v971_v31 = vpop.permute.xlu1 %970 }
  0xd3   : > { %v4236_v50 = vrot.slane %v2742_v25, 2  ;;  %v872_v58 = vpop.permute.xlu2 %871  ;;  %v902_v40 = vadd.f32 %v892_v29, %v2918_v61  ;;  %v3017_v21 = vmul.f32 %v3013_v42, %v3013_v42  ;;  %v768_v29 = vadd.f32 %v762_v49, %v720_v12 }
  0xd4   : > { %v828_v16 = vsel %vm397_vm0, %v4233_v11, %v825_v54  ;;  %v4235_v39 = vmov %v4233_v11  ;;  %v770_v27 = vadd.f32 %v769_v14, %v765_v63  ;;  %v824_v56 = vrot.slane %v820_v43, 1  ;;  %v898_v47 = vpop.permute.xlu0 %897 }
  0xd5   : > { %v831_v4 = vsel %vm397_vm0, %v825_v54, %v4235_v39  ;;  %v834_v15 = vadd.f32 %v828_v16, %v2742_v25  ;;  %v847_v28 = vsel %vm846_vm10, %v4236_v50, %v843_v7  ;;  %v4237_v45 = vmov %v4236_v50  ;;  %v3063_v54 = vld [vmem:[%s2220_s27 + $0x10] sm:$0xff] }
  0xd6   : > { %v835_v51 = vadd.f32 %v831_v4, %v817_v55  ;;  %v850_v9 = vsel %vm846_vm10, %v843_v7, %v4237_v45  ;;  %v842_v59 = vrot.slane %v820_v43, 2  ;;  %v883_v25 = vadd.f32 %v872_v58, %v4238_v17 }
  0xd7   : > { %v853_v26 = vadd.f32 %v847_v28, %v834_v15  ;;  %v771_v19 = vadd.f32 %v770_v27, %v766_v38  ;;  %v830_v41 = vsel %vm397_vm0, %v824_v56, %v827_v37  ;;  %v833_v61 = vsel %vm397_vm0, %v827_v37, %v824_v56  ;;  %v3084_v28 = vld [vmem:[%s2220_s27 + $0x28] sm:$0xff]  ;;  %v4239_v56 = vld [vmem:[#allocation14_spill] sm:$0xff] }
  0xd8   : > { %v854_v34 = vadd.f32 %v850_v9, %v835_v51  ;;  %v849_v36 = vsel %vm846_vm10, %v842_v59, %v845_v22  ;;  %v838_v5 = vadd.f32 %v830_v41, %v820_v43  ;;  %v839_v55 = vadd.f32 %v833_v61, %v2895_v33  ;;  %v3080_v51 = vld [vmem:[%s2220_s27] sm:$0xff] }
  0xd9   : > { %v772_v20 = vadd.f32 %v771_v19, %v767_v32  ;;  %v852_v2 = vsel %vm846_vm10, %v845_v22, %v842_v59  ;;  %v910_v44 = vrot.slane %v902_v40, 1  ;;  %v928_v37 = vrot.slane %v902_v40, 2 }
  0xda   : > { %v3037_v62 = vadd.f32 %v849_v36, %v838_v5  ;;  %v3039_v6 = vadd.f32 %v852_v2, %v839_v55  ;;  %1062 = vrot.lane.b32.xlu0 %v3017_v21, %s2161_s5  ;;  %v901_v18 = vadd.f32 %v2933_v1, %v883_v25  ;;  %v3044_v35 = vadd.f32 %v896_v10, %v886_v53  ;;  %v3056_v53 = vpop.permute.xlu1 %976  ;;  %v4240_v2 = vld [vmem:[#allocation15_spill] sm:$0xff] }
  0xdb   : > { %v773_v57 = vadd.f32 %v772_v20, %v768_v29  ;;  %v3046_v12 = vadd.f32 %v898_v47, %v887_v24  ;;  %v876_v22 = vpop.permute.xlu2 %875  ;;  %v3058_v24 = vmul.f32 0.11111111, %v853_v26  ;;  %v3060_v3 = vmul.f32 0.11111111, %v854_v34 }
  0xdc   : > { %v907_v33 = vrot.slane %v901_v18, 1  ;;  %v925_v48 = vrot.slane %v901_v18, 2  ;;  %v973_v0 = vpop.permute.xlu0 %972  ;;  %v3067_v49 = vmul.f32 %v3063_v54, %v3063_v54  ;;  %v982_v50 = vadd.f32 %v3080_v51, %v971_v31 }
  0xdd   : > { %774 = vadd.xlane.f32.xlu1 %v773_v57  ;;  %v950_v7 = vmul.f32 %v3060_v3, %v3060_v3  ;;  %v949_v16 = vmul.f32 %v3058_v24, %v3058_v24  ;;  %v3088_v45 = vmul.f32 %v3084_v28, %v3084_v28  ;;  %v885_v59 = vadd.f32 %v876_v22, %v4239_v56 }
  0xde   : > { %v913_v60 = vsel %vm397_vm0, %v907_v33, %v910_v44  ;;  %v916_v30 = vsel %vm397_vm0, %v910_v44, %v907_v33  ;;  %v931_v1 = vsel %vm846_vm10, %v925_v48, %v928_v37  ;;  %v934_v10 = vsel %vm846_vm10, %v928_v37, %v925_v48  ;;  %1058 = vrot.lane.b32.xlu2 %v3067_v49, %s2161_s5 }
  0xdf   : > { %v919_v23 = vadd.f32 %v913_v60, %v901_v18  ;;  %v920_v63 = vadd.f32 %v916_v30, %v902_v40  ;;  %v3096_v40 = vld [vmem:[%s2220_s27 + $0x8] sm:$0xff]  ;;  %v3104_v31 = vmul.f32 0.11111111, %v2881_v52  ;;  %v911_v19 = vrot.slane %v3044_v35, 1  ;;  %v3126_v30 = vld [vmem:[%s2220_s27 + $0x38] sm:$0xff] }
  0xe0   : > { %v983_v47 = vadd.f32 %v3096_v40, %v973_v0  ;;  %v929_v36 = vrot.slane %v3044_v35, 2  ;;  %v3109_v20 = vmul.f32 0.11111111, %v2883_v8  ;;  %v3150_v56 = vmul.f32 2.0, %v3060_v3 }
  0xe1   : > { %v937_v38 = vadd.f32 %v931_v1, %v919_v23  ;;  %v938_v32 = vadd.f32 %v934_v10, %v920_v63  ;;  %v3137_v63 = vmul.f32 0.11111111, %v3037_v62  ;;  %vm569_vm11 = vcmask 0  }
  0xe2   : > { %1074 = vrot.lane.b32.xlu0 %v2989_v46, %s2162_s6  ;;  %v989_v27 = vpop.permute.xlu1 %988  ;;  %v952_v62 = vmul.f32 %v3109_v20, %v3109_v20 }
  0xe3   : > { %v943_v14 = vmul.f32 0.11111111, %v937_v38  ;;  %v944_v11 = vmul.f32 0.11111111, %v938_v32  ;;  %v882_v39 = vpop.permute.xlu2 %881  ;;  %v1000_v26 = vadd.f32 %v989_v27, %v982_v50  ;;  %v951_v27 = vmul.f32 %v3104_v31, %v3104_v31 }
  0xe4   : > { %v3077_v15 = vpop.permute.xlu0 %978  ;;  %v888_v44 = vadd.f32 %v882_v39, %v4240_v2 }
  0xe5   : > { %v955_v4 = vsub.f32 %v943_v14, %v949_v16  ;;  %v956_v43 = vsub.f32 %v944_v11, %v950_v7  ;;  %v1006_v41 = vrot.slane %v1000_v26, 1  ;;  %v1024_v29 = vrot.slane %v1000_v26, 2 }
  0xe6   : > { %1064 = vrot.lane.b32.xlu2 %v3088_v45, %s2161_s5  ;;  %v909_v14 = vrot.slane %v3046_v12, 1 }
  0xe7   : > { %v3090_v9 = vadd.f32 %v955_v4, %v949_v16  ;;  %v3092_v58 = vadd.f32 %v956_v43, %v950_v7  ;;  %v3141_v4 = vld [vmem:[%s2220_s27 + $0x18] sm:$0xff] }
  0xea   : > { %1080 = vrot.lane.b32.xlu0 %v3017_v21, %s2162_s6 }
  0xeb   : > { %v894_v34 = vpop.permute.xlu2 %893 }
  0xec   : > { %v903_v17 = vadd.f32 %v894_v34, %v885_v59  ;;  %v991_v25 = vpop.permute.xlu0 %990  ;;  %v3155_v34 = vmul.f32 0.11111111, %v3039_v6 }
  0xed   : > { %v1001_v61 = vadd.f32 %v991_v25, %v983_v47 }
  0xee   : > { %v908_v5 = vrot.slane %v903_v17, 1  ;;  %v926_v55 = vrot.slane %v903_v17, 2  ;;  %1076 = vrot.lane.b32.xlu2 %v3067_v49, %s2162_s6 }
  0xef   : > { %v1009_v37 = vrot.slane %v1001_v61, 1  ;;  %v1027_v18 = vrot.slane %v1001_v61, 2 }
  0xf0   : > { %v914_v52 = vsel %vm397_vm0, %v908_v5, %v911_v19  ;;  %v917_v57 = vsel %vm397_vm0, %v911_v19, %v908_v5  ;;  %v932_v33 = vsel %vm846_vm10, %v926_v55, %v929_v36  ;;  %v935_v48 = vsel %vm846_vm10, %v929_v36, %v926_v55 }
  0xf1   : > { %v921_v22 = vadd.f32 %v914_v52, %v903_v17  ;;  %v922_v8 = vadd.f32 %v917_v57, %v3044_v35  ;;  %v1012_v0 = vsel %vm397_vm0, %v1006_v41, %v1009_v37  ;;  %v1015_v60 = vsel %vm397_vm0, %v1009_v37, %v1006_v41 }
  0xf2   : > { %1411 = vrot.lane.b32.xlu0 %v3126_v30, %s2161_s5  ;;  %v1018_v1 = vadd.f32 %v1012_v0, %v1000_v26  ;;  %v1019_v10 = vadd.f32 %v1015_v60, %v1001_v61  ;;  %v1030_v23 = vsel %vm846_vm10, %v1024_v29, %v1027_v18  ;;  %v1033_v35 = vsel %vm846_vm10, %v1027_v18, %v1024_v29 }
  0xf3   : > { %v939_v38 = vadd.f32 %v932_v33, %v921_v22  ;;  %v940_v32 = vadd.f32 %v935_v48, %v922_v8  ;;  %v900_v7 = vpop.permute.xlu2 %899  ;;  %v927_v17 = vrot.slane %v3046_v12, 2  ;;  %v3160_v41 = vmul.f32 %v3080_v51, %v3080_v51 }
  0xf4   : > { %v1036_v11 = vadd.f32 %v1030_v23, %v1018_v1  ;;  %v1037_v16 = vadd.f32 %v1033_v35, %v1019_v10  ;;  %v906_v39 = vadd.f32 %v900_v7, %v888_v44  ;;  %v3180_v44 = vld [vmem:[%s2220_s27 + $0x30] sm:$0xff]  ;;  %v953_v8 = vmul.f32 %v3137_v63, %v3137_v63 }
  0xf5   : > { %v945_v43 = vmul.f32 0.11111111, %v939_v38  ;;  %v946_v50 = vmul.f32 0.11111111, %v940_v32  ;;  %v3201_v0 = vmul.f32 %v3126_v30, %v3126_v30  ;;  %v954_v1 = vmul.f32 %v3155_v34, %v3155_v34 }
  0xf6   : > { %994 = vrot.lane.b32.xlu1 %v3141_v4, %s2162_s6  ;;  %v3152_v59 = vmul.f32 0.11111111, %v1037_v16  ;;  %v912_v47 = vrot.slane %v906_v39, 1  ;;  %v930_v26 = vrot.slane %v906_v39, 2  ;;  %v3184_v37 = vmul.f32 0.11111111, %v1036_v11  ;;  %1082 = vrot.lane.b32.xlu2 %v3088_v45, %s2162_s6 }
  0xf7   : > { %v957_v25 = vsub.f32 %v945_v43, %v951_v27  ;;  %v958_v19 = vsub.f32 %v946_v50, %v952_v62  ;;  %v3215_v32 = vmul.f32 %v3141_v4, %v3141_v4  ;;  %v3224_v11 = vld [vmem:[%s2220_s27 + $0x40] sm:$0xff]  ;;  %v3247_v43 = vld [vmem:[%s2220_s27 + $0x48] sm:$0xff] }
  0xf8   : > { %v3164_v61 = vmul.f32 %v3152_v59, %v3060_v3  ;;  %v3168_v36 = vmul.f32 %v3150_v56, %v3152_v59  ;;  %v915_v6 = vsel %vm397_vm0, %v909_v14, %v912_v47  ;;  %v918_v29 = vsel %vm397_vm0, %v912_v47, %v909_v14 }
  0xf9   : > { %v3172_v5 = vadd.f32 %v957_v25, %v951_v27  ;;  %v3174_v55 = vadd.f32 %v958_v19, %v952_v62  ;;  %v923_v2 = vadd.f32 %v915_v6, %v3046_v12  ;;  %v924_v18 = vadd.f32 %v918_v29, %v906_v39  ;;  %v3260_v62 = vld [vmem:[%s2220_s27 + $0x58] sm:$0xff] }
  0xfa   : > { %4241 = vst [vmem:[#allocation4_spill] sm:$0xff] %v3164_v61  ;;  %1427 = vrot.lane.b32.xlu0 %v3180_v44, %s2162_s6  ;;  %v933_v52 = vsel %vm846_vm10, %v927_v17, %v930_v26  ;;  %v936_v57 = vsel %vm846_vm10, %v930_v26, %v927_v17  ;;  %v3193_v12 = vmul.f32 2.0, %v3058_v24  ;;  %v3207_v10 = vmul.f32 %v3184_v37, %v3058_v24  ;;  %v3266_v26 = vld [vmem:[%s2220_s27 + $0x50] sm:$0xff] }
  0xfb   : > { %4242 = vst [vmem:[#allocation16_spill] sm:$0xff] %v3168_v36  ;;  %v941_v33 = vadd.f32 %v933_v52, %v923_v2  ;;  %v942_v48 = vadd.f32 %v936_v57, %v924_v18  ;;  %v3232_v16 = vmul.f32 %v3224_v11, %v3224_v11  ;;  %v975_v39 = vpop.permute.xlu2 %974  ;;  %v3251_v50 = vmul.f32 %v3247_v43, %v3247_v43 }
  0xfc   : > { %4243 = vst [vmem:[#allocation5_spill] sm:$0xff] %v3207_v10  ;;  %v3211_v23 = vmul.f32 %v3193_v12, %v3184_v37  ;;  %v984_v47 = vadd.f32 %v3063_v54, %v975_v39  ;;  %v3274_v19 = vmul.f32 %v3266_v26, %v3266_v26  ;;  %v3280_v52 = vmul.f32 %v3180_v44, %v3180_v44 }
  0xfd   : > { %v947_v22 = vmul.f32 0.11111111, %v941_v33  ;;  %v948_v60 = vmul.f32 0.11111111, %v942_v48 }
  0xfe   : > { %1054 = vrot.lane.b32.xlu1 %v3160_v41, %s2161_s5  ;;  %4244 = vst [vmem:[#allocation3_spill] sm:$0xff] %v3211_v23  ;;  %1413 = vrot.lane.b32.xlu2 %v3224_v11, %s2161_s5 }
  0xff   : > { %v959_v35 = vsub.f32 %v947_v22, %v953_v8  ;;  %v960_v38 = vsub.f32 %v948_v60, %v954_v1 }
 0x101   : > { %v3217_v7 = vadd.f32 %v959_v35, %v953_v8  ;;  %v3221_v14 = vadd.f32 %v960_v38, %v954_v1  ;;  %v3292_v8 = vld [vmem:[%s2226_s30 + $0x8] sm:$0xff]  ;;  %v986_v35 = vadd.f32 %v3013_v42, %v3077_v15 }
 0x102   : > { %1495 = vrot.lane.b32.xlu0 %v3201_v0, %s2161_s5  ;;  %v3296_v60 = vmul.f32 %v3292_v8, %v3096_v40 }
 0x103   : > { %v981_v27 = vpop.permute.xlu2 %980 }
 0x104   : > { %v987_v22 = vadd.f32 %v3084_v28, %v981_v27  ;;  %4245 = vst [vmem:[#allocation8_spill] sm:$0xff] %v3296_v60 }
 0x106   : > { %1060 = vrot.lane.b32.xlu1 %v3215_v32, %s2161_s5  ;;  %1429 = vrot.lane.b32.xlu2 %v3126_v30, %s2162_s6 }
 0x10a   : > { %1497 = vrot.lane.b32.xlu0 %v3232_v16, %s2161_s5 }
 0x10b   : > { %v993_v6 = vpop.permute.xlu2 %992 }
 0x10c   : > { %v3276_v2 = vadd.f32 %v993_v6, %v984_v47 }
 0x10e   : > { %1072 = vrot.lane.b32.xlu1 %v3160_v41, %s2162_s6  ;;  %1431 = vrot.lane.b32.xlu2 %v3224_v11, %s2162_s6 }
 0x112   : > { %1513 = vrot.lane.b32.xlu0 %v3201_v0, %s2162_s6 }
 0x113   : > { %v999_v1 = vpop.permute.xlu2 %998 }
 0x114   : > { %v1005_v38 = vadd.f32 %v999_v1, %v987_v22 }
 0x116   : > { %1078 = vrot.lane.b32.xlu1 %v3215_v32, %s2162_s6  ;;  %1499 = vrot.lane.b32.xlu2 %v3251_v50, %s2161_s5  ;;  %v1011_v27 = vrot.slane %v1005_v38, 1  ;;  %v1029_v47 = vrot.slane %v1005_v38, 2 }
 0x11a   : > { %1515 = vrot.lane.b32.xlu0 %v3232_v16, %s2162_s6 }
 0x11e   : > { %1409 = vrot.lane.b32.xlu1 %v3180_v44, %s2161_s5  ;;  %1417 = vrot.lane.b32.xlu2 %v3266_v26, %s2161_s5 }
 0x122   : > { %1437 = vrot.lane.b32.xlu0 %v3260_v62, %s2162_s6 }
 0x123   : > { %v560_v17 = vpop.xlane.xlu0 %559 }
 0x124   : > { %v561_v25 = vrot.slane %v560_v17, 4 }
 0x126   : > { %1415 = vrot.lane.b32.xlu1 %v3247_v43, %s2161_s5  ;;  %v562_v29 = vadd.f32 %v561_v25, %v560_v17  ;;  %1517 = vrot.lane.b32.xlu2 %v3251_v50, %s2162_s6  ;;  %v3306_v25 = vmul.f32 %v3260_v62, %v3260_v62 }
 0x128   : > { %v563_v18 = vrot.slane %v562_v29, 2 }
 0x12a   : > { %1519 = vrot.lane.b32.xlu0 %v3274_v19, %s2162_s6  ;;  %v564_v57 = vadd.f32 %v563_v18, %v562_v29  ;;  %v2128_v29 = vld [vmem:[%s2226_s30 + $0x10] sm:$0xff] }
 0x12b   : > { %v3310_v15 = vmul.f32 %v2128_v29, %v3063_v54 }
 0x12c   : > { %v565_v33 = vrot.slane %v564_v57, 1 }
 0x12d   : > { %4246 = vst [vmem:[#allocation17_spill] sm:$0xff] %v3310_v15 }
 0x12e   : > { %1493 = vrot.lane.b32.xlu1 %v3280_v52, %s2161_s5  ;;  %v566_v48 = vadd.f32 %v565_v33, %v564_v57  ;;  %1501 = vrot.lane.b32.xlu2 %v3274_v19, %s2161_s5 }
 0x130   : > { %2056 = vpush %v566_v48 }
 0x132   : > { %1152 = vrot.lane.b32.xlu0 %v3296_v60, %s2161_s5 }
 0x136   : > { %1433 = vrot.lane.b32.xlu1 %v3247_v43, %s2162_s6  ;;  %v997_v39 = vpop.permute.xlu0 %996  ;;  %1521 = vrot.lane.b32.xlu2 %v3306_v25, %s2162_s6 }
 0x137   : > { %v1004_v17 = vadd.f32 %v997_v39, %v986_v35 }
 0x138   : > { %v1059_v39 = vpop.permute.xlu2 %1058 }
 0x139   : > { %v1008_v40 = vrot.slane %v1004_v17, 1  ;;  %v1026_v6 = vrot.slane %v1004_v17, 2 }
 0x13a   : > { %1154 = vrot.lane.b32.xlu0 %v3310_v15, %s2161_s5 }
 0x13b   : > { %v1014_v18 = vsel %vm397_vm0, %v1008_v40, %v1011_v27  ;;  %v1017_v57 = vsel %vm397_vm0, %v1011_v27, %v1008_v40  ;;  %v1032_v33 = vsel %vm846_vm10, %v1026_v6, %v1029_v47  ;;  %v1035_v48 = vsel %vm846_vm10, %v1029_v47, %v1026_v6 }
 0x13c   : > { %v1022_v22 = vadd.f32 %v1014_v18, %v1004_v17  ;;  %v1023_v1 = vadd.f32 %v1017_v57, %v1005_v38  ;;  %v3327_v27 = vmul.f32 2.0, %v3137_v63  ;;  %v3342_v6 = vmul.f32 2.0, %v3155_v34  ;;  %v2129_v18 = vld [vmem:[%s2226_s30] sm:$0xff] }
 0x13d   : > { %v3348_v57 = vmul.f32 %v2129_v18, %v3180_v44 }
 0x13e   : > { %1511 = vrot.lane.b32.xlu1 %v3280_v52, %s2162_s6  ;;  %v1040_v54 = vadd.f32 %v1032_v33, %v1022_v22  ;;  %v1041_v35 = vadd.f32 %v1035_v48, %v1023_v1  ;;  %4249 = vst [vmem:[#allocation10_spill] sm:$0xff] %v3342_v6 }
 0x13f   : > { %4250 = vst [vmem:[#allocation6_spill] sm:$0xff] %v3348_v57  ;;  %1589 = vrot.lane.b32.xlu2 %v3348_v57, %s2161_s5 }
 0x140   : > { %v3329_v40 = vmul.f32 0.11111111, %v1040_v54  ;;  %v3331_v61 = vmul.f32 0.11111111, %v1041_v35  ;;  %v1065_v22 = vpop.permute.xlu2 %1064 }
 0x142   : > { %v3335_v47 = vmul.f32 %v3329_v40, %v3137_v63  ;;  %v3339_v38 = vmul.f32 %v3327_v27, %v3329_v40  ;;  %1170 = vrot.lane.b32.xlu0 %v3296_v60, %s2162_s6  ;;  %v3354_v33 = vmul.f32 %v3331_v61, %v3155_v34  ;;  %v3358_v48 = vmul.f32 %v3342_v6, %v3331_v61  ;;  %v3375_v6 = vld [vmem:[%s2226_s30 + $0x18] sm:$0xff] }
 0x144   : > { %4247 = vst [vmem:[#allocation2_spill] sm:$0xff] %v3335_v47  ;;  %v1057_v17 = vpop.permute.xlu0 %1056 }
 0x145   : > { %4248 = vst [vmem:[#allocation7_spill] sm:$0xff] %v3339_v38  ;;  %v1067_v47 = vadd.f32 %v1057_v17, %v2989_v46  ;;  %v1071_v46 = vadd.f32 %v1065_v22, %v3088_v45  ;;  %v3391_v45 = vmul.f32 %v2128_v29, %v3224_v11 }
 0x146   : > { %1419 = vrot.lane.b32.xlu1 %v3260_v62, %s2161_s5  ;;  %4251 = vst [vmem:[#allocation12_spill] sm:$0xff] %v3354_v33  ;;  %v1068_v33 = vadd.f32 %v1059_v39, %v3067_v49 }
 0x147   : > { %4252 = vst [vmem:[#allocation9_spill] sm:$0xff] %v3358_v48 }
 0x148   : > { %v1077_v48 = vpop.permute.xlu2 %1076  ;;  %4255 = vst [vmem:[#allocation18_spill] sm:$0xff] %v3391_v45 }
 0x149   : > { %v3370_v36 = vadd.f32 %v1077_v48, %v1068_v33 }
 0x14a   : > { %1607 = vrot.lane.b32.xlu0 %v3348_v57, %s2162_s6  ;;  %v3379_v57 = vmul.f32 %v3375_v6, %v3141_v4 }
 0x14c   : > { %v1063_v1 = vpop.permute.xlu0 %1062  ;;  %4253 = vst [vmem:[#allocation14_spill] sm:$0xff] %v3379_v57  ;;  %1156 = vrot.lane.b32.xlu2 %v3379_v57, %s2161_s5 }
 0x14e   : > { %1435 = vrot.lane.b32.xlu1 %v3266_v26, %s2162_s6 }
 0x150   : > { %v775_v54 = vpop.xlane.xlu1 %774  ;;  %v1083_v33 = vpop.permute.xlu2 %1082 }
 0x151   : > { %v776_v35 = vrot.slane %v775_v54, 4  ;;  %v1089_v48 = vadd.f32 %v1083_v33, %v1071_v46 }
 0x152   : > { %1174 = vrot.lane.b32.xlu0 %v3379_v57, %s2162_s6  ;;  %v3522_v57 = vld [vmem:[%s2215_s24 + $0x8] sm:$0xff] }
 0x153   : > { %v777_v10 = vadd.f32 %v776_v35, %v775_v54  ;;  %v1113_v22 = vrot.slane %v1089_v48, 2 }
 0x154   : > { %v1075_v38 = vpop.permute.xlu0 %1074  ;;  %1593 = vrot.lane.b32.xlu2 %v3391_v45, %s2161_s5 }
 0x155   : > { %v778_v23 = vrot.slane %v777_v10, 2  ;;  %v3372_v60 = vadd.f32 %v1075_v38, %v1067_v47  ;;  %v1070_v47 = vadd.f32 %v1063_v1, %v3017_v21  ;;  %v3388_v38 = vmul.f32 %v2129_v18, %v3080_v51 }
 0x156   : > { %1503 = vrot.lane.b32.xlu1 %v3306_v25, %s2161_s5 }
 0x157   : > { %v779_v49 = vadd.f32 %v778_v23, %v777_v10  ;;  %4254 = vst [vmem:[#allocation15_spill] sm:$0xff] %v3388_v38  ;;  %v1095_v23 = vrot.slane %v1089_v48, 1 }
 0x159   : > { %v780_v39 = vrot.slane %v779_v49, 1 }
 0x15b   : > { %v781_v17 = vadd.f32 %v780_v39, %v779_v49  ;;  %v3415_v49 = vmul.f32 %v3292_v8, %v3126_v30 }
 0x15c   : > { %v1081_v54 = vpop.permute.xlu0 %1080 }
 0x15d   : > { %2058 = vpush %v781_v17  ;;  %v1088_v10 = vadd.f32 %v1081_v54, %v1070_v47  ;;  %v1136_v54 = vmul.f32 %v3329_v40, %v3329_v40  ;;  %1609 = vrot.lane.b32.xlu2 %v3415_v49, %s2162_s6 }
 0x15e   : > { %1150 = vrot.lane.b32.xlu1 %v3388_v38, %s2161_s5 }
 0x15f   : > { %v1092_v21 = vrot.slane %v1088_v10, 1  ;;  %v1110_v1 = vrot.slane %v1088_v10, 2 }
 0x161   : > { %v1098_v51 = vsel %vm397_vm0, %v1092_v21, %v1095_v23  ;;  %v1101_v29 = vsel %vm397_vm0, %v1095_v23, %v1092_v21  ;;  %v1116_v18 = vsel %vm846_vm10, %v1110_v1, %v1113_v22  ;;  %v1119_v35 = vsel %vm846_vm10, %v1113_v22, %v1110_v1  ;;  %s2057_s11 = spop %2056 }
 0x162   : > { %v1106_v46 = vadd.f32 %v1098_v51, %v1088_v10  ;;  %v1107_v39 = vadd.f32 %v1101_v29, %v1089_v48  ;;  %v568_v47 = vstv %s2057_s11  ;;  %v1137_v23 = vmul.f32 %v3331_v61, %v3331_v61  ;;  %v1414_v10 = vpop.permute.xlu2 %1413 }
 0x163   : > { %570 = vst.msk [vmem:[%s3411_s10] sm:$0x1] %vm569_vm11, %v568_v47  ;;  %v985_v48 = vadd.f32 %v3141_v4, %v3056_v53  ;;  %v3434_v61 = vadd.f32 0.0001, %v3217_v7  ;;  %v1007_v53 = vrot.slane %v3276_v2, 1  ;;  %v1025_v4 = vrot.slane %v3276_v2, 2 }
 0x164   : > { %v1124_v17 = vadd.f32 %v1116_v18, %v1106_v46  ;;  %v1125_v33 = vadd.f32 %v1119_v35, %v1107_v39  ;;  %v1412_v21 = vpop.permute.xlu0 %1411  ;;  %v2131_v18 = vld [vmem:[%s2226_s30 + $0x20] sm:$0xff] }
 0x165   : > { %v3431_v35 = vmul.f32 %v2131_v18, %v3013_v42  ;;  %4257 = vst [vmem:[#allocation20_spill] sm:$0xff] %v3434_v61  ;;  %1611 = vrot.lane.b32.xlu2 %v3391_v45, %s2162_s6 }
 0x166   : > { %1591 = vrot.lane.b32.xlu1 %v3415_v49, %s2161_s5  ;;  %v1130_v8 = vmul.f32 0.11111111, %v1124_v17  ;;  %v1131_v22 = vmul.f32 0.11111111, %v1125_v33  ;;  %v3441_v33 = vadd.f32 0.0001, %v3221_v14 }
 0x167   : > { %4256 = vst [vmem:[#allocation19_spill] sm:$0xff] %v3431_v35  ;;  %1158 = vrot.lane.b32.xlu0 %v3431_v35, %s2161_s5 }
 0x168   : > { %v995_v1 = vpop.permute.xlu1 %994  ;;  %v1142_v51 = vsub.f32 %v1130_v8, %v1136_v54  ;;  %v1143_v29 = vsub.f32 %v1131_v22, %v1137_v23  ;;  %4258 = vst [vmem:[#allocation21_spill] sm:$0xff] %v3441_v33 }
 0x169   : > { %v1003_v40 = vadd.f32 %v995_v1, %v985_v48 }
 0x16a   : > { %v1292_v46 = vadd.f32 %v1142_v51, %v1136_v54  ;;  %v1293_v39 = vadd.f32 %v1143_v29, %v1137_v23 }
 0x16b   : > { %v1010_v47 = vrot.slane %v1003_v40, 1  ;;  %v1028_v17 = vrot.slane %v1003_v40, 2 }
 0x16c   : > { %v1298_v42 = vadd.f32 0.0009, %v1292_v46  ;;  %v1299_v8 = vadd.f32 0.0009, %v1293_v39 }
 0x16d   : > { %v1013_v7 = vsel %vm397_vm0, %v1007_v53, %v1010_v47  ;;  %v1016_v54 = vsel %vm397_vm0, %v1010_v47, %v1007_v53  ;;  %v1031_v23 = vsel %vm846_vm10, %v1025_v4, %v1028_v17  ;;  %v1034_v22 = vsel %vm846_vm10, %v1028_v17, %v1025_v4  ;;  %v2132_v53 = vld [vmem:[%s2226_s30 + $0x28] sm:$0xff] }
 0x16e   : > { %v1020_v48 = vadd.f32 %v1013_v7, %v3276_v2  ;;  %v1021_v1 = vadd.f32 %v1016_v54, %v1003_v40  ;;  %1168 = vrot.lane.b32.xlu1 %v3388_v38, %s2162_s6  ;;  %v3455_v14 = vmul.f32 %v1298_v42, %v3434_v61  ;;  %v3458_v51 = vmul.f32 %v1299_v8, %v3441_v33  ;;  %v1430_v2 = vpop.permute.xlu2 %1429  ;;  %v3466_v40 = vpop.permute.xlu0 %1427 }
 0x16f   : > { %v3462_v47 = vmul.f32 %v2132_v53, %v3260_v62  ;;  %v3473_v42 = vmul.f32 2.0, %v3109_v20  ;;  %v3477_v8 = vmul.f32 %v3375_v6, %v3247_v43  ;;  %v3482_v7 = vmul.f32 2.0, %v3104_v31 }
 0x170   : > { %v1038_v29 = vadd.f32 %v1031_v23, %v1020_v48  ;;  %v1039_v46 = vadd.f32 %v1034_v22, %v1021_v1  ;;  %v1055_v39 = vpop.permute.xlu1 %1054  ;;  %v3503_v1 = vmul.f32 %v2131_v18, %v3266_v26  ;;  %v3516_v18 = vmul.f32 %v2132_v53, %v3084_v28 }
 0x171   : > { %4259 = vst [vmem:[#allocation22_spill] sm:$0xff] %v3477_v8  ;;  %1599 = vrot.lane.b32.xlu0 %v3462_v47, %s2161_s5  ;;  %2091 = vrcp.f32 %v3455_v14 }
 0x172   : > { %v3468_v4 = vmul.f32 0.11111111, %v1038_v29  ;;  %v3470_v17 = vmul.f32 0.11111111, %v1039_v46  ;;  %v1423_v29 = vadd.f32 %v3224_v11, %v1414_v10  ;;  %v1422_v46 = vadd.f32 %v3126_v30, %v1412_v21  ;;  %1160 = vrot.lane.b32.xlu2 %v3516_v18, %s2161_s5 }
 0x173   : > { %2093 = vrcp.f32 %v3458_v51 }
 0x174   : > { %v3486_v54 = vmul.f32 %v3470_v17, %v3109_v20  ;;  %v3490_v23 = vmul.f32 %v3473_v42, %v3470_v17  ;;  %v3494_v22 = vmul.f32 %v3468_v4, %v3104_v31  ;;  %v3498_v6 = vmul.f32 %v3482_v7, %v3468_v4 }
 0x176   : > { %4260 = vst [vmem:[#allocation23_spill] sm:$0xff] %v3486_v54  ;;  %1595 = vrot.lane.b32.xlu1 %v3477_v8, %s2161_s5  ;;  %v1432_v54 = vpop.permute.xlu2 %1431  ;;  %v1496_v45 = vpop.permute.xlu0 %1495 }
 0x177   : > { %4261 = vst [vmem:[#allocation24_spill] sm:$0xff] %v3490_v23  ;;  %v1066_v23 = vadd.f32 %v1055_v39, %v3160_v41 }
 0x178   : > { %4262 = vst [vmem:[#allocation25_spill] sm:$0xff] %v3494_v22  ;;  %v1061_v48 = vpop.permute.xlu1 %1060  ;;  %v3509_v22 = vadd.f32 %v1430_v2, %v1422_v46  ;;  %v1093_v2 = vrot.slane %v3372_v60, 1 }
 0x179   : > { %4263 = vst [vmem:[#allocation26_spill] sm:$0xff] %v3498_v6  ;;  %1615 = vrot.lane.b32.xlu0 %v3503_v1, %s2162_s6  ;;  %v3511_v6 = vadd.f32 %v1432_v54, %v1423_v29  ;;  %v1111_v54 = vrot.slane %v3372_v60, 2  ;;  %v1069_v38 = vadd.f32 %v1061_v48, %v3215_v32  ;;  %v3552_v32 = vld [vmem:[%s2215_s24] sm:$0xff]  ;;  %v1091_v48 = vrot.slane %v3370_v36, 1 }
 0x17a   : > { %1176 = vrot.lane.b32.xlu2 %v3431_v35, %s2162_s6  ;;  %4264 = vst [vmem:[#allocation27_spill] sm:$0xff] %v3552_v32 }
 0x17e   : > { %1172 = vrot.lane.b32.xlu1 %v3310_v15, %s2162_s6  ;;  %v1500_v10 = vpop.permute.xlu2 %1499  ;;  %v1498_v21 = vpop.permute.xlu0 %1497  ;;  %v1506_v15 = vadd.f32 %v1496_v45, %v3201_v0  ;;  %v1132_v0 = vmul.f32 %v3184_v37, %v3184_v37 }
 0x180   : > { %v1073_v11 = vpop.permute.xlu1 %1072 }
 0x181   : > { %v1084_v30 = vadd.f32 %v1073_v11, %v1066_v23  ;;  %1332 = vrot.lane.b32.xlu0 %v3522_v57, %s2161_s5 }
 0x182   : > { %1617 = vrot.lane.b32.xlu2 %v3462_v47, %s2162_s6 }
 0x183   : > { %v1090_v28 = vrot.slane %v1084_v30, 1  ;;  %v1108_v53 = vrot.slane %v1084_v30, 2 }
 0x185   : > { %v1096_v41 = vsel %vm397_vm0, %v1090_v28, %v1093_v2  ;;  %v1099_v39 = vsel %vm397_vm0, %v1093_v2, %v1090_v28  ;;  %v1114_v23 = vsel %vm846_vm10, %v1108_v53, %v1111_v54  ;;  %v1117_v29 = vsel %vm846_vm10, %v1111_v54, %v1108_v53 }
 0x186   : > { %v1102_v46 = vadd.f32 %v1096_v41, %v1084_v30  ;;  %v1103_v11 = vadd.f32 %v1099_v39, %v3372_v60  ;;  %1613 = vrot.lane.b32.xlu1 %v3477_v8, %s2162_s6  ;;  %v1133_v54 = vmul.f32 %v3152_v59, %v3152_v59  ;;  %v3545_v28 = vpop.permute.xlu2 %1417  ;;  %v1514_v60 = vpop.permute.xlu0 %1513  ;;  %v1109_v59 = vrot.slane %v3370_v36, 2 }
 0x187   : > { %v3549_v45 = vadd.f32 %v1514_v60, %v1506_v15 }
 0x188   : > { %v1120_v33 = vadd.f32 %v1114_v23, %v1102_v46  ;;  %v1121_v61 = vadd.f32 %v1117_v29, %v1103_v11  ;;  %v1079_v2 = vpop.permute.xlu1 %1078  ;;  %v3559_v23 = vadd.f32 0.0001, %v3090_v9 }
 0x189   : > { %v1087_v30 = vadd.f32 %v1079_v2, %v1069_v38  ;;  %1336 = vrot.lane.b32.xlu0 %v3552_v32, %s2162_s6 }
 0x18a   : > { %v1126_v53 = vmul.f32 0.11111111, %v1120_v33  ;;  %v1127_v41 = vmul.f32 0.11111111, %v1121_v61 }
 0x18b   : > { %v1094_v38 = vrot.slane %v1087_v30, 1  ;;  %v1112_v39 = vrot.slane %v1087_v30, 2 }
 0x18c   : > { %v1138_v61 = vsub.f32 %v1126_v53, %v1132_v0  ;;  %v1139_v33 = vsub.f32 %v1127_v41, %v1133_v54  ;;  %v3573_v53 = vadd.f32 0.0001, %v3092_v58  ;;  %v1134_v58 = vmul.f32 %v3468_v4, %v3468_v4 }
 0x18d   : > { %v1097_v37 = vsel %vm397_vm0, %v1091_v48, %v1094_v38  ;;  %v1100_v15 = vsel %vm397_vm0, %v1094_v38, %v1091_v48  ;;  %v1115_v29 = vsel %vm846_vm10, %v1109_v59, %v1112_v39  ;;  %v1118_v46 = vsel %vm846_vm10, %v1112_v39, %v1109_v59 }
 0x18e   : > { %v1288_v11 = vadd.f32 %v1138_v61, %v1132_v0  ;;  %v1289_v2 = vadd.f32 %v1139_v33, %v1133_v54  ;;  %v1104_v9 = vadd.f32 %v1097_v37, %v3370_v36  ;;  %v1105_v60 = vadd.f32 %v1100_v15, %v1087_v30  ;;  %1597 = vrot.lane.b32.xlu1 %v3503_v1, %s2161_s5  ;;  %s2059_s12 = spop %2058  ;;  %v3594_v37 = vld [vmem:[%s2215_s24 + $0x18] sm:$0xff] }
 0x18f   : > { %v783_v41 = vstv %s2059_s12  ;;  %v1508_v48 = vadd.f32 %v1500_v10, %v3251_v50  ;;  %v1507_v38 = vadd.f32 %v1498_v21, %v3232_v16  ;;  %v1448_v30 = vrot.slane %v3509_v22, 1  ;;  %v1518_v10 = vpop.permute.xlu2 %1517  ;;  %v1516_v21 = vpop.permute.xlu0 %1515  ;;  %4265 = vst [vmem:[#allocation28_spill] sm:$0xff] %v3594_v37 }
 0x190   : > { %v1294_v35 = vadd.f32 0.0009, %v1288_v11  ;;  %v1295_v8 = vadd.f32 0.0009, %v1289_v2  ;;  %v1122_v0 = vadd.f32 %v1115_v29, %v1104_v9  ;;  %v1123_v54 = vadd.f32 %v1118_v46, %v1105_v60  ;;  %2047 = vst.msk [vmem:[%s3411_s10 + $0x1] sm:$0x1] %vm569_vm11, %v783_v41  ;;  %v1410_v36 = vpop.permute.xlu1 %1409 }
 0x191   : > { %v1135_v50 = vmul.f32 %v3470_v17, %v3470_v17  ;;  %v1421_v16 = vadd.f32 %v3180_v44, %v1410_v36  ;;  %1759 = vrot.lane.b32.xlu0 %v3594_v37, %s2162_s6  ;;  %v1466_v4 = vrot.slane %v3509_v22, 2  ;;  %v1526_v44 = vadd.f32 %v1518_v10, %v1508_v48  ;;  %v3618_v10 = vld [vmem:[%s2215_s24 + $0x10] sm:$0xff] }
 0x192   : > { %v3588_v59 = vmul.f32 %v1294_v35, %v3559_v23  ;;  %v3591_v39 = vmul.f32 %v1295_v8, %v3573_v53  ;;  %v1128_v61 = vmul.f32 0.11111111, %v1122_v0  ;;  %v1129_v33 = vmul.f32 0.11111111, %v1123_v54  ;;  %4266 = vst [vmem:[#allocation29_spill] sm:$0xff] %v3618_v10  ;;  %1751 = vrot.lane.b32.xlu2 %v3618_v10, %s2161_s5 }
 0x193   : > { %v1439_v17 = vadd.f32 %v3466_v40, %v1421_v16  ;;  %v1525_v15 = vadd.f32 %v1516_v21, %v1507_v38  ;;  %v3601_v29 = vadd.f32 0.0001, %v3172_v5  ;;  %v3604_v8 = vadd.f32 0.0001, %v3174_v55 }
 0x194   : > { %v1140_v35 = vsub.f32 %v1128_v61, %v1134_v58  ;;  %v1141_v46 = vsub.f32 %v1129_v33, %v1135_v50  ;;  %v1533_v9 = vrot.slane %v1526_v44, 1  ;;  %v1551_v40 = vrot.slane %v1526_v44, 2 }
 0x195   : > { %v1445_v11 = vrot.slane %v1439_v17, 1  ;;  %v1463_v2 = vrot.slane %v1439_v17, 2  ;;  %v1530_v48 = vrot.slane %v1525_v15, 1  ;;  %v1548_v61 = vrot.slane %v1525_v15, 2 }
 0x196   : > { %v1290_v60 = vadd.f32 %v1140_v35, %v1134_v58  ;;  %v1291_v41 = vadd.f32 %v1141_v46, %v1135_v50  ;;  %1178 = vrot.lane.b32.xlu1 %v3516_v18, %s2162_s6  ;;  %2095 = vrcp.f32 %v3588_v59 }
 0x197   : > { %v1451_v5 = vsel %vm397_vm0, %v1445_v11, %v1448_v30  ;;  %v1454_v38 = vsel %vm397_vm0, %v1448_v30, %v1445_v11  ;;  %v1469_v55 = vsel %vm846_vm10, %v1463_v2, %v1466_v4  ;;  %v1472_v0 = vsel %vm846_vm10, %v1466_v4, %v1463_v2 }
 0x198   : > { %v1296_v54 = vadd.f32 0.0009, %v1290_v60  ;;  %v1297_v36 = vadd.f32 0.0009, %v1291_v41  ;;  %v1457_v58 = vadd.f32 %v1451_v5, %v1439_v17  ;;  %v1458_v50 = vadd.f32 %v1454_v38, %v3509_v22  ;;  %v1416_v16 = vpop.permute.xlu1 %1415 }
 0x199   : > { %v1536_v30 = vsel %vm397_vm0, %v1530_v48, %v1533_v9  ;;  %v1539_v21 = vsel %vm397_vm0, %v1533_v9, %v1530_v48  ;;  %v1554_v11 = vsel %vm846_vm10, %v1548_v61, %v1551_v40  ;;  %v1557_v9 = vsel %vm846_vm10, %v1551_v40, %v1548_v61 }
 0x19a   : > { %v3627_v33 = vmul.f32 %v1296_v54, %v3601_v29  ;;  %v3630_v4 = vmul.f32 %v1297_v36, %v3604_v8  ;;  %v1475_v22 = vadd.f32 %v1469_v55, %v1457_v58  ;;  %v1476_v17 = vadd.f32 %v1472_v0, %v1458_v50  ;;  %1338 = vrot.lane.b32.xlu2 %v3522_v57, %s2162_s6 }
 0x19b   : > { %v1543_v35 = vadd.f32 %v1536_v30, %v1525_v15  ;;  %v1544_v46 = vadd.f32 %v1539_v21, %v1526_v44  ;;  %v1502_v15 = vpop.permute.xlu2 %1501  ;;  %v1464_v58 = vrot.slane %v3511_v6, 2 }
 0x19c   : > { %v3634_v2 = vmul.f32 0.11111111, %v1475_v22  ;;  %v3636_v60 = vmul.f32 0.11111111, %v1476_v17 }
 0x19d   : > { %v1561_v41 = vadd.f32 %v1554_v11, %v1543_v35  ;;  %v1562_v44 = vadd.f32 %v1557_v9, %v1544_v46  ;;  %v1509_v35 = vadd.f32 %v1502_v15, %v3274_v19 }
 0x19e   : > { %v3642_v48 = vmul.f32 %v3634_v2, %v3193_v12  ;;  %v3646_v5 = vmul.f32 %v3636_v60, %v3150_v56  ;;  %1330 = vrot.lane.b32.xlu1 %v3552_v32, %s2161_s5  ;;  %v3652_v38 = vmul.f32 %v3634_v2, %v3058_v24  ;;  %v3656_v40 = vmul.f32 %v3636_v60, %v3060_v3  ;;  %v1438_v12 = vpop.permute.xlu0 %1437 }
 0x19f   : > { %v1424_v56 = vadd.f32 %v3247_v43, %v1416_v16  ;;  %v1446_v24 = vrot.slane %v3511_v6, 1 }
 0x1a0   : > { %v1494_v55 = vpop.permute.xlu1 %1493 }
 0x1a1   : > { %v1505_v46 = vadd.f32 %v1494_v55, %v3280_v52 }
 0x1a3   : > { %v3663_v54 = vpop.permute.xlu2 %1521 }
 0x1a6   : > { %1753 = vrot.lane.b32.xlu1 %v3594_v37, %s2161_s5  ;;  %v1520_v30 = vpop.permute.xlu0 %1519 }
 0x1a8   : > { %v1434_v0 = vpop.permute.xlu1 %1433 }
 0x1a9   : > { %v1442_v36 = vadd.f32 %v1434_v0, %v1424_v56  ;;  %v3680_v0 = vadd.f32 %v1520_v30, %v1509_v35 }
 0x1ab   : > { %v1449_v3 = vrot.slane %v1442_v36, 1  ;;  %v1467_v50 = vrot.slane %v1442_v36, 2 }
 0x1ad   : > { %v1452_v21 = vsel %vm397_vm0, %v1446_v24, %v1449_v3  ;;  %v1455_v61 = vsel %vm397_vm0, %v1449_v3, %v1446_v24  ;;  %v1470_v43 = vsel %vm846_vm10, %v1464_v58, %v1467_v50  ;;  %v1473_v16 = vsel %vm846_vm10, %v1467_v50, %v1464_v58 }
 0x1ae   : > { %v1459_v22 = vadd.f32 %v1452_v21, %v3511_v6  ;;  %v1460_v17 = vadd.f32 %v1455_v61, %v1442_v36  ;;  %1757 = vrot.lane.b32.xlu1 %v3618_v10, %s2162_s6  ;;  %v1532_v3 = vrot.slane %v3549_v45, 1  ;;  %v1550_v58 = vrot.slane %v3549_v45, 2  ;;  %v3684_v36 = vpop.permute.xlu2 %1589  ;;  %v3700_v35 = vpop.permute.xlu0 %1152 }
 0x1af   : > { %v1567_v21 = vmul.f32 0.11111111, %v1561_v41  ;;  %v1568_v61 = vmul.f32 0.11111111, %v1562_v44 }
 0x1b0   : > { %v1477_v11 = vadd.f32 %v1470_v43, %v1459_v22  ;;  %v1478_v9 = vadd.f32 %v1473_v16, %v1460_v17  ;;  %v1512_v56 = vpop.permute.xlu1 %1511 }
 0x1b1   : > { %v1523_v24 = vadd.f32 %v1512_v56, %v1505_v46 }
 0x1b2   : > { %v1483_v50 = vmul.f32 0.11111111, %v1477_v11  ;;  %v1484_v6 = vmul.f32 0.11111111, %v1478_v9 }
 0x1b3   : > { %v1529_v37 = vrot.slane %v1523_v24, 1  ;;  %v1547_v19 = vrot.slane %v1523_v24, 2 }
 0x1b4   : > { %v1573_v15 = vmul.f32 %v1483_v50, %v1483_v50  ;;  %v1574_v52 = vmul.f32 %v1484_v6, %v1484_v6  ;;  %v3687_v55 = vmul.f32 %v1483_v50, %v3482_v7  ;;  %v3690_v30 = vmul.f32 %v1484_v6, %v3473_v42 }
 0x1b5   : > { %v1535_v43 = vsel %vm397_vm0, %v1529_v37, %v1532_v3  ;;  %v1538_v16 = vsel %vm397_vm0, %v1532_v3, %v1529_v37  ;;  %v1553_v41 = vsel %vm846_vm10, %v1547_v19, %v1550_v58  ;;  %v1556_v44 = vsel %vm846_vm10, %v1550_v58, %v1547_v19 }
 0x1b6   : > { %v1579_v22 = vsub.f32 %v1567_v21, %v1573_v15  ;;  %v1580_v17 = vsub.f32 %v1568_v61, %v1574_v52  ;;  %v1541_v7 = vadd.f32 %v1535_v43, %v1523_v24  ;;  %v1542_v42 = vadd.f32 %v1538_v16, %v3549_v45 }
 0x1b7   : > { %v3704_v46 = vmul.f32 %v1483_v50, %v3104_v31  ;;  %v3707_v11 = vmul.f32 %v1484_v6, %v3109_v20  ;;  %v1571_v24 = vmul.f32 %v3634_v2, %v3634_v2  ;;  %v1572_v31 = vmul.f32 %v3636_v60, %v3636_v60  ;;  %v3717_v6 = vpop.permute.xlu2 %1156 }
 0x1b8   : > { %v1711_v37 = vadd.f32 %v1579_v22, %v1573_v15  ;;  %v1712_v9 = vadd.f32 %v1580_v17, %v1574_v52  ;;  %v1420_v56 = vpop.permute.xlu1 %1419  ;;  %v1559_v3 = vadd.f32 %v1553_v41, %v1541_v7  ;;  %v1560_v10 = vadd.f32 %v1556_v44, %v1542_v42  ;;  %v3724_v41 = vpop.permute.xlu0 %1154 }
 0x1b9   : > { %v1426_v58 = vadd.f32 %v3260_v62, %v1420_v56  ;;  %v1425_v43 = vadd.f32 %v3266_v26, %v3545_v28 }
 0x1ba   : > { %v1717_v21 = vadd.f32 0.0009, %v1711_v37  ;;  %v1718_v61 = vadd.f32 0.0009, %v1712_v9  ;;  %v1565_v19 = vmul.f32 0.11111111, %v1559_v3 }
 0x1bb   : > { %v1566_v45 = vmul.f32 0.11111111, %v1560_v10  ;;  %v1444_v50 = vadd.f32 %v1438_v12, %v1426_v58 }
 0x1bc   : > { %v3715_v20 = vmul.f32 %v1718_v61, %v3604_v8  ;;  %v3720_v15 = vmul.f32 %v1717_v21, %v3601_v29  ;;  %v1577_v62 = vsub.f32 %v1565_v19, %v1571_v24 }
 0x1bd   : > { %v1578_v52 = vsub.f32 %v1566_v45, %v1572_v31  ;;  %v1450_v8 = vrot.slane %v1444_v50, 1  ;;  %v1468_v22 = vrot.slane %v1444_v50, 2 }
 0x1be   : > { %v1709_v2 = vadd.f32 %v1577_v62, %v1571_v24 }
 0x1bf   : > { %v1710_v16 = vadd.f32 %v1578_v52, %v1572_v31  ;;  %v3740_v3 = vpop.permute.xlu2 %1593  ;;  %v1549_v52 = vrot.slane %v3680_v0, 2 }
 0x1c0   : > { %v1436_v10 = vpop.permute.xlu1 %1435  ;;  %v1715_v60 = vadd.f32 0.0009, %v1709_v2  ;;  %v1171_v45 = vpop.permute.xlu0 %1170 }
 0x1c1   : > { %v1716_v12 = vadd.f32 0.0009, %v1710_v16  ;;  %v1443_v44 = vadd.f32 %v1436_v10, %v1425_v43 }
 0x1c2   : > { %v3727_v17 = vmul.f32 %v1715_v60, %v3559_v23 }
 0x1c3   : > { %v3730_v29 = vmul.f32 %v1716_v12, %v3573_v53  ;;  %v1447_v7 = vrot.slane %v1443_v44, 1  ;;  %v1465_v42 = vrot.slane %v1443_v44, 2 }
 0x1c4   : > { %2097 = vrcp.f32 %v3727_v17 }
 0x1c5   : > { %v1453_v26 = vsel %vm397_vm0, %v1447_v7, %v1450_v8  ;;  %v1456_v28 = vsel %vm397_vm0, %v1450_v8, %v1447_v7  ;;  %v1471_v37 = vsel %vm846_vm10, %v1465_v42, %v1468_v22  ;;  %v1474_v23 = vsel %vm846_vm10, %v1468_v22, %v1465_v42  ;;  %v4269_v22 = vld [vmem:[#allocation10_spill] sm:$0xff] }
 0x1c6   : > { %v1461_v9 = vadd.f32 %v1453_v26, %v1443_v44  ;;  %v1462_v56 = vadd.f32 %v1456_v28, %v1444_v50  ;;  %v1531_v50 = vrot.slane %v3680_v0, 1  ;;  %v4270_v26 = vld [vmem:[#allocation6_spill] sm:$0xff]  ;;  %2099 = vrcp.f32 %v3730_v29 }
 0x1c7   : > { %v1610_v8 = vpop.permute.xlu2 %1609  ;;  %v1601_v28 = vadd.f32 %v3684_v36, %v4270_v26  ;;  %2101 = vrcp.f32 %v3591_v39 }
 0x1c8   : > { %v1479_v53 = vadd.f32 %v1471_v37, %v1461_v9  ;;  %v1480_v58 = vadd.f32 %v1474_v23, %v1462_v56  ;;  %v1504_v21 = vpop.permute.xlu1 %1503  ;;  %2103 = vrcp.f32 %v3627_v33 }
 0x1c9   : > { %v1510_v61 = vadd.f32 %v1504_v21, %v3306_v25  ;;  %2105 = vrcp.f32 %v3630_v4 }
 0x1ca   : > { %v1485_v24 = vmul.f32 0.11111111, %v1479_v53  ;;  %v1486_v19 = vmul.f32 0.11111111, %v1480_v58  ;;  %2107 = vrcp.f32 %v3720_v15 }
 0x1cb   : > { %v1528_v31 = vadd.f32 %v3663_v54, %v1510_v61  ;;  %v3771_v61 = vpop.eup %2091  ;;  %2109 = vrcp.f32 %v3715_v20 }
 0x1cc   : > { %v3745_v62 = vmul.f32 %v1485_v24, %v3327_v27  ;;  %v3750_v16 = vmul.f32 %v1485_v24, %v3137_v63  ;;  %v3753_v10 = vmul.f32 %v1486_v19, %v3155_v34  ;;  %v3765_v34 = vmul.f32 %v1486_v19, %v4269_v22  ;;  %v3776_v36 = vpop.eup %2093 }
 0x1cd   : > { %v1534_v43 = vrot.slane %v1528_v31, 1  ;;  %v1552_v2 = vrot.slane %v1528_v31, 2  ;;  %v1575_v37 = vmul.f32 %v1485_v24, %v1485_v24  ;;  %v1576_v23 = vmul.f32 %v1486_v19, %v1486_v19  ;;  %v4271_v19 = vld [vmem:[#allocation8_spill] sm:$0xff] }
 0x1ce   : > { %4267 = vst [vmem:[#allocation30_spill] sm:$0xff] %v3750_v16 }
 0x1cf   : > { %4268 = vst [vmem:[#allocation31_spill] sm:$0xff] %v3753_v10  ;;  %v1537_v25 = vsel %vm397_vm0, %v1531_v50, %v1534_v43  ;;  %v1540_v54 = vsel %vm397_vm0, %v1534_v43, %v1531_v50  ;;  %v1555_v27 = vsel %vm846_vm10, %v1549_v52, %v1552_v2  ;;  %v1558_v60 = vsel %vm846_vm10, %v1552_v2, %v1549_v52  ;;  %v3774_v43 = vpop.permute.xlu2 %1611 }
 0x1d0   : > { %v1545_v12 = vadd.f32 %v1537_v25, %v3680_v0  ;;  %v1546_v44 = vadd.f32 %v1540_v54, %v1528_v31  ;;  %v1151_v63 = vpop.permute.xlu1 %1150  ;;  %v1608_v0 = vpop.permute.xlu0 %1607  ;;  %v1163_v2 = vadd.f32 %v3700_v35, %v4271_v19  ;;  %v3796_v35 = vmul.f32 %v3776_v36, %v3458_v51  ;;  %v4277_v19 = vld [vmem:[#allocation7_spill] sm:$0xff] }
 0x1d1   : > { %v1619_v21 = vadd.f32 %v1608_v0, %v1601_v28  ;;  %v3792_v28 = vmul.f32 %v3771_v61, %v3455_v14 }
 0x1d2   : > { %v1563_v7 = vadd.f32 %v1555_v27, %v1545_v12  ;;  %v1564_v42 = vadd.f32 %v1558_v60, %v1546_v44  ;;  %v4272_v44 = vld [vmem:[#allocation20_spill] sm:$0xff]  ;;  %v1181_v0 = vadd.f32 %v1171_v45, %v1163_v2 }
 0x1d3   : > { %v1625_v60 = vrot.slane %v1619_v21, 1  ;;  %v1643_v12 = vrot.slane %v1619_v21, 2 }
 0x1d4   : > { %v1569_v9 = vmul.f32 0.11111111, %v1563_v7  ;;  %v1570_v56 = vmul.f32 0.11111111, %v1564_v42  ;;  %v4273_v7 = vld [vmem:[#allocation21_spill] sm:$0xff] }
 0x1d6   : > { %v1581_v53 = vsub.f32 %v1569_v9, %v1575_v37  ;;  %v1582_v58 = vsub.f32 %v1570_v56, %v1576_v23  ;;  %v4275_v56 = vld [vmem:[#allocation15_spill] sm:$0xff] }
 0x1d8   : > { %v1713_v31 = vadd.f32 %v1581_v53, %v1575_v37  ;;  %v1714_v50 = vadd.f32 %v1582_v58, %v1576_v23  ;;  %v1592_v52 = vpop.permute.xlu1 %1591  ;;  %v3798_v37 = vpop.eup %2095  ;;  %v1162_v23 = vadd.f32 %v1151_v63, %v4275_v56  ;;  %v4276_v53 = vld [vmem:[#allocation3_spill] sm:$0xff]  ;;  %v3816_v63 = vadd.f32 0.0001, %v4277_v19 }
 0x1d9   : > { %v1602_v24 = vadd.f32 %v1592_v52, %v3415_v49  ;;  %v3805_v58 = vadd.f32 0.0001, %v4276_v53  ;;  %v3829_v56 = vpop.permute.xlu2 %1160 }
 0x1da   : > { %v1719_v25 = vadd.f32 0.0009, %v1713_v31  ;;  %v1720_v54 = vadd.f32 0.0009, %v1714_v50  ;;  %v2098_v31 = vpop.eup %2097  ;;  %4278 = vst [vmem:[#allocation10_spill] sm:$0xff] %v3816_v63 }
 0x1db   : > { %v1620_v27 = vadd.f32 %v1610_v8, %v1602_v24  ;;  %v4274_v8 = vld [vmem:[#allocation16_spill] sm:$0xff]  ;;  %v2100_v24 = vpop.eup %2099  ;;  %v1733_v53 = vmul.f32 %v2098_v31, %v3727_v17 }
 0x1dc   : > { %v3785_v22 = vmul.f32 %v1719_v25, %v4272_v44  ;;  %v3788_v42 = vmul.f32 %v1720_v54, %v4273_v7  ;;  %v3801_v9 = vadd.f32 0.0001, %v4274_v8  ;;  %v3818_v54 = vpop.permute.xlu0 %1174  ;;  %v4279_v44 = vld [vmem:[#allocation9_spill] sm:$0xff]  ;;  %v3823_v8 = vpop.eup %2101 }
 0x1dd   : > { %v1628_v26 = vrot.slane %v1620_v27, 1  ;;  %v1646_v49 = vrot.slane %v1620_v27, 2  ;;  %v3821_v7 = vadd.f32 0.0001, %v4279_v44 }
 0x1de   : > { %2111 = vrcp.f32 %v3785_v22 }
 0x1df   : > { %v1631_v14 = vsel %vm397_vm0, %v1625_v60, %v1628_v26  ;;  %v1634_v50 = vsel %vm397_vm0, %v1628_v26, %v1625_v60  ;;  %v1649_v51 = vsel %vm846_vm10, %v1643_v12, %v1646_v49  ;;  %v1652_v52 = vsel %vm846_vm10, %v1646_v49, %v1643_v12  ;;  %4280 = vst [vmem:[#allocation6_spill] sm:$0xff] %v3821_v7 }
 0x1e0   : > { %v1637_v45 = vadd.f32 %v1631_v14, %v1619_v21  ;;  %v1638_v2 = vadd.f32 %v1634_v50, %v1620_v27  ;;  %v1169_v25 = vpop.permute.xlu1 %1168  ;;  %v1189_v49 = vrot.slane %v1181_v0, 1  ;;  %v1734_v14 = vmul.f32 %v2100_v24, %v3730_v29 }
 0x1e1   : > { %v1180_v60 = vadd.f32 %v1169_v25, %v1162_v23  ;;  %v1312_v23 = vmul.f32 %v3798_v37, %v3588_v59  ;;  %v1313_v25 = vmul.f32 %v3823_v8, %v3591_v39  ;;  %v1207_v26 = vrot.slane %v1181_v0, 2 }
 0x1e2   : > { %v1655_v21 = vadd.f32 %v1649_v51, %v1637_v45  ;;  %v1656_v27 = vadd.f32 %v1652_v52, %v1638_v2  ;;  %v2104_v2 = vpop.eup %2103  ;;  %v1739_v7 = vsub.f32 2.0, %v1733_v53  ;;  %2113 = vrcp.f32 %v3788_v42 }
 0x1e3   : > { %v1186_v50 = vrot.slane %v1180_v60, 1  ;;  %v1204_v19 = vrot.slane %v1180_v60, 2  ;;  %v2106_v63 = vpop.eup %2105 }
 0x1e4   : > { %v1661_v44 = vmul.f32 0.11111111, %v1655_v21  ;;  %v1662_v12 = vmul.f32 0.11111111, %v1656_v27  ;;  %v1740_v27 = vsub.f32 2.0, %v1734_v14 }
 0x1e5   : > { %v1192_v51 = vsel %vm397_vm0, %v1186_v50, %v1189_v49  ;;  %v1195_v52 = vsel %vm397_vm0, %v1189_v49, %v1186_v50  ;;  %v1210_v39 = vsel %vm846_vm10, %v1204_v19, %v1207_v26  ;;  %v1213_v21 = vsel %vm846_vm10, %v1207_v26, %v1204_v19 }
 0x1e6   : > { %v1673_v17 = vsub.f32 %v1661_v44, %v3652_v38  ;;  %v1674_v29 = vsub.f32 %v1662_v12, %v3656_v40  ;;  %v1198_v45 = vadd.f32 %v1192_v51, %v1180_v60  ;;  %v1199_v59 = vadd.f32 %v1195_v52, %v1181_v0  ;;  %v3850_v38 = vpop.permute.xlu0 %1158  ;;  %v4281_v12 = vld [vmem:[#allocation14_spill] sm:$0xff]  ;;  %v3857_v44 = vpop.eup %2107 }
 0x1e7   : > { %v1318_v40 = vsub.f32 2.0, %v1312_v23  ;;  %v1685_v0 = vadd.f32 0.0001, %v3642_v48  ;;  %v1686_v60 = vadd.f32 0.0001, %v3646_v5  ;;  %v1165_v26 = vadd.f32 %v3717_v6, %v4281_v12 }
 0x1e8   : > { %v1691_v32 = vmul.f32 2.0, %v1673_v17  ;;  %v1692_v49 = vmul.f32 2.0, %v1674_v29  ;;  %v1216_v50 = vadd.f32 %v1210_v39, %v1198_v45  ;;  %v1217_v10 = vadd.f32 %v1213_v21, %v1199_v59  ;;  %v3848_v16 = vpop.permute.xlu1 %1595  ;;  %v4282_v59 = vld [vmem:[#allocation5_spill] sm:$0xff]  ;;  %v3862_v39 = vpop.permute.xlu2 %1176  ;;  %v4283_v21 = vld [vmem:[#allocation24_spill] sm:$0xff] }
 0x1e9   : > { %v1745_v51 = vmul.f32 %v2098_v31, %v1739_v7  ;;  %v1314_v17 = vmul.f32 %v2104_v2, %v3627_v33  ;;  %v1315_v23 = vmul.f32 %v2106_v63, %v3630_v4  ;;  %v1746_v5 = vmul.f32 %v2100_v24, %v1740_v27 }
 0x1ea   : > { %v1697_v53 = vadd.f32 0.0009, %v1691_v32  ;;  %v1698_v14 = vadd.f32 0.0009, %v1692_v49  ;;  %v1222_v19 = vmul.f32 0.11111111, %v1216_v50  ;;  %v1183_v4 = vadd.f32 %v3818_v54, %v1165_v26 }
 0x1eb   : > { %v1223_v52 = vmul.f32 0.11111111, %v1217_v10  ;;  %v3865_v6 = vadd.f32 0.0001, %v4283_v21  ;;  %v4284_v32 = vld [vmem:[#allocation4_spill] sm:$0xff]  ;;  %v4285_v50 = vld [vmem:[#allocation26_spill] sm:$0xff]  ;;  %v1324_v54 = vmul.f32 %v3798_v37, %v1318_v40 }
 0x1ec   : > { %v1703_v29 = vmul.f32 %v1697_v53, %v1685_v0  ;;  %v1704_v45 = vmul.f32 %v1698_v14, %v1686_v60  ;;  %v1234_v48 = vsub.f32 %v1222_v19, %v4282_v59  ;;  %v3869_v12 = vadd.f32 0.0001, %v4285_v50  ;;  %v2110_v0 = vpop.eup %2109  ;;  %v4286_v60 = vld [vmem:[#allocation17_spill] sm:$0xff] }
 0x1ed   : > { %v1235_v49 = vsub.f32 %v1223_v52, %v4284_v32  ;;  %v1319_v10 = vsub.f32 2.0, %v1313_v25  ;;  %v1164_v24 = vadd.f32 %v3724_v41, %v4286_v60  ;;  %v4287_v53 = vsub.f32 2.0, %v3792_v28 }
 0x1ee   : > { %v3871_v31 = vmul.f32 %v1745_v51, %v1703_v29  ;;  %v1258_v33 = vmul.f32 2.0, %v1234_v48  ;;  %v3874_v7 = vmul.f32 %v1746_v5, %v1704_v45  ;;  %v4288_v19 = vsub.f32 2.0, %v3796_v35  ;;  %v1600_v5 = vpop.permute.xlu0 %1599 }
 0x1ef   : > { %v1259_v27 = vmul.f32 2.0, %v1235_v49  ;;  %v3881_v14 = vmul.f32 %v3771_v61, %v4287_v53  ;;  %v1320_v52 = vsub.f32 2.0, %v1314_v17  ;;  %v1321_v29 = vsub.f32 2.0, %v1315_v23  ;;  %v4289_v61 = vld [vmem:[#allocation18_spill] sm:$0xff] }
 0x1f0   : > { %v3886_v25 = vmul.f32 %v3776_v36, %v4288_v19  ;;  %v1264_v51 = vadd.f32 0.0009, %v1258_v33  ;;  %v1173_v26 = vpop.permute.xlu1 %1172  ;;  %v1325_v41 = vmul.f32 %v3823_v8, %v1319_v10  ;;  %v1735_v28 = vmul.f32 %v3857_v44, %v3720_v15  ;;  %v1618_v50 = vpop.permute.xlu2 %1617 }
 0x1f1   : > { %v1265_v45 = vadd.f32 0.0009, %v1259_v27  ;;  %v1182_v59 = vadd.f32 %v1173_v26, %v1164_v24  ;;  %v1603_v48 = vadd.f32 %v3740_v3, %v4289_v61  ;;  %v1190_v36 = vrot.slane %v1183_v4, 1 }
 0x1f2   : > { %v1270_v35 = vmul.f32 %v1264_v51, %v3805_v58  ;;  %v1736_v21 = vmul.f32 %v2110_v0, %v3715_v20  ;;  %v3900_v8 = vmul.f32 %v2104_v2, %v1320_v52  ;;  %v3902_v15 = vmul.f32 %v2106_v63, %v1321_v29  ;;  %v4290_v2 = vld [vmem:[#allocation22_spill] sm:$0xff]  ;;  %v4291_v51 = vld [vmem:[#allocation19_spill] sm:$0xff]  ;;  %v2112_v52 = vpop.eup %2111 }
 0x1f3   : > { %v1271_v37 = vmul.f32 %v1265_v45, %v3801_v9  ;;  %v1187_v40 = vrot.slane %v1182_v59, 1  ;;  %v1205_v17 = vrot.slane %v1182_v59, 2  ;;  %v1208_v3 = vrot.slane %v1183_v4, 2 }
 0x1f4   : > { %v3898_v23 = vmul.f32 %v1324_v54, %v1270_v35  ;;  %v1741_v9 = vsub.f32 2.0, %v1735_v28  ;;  %v1742_v33 = vsub.f32 2.0, %v1736_v21  ;;  %v1604_v63 = vadd.f32 %v3848_v16, %v4290_v2 }
 0x1f5   : > { %v1193_v58 = vsel %vm397_vm0, %v1187_v40, %v1190_v36  ;;  %v1196_v20 = vsel %vm397_vm0, %v1190_v36, %v1187_v40  ;;  %v3909_v10 = vmul.f32 %v1325_v41, %v1271_v37  ;;  %v1621_v60 = vadd.f32 %v3774_v43, %v1603_v48  ;;  %v4293_v37 = vld [vmem:[#allocation23_spill] sm:$0xff] }
 0x1f6   : > { %v1200_v32 = vadd.f32 %v1193_v58, %v1182_v59  ;;  %v1201_v49 = vadd.f32 %v1196_v20, %v1183_v4  ;;  %v1211_v24 = vsel %vm846_vm10, %v1205_v17, %v1208_v3  ;;  %v1214_v27 = vsel %vm846_vm10, %v1208_v3, %v1205_v17  ;;  %v2114_v59 = vpop.eup %2113  ;;  %v1616_v17 = vpop.permute.xlu0 %1615 }
 0x1f7   : > { %v3919_v53 = vadd.f32 0.0001, %v3687_v55  ;;  %v1166_v54 = vadd.f32 %v3850_v38, %v4291_v51  ;;  %v3924_v16 = vadd.f32 0.0001, %v3690_v30  ;;  %v3927_v43 = vadd.f32 0.0001, %v3745_v62 }
 0x1f8   : > { %v1218_v19 = vadd.f32 %v1211_v24, %v1200_v32  ;;  %v1219_v4 = vadd.f32 %v1214_v27, %v1201_v49  ;;  %v1614_v26 = vpop.permute.xlu1 %1613  ;;  %v3930_v45 = vmul.f32 %v3857_v44, %v1741_v9  ;;  %v3933_v28 = vadd.f32 0.0001, %v3765_v34  ;;  %v4292_v62 = vld [vmem:[#allocation25_spill] sm:$0xff] }
 0x1f9   : > { %v1622_v29 = vadd.f32 %v1614_v26, %v1604_v63  ;;  %v3935_v61 = vmul.f32 %v2110_v0, %v1742_v33  ;;  %v1626_v38 = vrot.slane %v1621_v60, 1  ;;  %v1606_v30 = vadd.f32 %v1600_v5, %v3462_v47 }
 0x1fa   : > { %v1224_v55 = vmul.f32 0.11111111, %v1218_v19  ;;  %v1225_v41 = vmul.f32 0.11111111, %v1219_v4  ;;  %v1644_v36 = vrot.slane %v1621_v60, 2  ;;  %v3941_v44 = vadd.f32 %v3862_v39, %v1166_v54 }
 0x1fb   : > { %v1629_v48 = vrot.slane %v1622_v29, 1  ;;  %v1647_v35 = vrot.slane %v1622_v29, 2  ;;  %v1737_v3 = vmul.f32 %v2112_v52, %v3785_v22  ;;  %v1738_v58 = vmul.f32 %v2114_v59, %v3788_v42  ;;  %v3955_v42 = vpop.permute.xlu2 %1751 }
 0x1fc   : > { %v1236_v21 = vsub.f32 %v1224_v55, %v4292_v62  ;;  %v1237_v40 = vsub.f32 %v1225_v41, %v4293_v37  ;;  %v1167_v32 = vadd.f32 %v3829_v56, %v3516_v18  ;;  %v1624_v33 = vadd.f32 %v1618_v50, %v1606_v30 }
 0x1fd   : > { %v1632_v34 = vsel %vm397_vm0, %v1626_v38, %v1629_v48  ;;  %v1635_v0 = vsel %vm397_vm0, %v1629_v48, %v1626_v38  ;;  %v1650_v39 = vsel %vm846_vm10, %v1644_v36, %v1647_v35  ;;  %v1653_v49 = vsel %vm846_vm10, %v1647_v35, %v1644_v36 }
 0x1fe   : > { %v1260_v47 = vmul.f32 2.0, %v1236_v21  ;;  %v1261_v5 = vmul.f32 2.0, %v1237_v40  ;;  %v1639_v20 = vadd.f32 %v1632_v34, %v1621_v60  ;;  %v1640_v9 = vadd.f32 %v1635_v0, %v1622_v29 }
 0x1ff   : > { %v1188_v60 = vrot.slane %v3941_v44, 1  ;;  %v1743_v4 = vsub.f32 2.0, %v1737_v3  ;;  %v1744_v18 = vsub.f32 2.0, %v1738_v58  ;;  %v1630_v50 = vrot.slane %v1624_v33, 1 }
 0x200   : > { %v1266_v2 = vadd.f32 0.0009, %v1260_v47  ;;  %v1267_v63 = vadd.f32 0.0009, %v1261_v5  ;;  %v1657_v24 = vadd.f32 %v1650_v39, %v1639_v20  ;;  %v1658_v22 = vadd.f32 %v1653_v49, %v1640_v9  ;;  %v1598_v27 = vpop.permute.xlu1 %1597 }
 0x201   : > { %v1605_v19 = vadd.f32 %v1598_v27, %v3503_v1  ;;  %v1785_v55 = vsub.f32 1.0, %v3871_v31  ;;  %v1786_v41 = vsub.f32 1.0, %v3874_v7  ;;  %v1648_v30 = vrot.slane %v1624_v33, 2  ;;  %v1333_v31 = vpop.permute.xlu0 %1332 }
 0x202   : > { %v1272_v56 = vmul.f32 %v1266_v2, %v3869_v12  ;;  %v1663_v51 = vmul.f32 0.11111111, %v1657_v24  ;;  %v1664_v54 = vmul.f32 0.11111111, %v1658_v22  ;;  %v1273_v26 = vmul.f32 %v1267_v63, %v3865_v6 }
 0x203   : > { %v1623_v29 = vadd.f32 %v1616_v17, %v1605_v19  ;;  %v1206_v12 = vrot.slane %v3941_v44, 2  ;;  %v3972_v37 = vmul.f32 %v2112_v52, %v1743_v4  ;;  %v3974_v7 = vmul.f32 %v2114_v59, %v1744_v18  ;;  %v1339_v39 = vpop.permute.xlu2 %1338 }
 0x204   : > { %v1675_v38 = vsub.f32 %v1663_v51, %v3704_v46  ;;  %v1676_v48 = vsub.f32 %v1664_v54, %v3707_v11  ;;  %v3966_v1 = vmul.f32 %v3900_v8, %v1272_v56  ;;  %v3969_v35 = vmul.f32 %v3902_v15, %v1273_v26  ;;  %v4295_v51 = vld [vmem:[#allocation11_spill] sm:$0xff] }
 0x205   : > { %v1627_v6 = vrot.slane %v1623_v29, 1  ;;  %v1645_v36 = vrot.slane %v1623_v29, 2  ;;  %v3980_v8 = vmul.f32 0.5, %v1785_v55  ;;  %v3982_v15 = vmul.f32 0.5, %v1786_v41  ;;  %v4296_v26 = vld [vmem:[#allocation31_spill] sm:$0xff] }
 0x206   : > { %v1693_v62 = vmul.f32 2.0, %v1675_v38  ;;  %v1694_v21 = vmul.f32 2.0, %v1676_v48  ;;  %v1335_v47 = vadd.f32 %v3522_v57, %v1333_v31  ;;  %v1365_v24 = vsub.f32 1.0, %v3909_v10 }
 0x207   : > { %v1633_v46 = vsel %vm397_vm0, %v1627_v6, %v1630_v50  ;;  %v1636_v11 = vsel %vm397_vm0, %v1630_v50, %v1627_v6  ;;  %v1651_v52 = vsel %vm846_vm10, %v1645_v36, %v1648_v30  ;;  %v1654_v59 = vsel %vm846_vm10, %v1648_v30, %v1645_v36  ;;  %v4297_v30 = vld [vmem:[#allocation27_spill] sm:$0xff] }
 0x208   : > { %v1699_v40 = vadd.f32 0.0009, %v1693_v62  ;;  %v1700_v17 = vadd.f32 0.0009, %v1694_v21  ;;  %v1641_v34 = vadd.f32 %v1633_v46, %v1623_v29  ;;  %v1642_v0 = vadd.f32 %v1636_v11, %v1624_v33  ;;  %v1179_v3 = vpop.permute.xlu1 %1178 }
 0x209   : > { %v1185_v58 = vadd.f32 %v1179_v3, %v1167_v32  ;;  %v1364_v33 = vsub.f32 1.0, %v3898_v23  ;;  %v1341_v32 = vadd.f32 %v1339_v39, %v1335_v47  ;;  %v1797_v4 = vmax.f32 %v3980_v8, 0.0  ;;  %v4294_v23 = vld [vmem:[#allocation30_spill] sm:$0xff]  ;;  %v1337_v38 = vpop.permute.xlu0 %1336  ;;  %v4301_v47 = vld [vmem:[#allocation13_spill] sm:$0xff] }
 0x20a   : > { %v1706_v5 = vmul.f32 %v1700_v17, %v3924_v16  ;;  %v1659_v20 = vadd.f32 %v1651_v52, %v1641_v34  ;;  %v1660_v9 = vadd.f32 %v1654_v59, %v1642_v0  ;;  %v1705_v49 = vmul.f32 %v1699_v40, %v3919_v53  ;;  %v4299_v3 = vld [vmem:[#allocation2_spill] sm:$0xff]  ;;  %v4300_v59 = vld [vmem:[#allocation12_spill] sm:$0xff] }
 0x20b   : > { %v1191_v2 = vrot.slane %v1185_v58, 1  ;;  %v1209_v63 = vrot.slane %v1185_v58, 2  ;;  %vm963_vm12 = vcmp.lt.s32.totalorder %v4295_v51, 126  ;;  %v1370_v54 = vmul.f32 0.5, %v1364_v33 }
 0x20c   : > { %v1665_v22 = vmul.f32 0.11111111, %v1659_v20  ;;  %v1666_v27 = vmul.f32 0.11111111, %v1660_v9  ;;  %v3994_v19 = vmul.f32 %v3930_v45, %v1705_v49  ;;  %v3997_v57 = vmul.f32 %v3935_v61, %v1706_v5 }
 0x20d   : > { %v1194_v16 = vsel %vm397_vm0, %v1188_v60, %v1191_v2  ;;  %v1197_v53 = vsel %vm397_vm0, %v1191_v2, %v1188_v60  ;;  %v1212_v45 = vsel %vm846_vm10, %v1206_v12, %v1209_v63  ;;  %v1215_v61 = vsel %vm846_vm10, %v1209_v63, %v1206_v12  ;;  %v4298_v12 = vld [vmem:[#allocation29_spill] sm:$0xff] }
 0x20e   : > { %v1677_v18 = vsub.f32 %v1665_v22, %v4294_v23  ;;  %v1202_v10 = vadd.f32 %v1194_v16, %v3941_v44  ;;  %v1203_v56 = vadd.f32 %v1197_v53, %v1185_v58  ;;  %v1678_v50 = vsub.f32 %v1666_v27, %v4296_v26 }
 0x20f   : > { %v1371_v48 = vmul.f32 0.5, %v1365_v24  ;;  %v1343_v6 = vrot.slane %v1341_v32, 1  ;;  %v1366_v36 = vsub.f32 1.0, %v3966_v1  ;;  %v1755_v11 = vadd.f32 %v4298_v12, %v3955_v42 }
 0x210   : > { %v1695_v60 = vmul.f32 2.0, %v1677_v18  ;;  %v1220_v29 = vadd.f32 %v1212_v45, %v1202_v10  ;;  %v1221_v55 = vadd.f32 %v1215_v61, %v1203_v56  ;;  %v1331_v41 = vpop.permute.xlu1 %1330  ;;  %v1696_v62 = vmul.f32 2.0, %v1678_v50  ;;  %v4302_v45 = vld [vmem:[#allocation10_spill] sm:$0xff] }
 0x211   : > { %v1334_v44 = vadd.f32 %v4297_v30, %v1331_v41  ;;  %v1349_v40 = vrot.slane %v1341_v32, 2  ;;  %v1367_v34 = vsub.f32 1.0, %v3969_v35  ;;  %vm962_vm13 = vcmp.lt.s32.totalorder %v4301_v47, 14  ;;  %v1760_v30 = vpop.permute.xlu0 %1759 }
 0x212   : > { %v1701_v21 = vadd.f32 0.0009, %v1695_v60  ;;  %v1226_v31 = vmul.f32 0.11111111, %v1220_v29  ;;  %v1227_v46 = vmul.f32 0.11111111, %v1221_v55  ;;  %vm965_vm14 = vmand %vm962_vm13, %vm963_vm12 }
 0x213   : > { %v1340_v17 = vadd.f32 %v1337_v38, %v1334_v44  ;;  %v1702_v0 = vadd.f32 0.0009, %v1696_v62  ;;  %v1372_v9 = vmul.f32 0.5, %v1366_v36  ;;  %v1376_v2 = vmax.f32 %v1370_v54, 0.0  ;;  %v4305_v29 = vld [vmem:[#allocation28_spill] sm:$0xff] }
 0x214   : > { %v1238_v52 = vsub.f32 %v1226_v31, %v4299_v3  ;;  %v1239_v58 = vsub.f32 %v1227_v46, %v4300_v59  ;;  %v1707_v1 = vmul.f32 %v1701_v21, %v3927_v43  ;;  %v1373_v24 = vmul.f32 0.5, %v1367_v34 }
 0x215   : > { %v1342_v5 = vrot.slane %v1340_v17, 1  ;;  %v1348_v20 = vrot.slane %v1340_v17, 2  ;;  %v1708_v39 = vmul.f32 %v1702_v0, %v3933_v28  ;;  %v1377_v22 = vmax.f32 %v1371_v48, 0.0 }
 0x216   : > { %v1262_v49 = vmul.f32 2.0, %v1238_v52  ;;  %v1263_v42 = vmul.f32 2.0, %v1239_v58  ;;  %v1783_v63 = vmul.f32 %v3972_v37, %v1707_v1  ;;  %v1378_v18 = vmax.f32 %v1372_v9, 0.0 }
 0x217   : > { %v1344_v35 = vsel %vm397_vm0, %v1342_v5, %v1343_v6  ;;  %v1345_v33 = vsel %vm397_vm0, %v1343_v6, %v1342_v5  ;;  %v1350_v37 = vsel %vm846_vm10, %v1348_v20, %v1349_v40  ;;  %v1351_v23 = vsel %vm846_vm10, %v1349_v40, %v1348_v20 }
 0x218   : > { %v1269_v27 = vadd.f32 0.0009, %v1263_v42  ;;  %v1346_v43 = vadd.f32 %v1344_v35, %v1340_v17  ;;  %v1347_v16 = vadd.f32 %v1345_v33, %v1341_v32  ;;  %v1754_v53 = vpop.permute.xlu1 %1753  ;;  %v1268_v28 = vadd.f32 0.0009, %v1262_v49  ;;  %v4303_v32 = vld [vmem:[#allocation6_spill] sm:$0xff] }
 0x219   : > { %v1784_v10 = vmul.f32 %v3974_v7, %v1708_v39  ;;  %v4304_v50 = vmov 0.0   ;;  %v1756_v55 = vadd.f32 %v4305_v29, %v1754_v53  ;;  %v1379_v38 = vmax.f32 %v1373_v24, 0.0 }
 0x21a   : > { %v1352_v56 = vadd.f32 %v1350_v37, %v1346_v43  ;;  %v1274_v61 = vmul.f32 %v1268_v28, %v4302_v45  ;;  %v1275_v54 = vmul.f32 %v1269_v27, %v4303_v32  ;;  %v1353_v26 = vadd.f32 %v1351_v23, %v1347_v16 }
 0x21b   : > { %v4041_v60 = vsel %vm963_vm12, 1.0, %v4304_v50  ;;  %v4045_v41 = vsel %vm965_vm14, 1.0, %v4304_v50  ;;  %v1382_v36 = vmin.f32 %v1376_v2, 1.0  ;;  %v1383_v62 = vmin.f32 %v1377_v22, 1.0 }
 0x21c   : > { %v1354_v48 = vmul.f32 0.11111111, %v1352_v56  ;;  %v1355_v7 = vmul.f32 0.11111111, %v1353_v26  ;;  %v1362_v44 = vmul.f32 %v3881_v14, %v1274_v61  ;;  %v1363_v6 = vmul.f32 %v3886_v25, %v1275_v54 }
 0x21d   : > { %v1384_v21 = vmin.f32 %v1378_v18, 1.0  ;;  %v1787_v51 = vsub.f32 1.0, %v3994_v19  ;;  %v1762_v17 = vadd.f32 %v1760_v30, %v1756_v55  ;;  %v1385_v34 = vmin.f32 %v1379_v38, 1.0 }
 0x21e   : > { %v1356_v31 = vmul.f32 %v4041_v60, %v1354_v48  ;;  %v1357_v46 = vmul.f32 %v4045_v41, %v1355_v7  ;;  %v1368_v12 = vsub.f32 1.0, %v1362_v44  ;;  %v1369_v40 = vsub.f32 1.0, %v1363_v6 }
 0x21f   : > { %v1788_v0 = vsub.f32 1.0, %v3997_v57  ;;  %v1789_v3 = vsub.f32 1.0, %v1783_v63  ;;  %v1790_v19 = vsub.f32 1.0, %v1784_v10  ;;  %v1793_v49 = vmul.f32 0.5, %v1787_v51 }
 0x220   : > { %v1758_v52 = vpop.permute.xlu1 %1757  ;;  %v1374_v14 = vmul.f32 0.5, %v1368_v12  ;;  %v1375_v59 = vmul.f32 0.5, %v1369_v40  ;;  %v1388_v25 = vmul.f32 %v1382_v36, %v1356_v31  ;;  %v1389_v58 = vmul.f32 %v1383_v62, %v1357_v46 }
 0x221   : > { %v1761_v47 = vadd.f32 %v1758_v52, %v1755_v11  ;;  %v1390_v1 = vmul.f32 %v1384_v21, %v1356_v31  ;;  %v1391_v5 = vmul.f32 %v1385_v34, %v1357_v46  ;;  %v1764_v42 = vrot.slane %v1762_v17, 1 }
 0x222   : > { %v1380_v20 = vmax.f32 %v1374_v14, 0.0  ;;  %v1381_v9 = vmax.f32 %v1375_v59, 0.0  ;;  %v1394_v39 = vadd.f32 %v1389_v58, %v1388_v25  ;;  %v1794_v33 = vmul.f32 0.5, %v1788_v0 }
 0x223   : > { %v1763_v2 = vrot.slane %v1761_v47, 1  ;;  %v1769_v35 = vrot.slane %v1761_v47, 2  ;;  %v1795_v22 = vmul.f32 0.5, %v1789_v3  ;;  %v1770_v27 = vrot.slane %v1762_v17, 2 }
 0x224   : > { %v1386_v24 = vmin.f32 %v1380_v20, 1.0  ;;  %v1387_v57 = vmin.f32 %v1381_v9, 1.0  ;;  %v1395_v63 = vadd.f32 %v1394_v39, %v1390_v1  ;;  %v1796_v16 = vmul.f32 0.5, %v1790_v19 }
 0x225   : > { %v1765_v43 = vsel %vm397_vm0, %v1763_v2, %v1764_v42  ;;  %v1766_v11 = vsel %vm397_vm0, %v1764_v42, %v1763_v2  ;;  %v1771_v18 = vsel %vm846_vm10, %v1769_v35, %v1770_v27  ;;  %v1772_v10 = vsel %vm846_vm10, %v1770_v27, %v1769_v35 }
 0x226   : > { %v1767_v53 = vadd.f32 %v1765_v43, %v1761_v47  ;;  %v1768_v28 = vadd.f32 %v1766_v11, %v1762_v17  ;;  %v1392_v37 = vmul.f32 %v1386_v24, %v1356_v31  ;;  %v1393_v23 = vmul.f32 %v1387_v57, %v1357_v46 }
 0x227   : > { %v1396_v56 = vadd.f32 %v1395_v63, %v1391_v5  ;;  %v1798_v45 = vmax.f32 %v3982_v15, 0.0  ;;  %v1799_v54 = vmax.f32 %v1793_v49, 0.0  ;;  %v1800_v26 = vmax.f32 %v1794_v33, 0.0 }
 0x228   : > { %v1773_v61 = vadd.f32 %v1771_v18, %v1767_v53  ;;  %v1774_v32 = vadd.f32 %v1772_v10, %v1768_v28  ;;  %v1801_v29 = vmax.f32 %v1795_v22, 0.0  ;;  %v1802_v55 = vmax.f32 %v1796_v16, 0.0 }
 0x229   : > { %v1397_v50 = vadd.f32 %v1396_v56, %v1392_v37  ;;  %v1803_v7 = vmin.f32 %v1797_v4, 1.0  ;;  %v1804_v44 = vmin.f32 %v1798_v45, 1.0  ;;  %v1805_v36 = vmin.f32 %v1799_v54, 1.0 }
 0x22a   : > { %v1775_v38 = vmul.f32 0.11111111, %v1773_v61  ;;  %v1776_v48 = vmul.f32 0.11111111, %v1774_v32  ;;  %v1806_v15 = vmin.f32 %v1800_v26, 1.0  ;;  %v1807_v62 = vmin.f32 %v1801_v29, 1.0 }
 0x22b   : > { %v1398_v30 = vadd.f32 %v1397_v50, %v1393_v23  ;;  %v1808_v21 = vmin.f32 %v1802_v55, 1.0 }
 0x22c   : > { %v1777_v13 = vmul.f32 %v4041_v60, %v1775_v38  ;;  %v1778_v6 = vmul.f32 %v4045_v41, %v1776_v48 }
 0x22d   : > { %1399 = vadd.xlane.f32.xlu2 %v1398_v30 }
 0x22e   : > { %v1809_v51 = vmul.f32 %v1803_v7, %v1777_v13  ;;  %v1810_v31 = vmul.f32 %v1804_v44, %v1778_v6  ;;  %v1811_v46 = vmul.f32 %v1805_v36, %v1777_v13  ;;  %v1812_v12 = vmul.f32 %v1806_v15, %v1778_v6 }
 0x22f   : > { %v1813_v40 = vmul.f32 %v1807_v62, %v1777_v13  ;;  %v1814_v17 = vmul.f32 %v1808_v21, %v1778_v6 }
 0x230   : > { %v1815_v34 = vadd.f32 %v1810_v31, %v1809_v51 }
 0x232   : > { %v1816_v0 = vadd.f32 %v1815_v34, %v1811_v46 }
 0x234   : > { %v1817_v8 = vadd.f32 %v1816_v0, %v1812_v12 }
 0x236   : > { %v1818_v4 = vadd.f32 %v1817_v8, %v1813_v40 }
 0x238   : > { %v1819_v3 = vadd.f32 %v1818_v4, %v1814_v17 }
 0x23a   : > { %1820 = vadd.xlane.f32.xlu1 %v1819_v3 }
 0x2a0   : > { %v1400_v60 = vpop.xlane.xlu2 %1399 }
 0x2a1   : > { %v1401_v52 = vrot.slane %v1400_v60, 4 }
 0x2a3   : > { %v1402_v41 = vadd.f32 %v1401_v52, %v1400_v60 }
 0x2a5   : > { %v1403_v14 = vrot.slane %v1402_v41, 2 }
 0x2a7   : > { %v1404_v59 = vadd.f32 %v1403_v14, %v1402_v41 }
 0x2a9   : > { %v1405_v25 = vrot.slane %v1404_v59, 1 }
 0x2ab   : > { %v1406_v58 = vadd.f32 %v1405_v25, %v1404_v59 }
 0x2ad   : > { %2060 = vpush %v1406_v58  ;;  %v1821_v47 = vpop.xlane.xlu1 %1820 }
 0x2ae   : > { %v1822_v1 = vrot.slane %v1821_v47, 4 }
 0x2b0   : > { %v1823_v5 = vadd.f32 %v1822_v1, %v1821_v47 }
 0x2b2   : > { %v1824_v19 = vrot.slane %v1823_v5, 2 }
 0x2b4   : > { %v1825_v20 = vadd.f32 %v1824_v19, %v1823_v5 }
 0x2b6   : > { %v1826_v9 = vrot.slane %v1825_v20, 1 }
 0x2b8   : > { %v1827_v39 = vadd.f32 %v1826_v9, %v1825_v20 }
 0x2ba   : > { %2062 = vpush %v1827_v39 }
 0x2de   : > { %s2061_s13 = spop %2060 }
 0x2df   : > { %s1830_s21 = smul.f32 9.448224e-05, %s2061_s13 }
 0x2e1   : > { %v1831_v49 = vstv %s1830_s21 }
 0x2e2   : > { %1832 = vst.msk [vmem:[%s317_s20] sm:$0x1] %vm569_vm11, %v1831_v49 }
 0x2eb   : > { %s2063_s22 = spop %2062 }
 0x2ec   : > { %s1833_s23 = smul.f32 9.448224e-05, %s2063_s22 }
 0x2ee   : > { %v1834_v42 = vstv %s1833_s23 }
 0x2ef   : > { %2050 = vst.msk [vmem:[%s317_s20 + $0x1] sm:$0x1] %vm569_vm11, %v1834_v42 }
 0x2f0 PF: > { %s15_s17 = sadd.s32 1, %s2159_s17   ;;  %s4306_s15 = smov %s2155_s16 }
 0x2f1   : > { %p12_p5 = scmp.ge.s32.totalorder %s15_s17, 4   ;;  %s4307_s16 = smov %s4309_s18 }
 0x2f3   :  { %14 = sbr.rel (!%p12_p5) target bundleno = 2 (0x2), region = 82 }

</bundles_post_ra>
